<compile_context>
chip_gen: v7x
topology: tpu7x:2x2x1
jax: 0.10.0
libtpu: 0.0.40
codegen_flags: <defaults>
</compile_context>

<pallas_src>
import math

import jax
import jax.numpy as jnp
from jax.experimental import pallas as pl
from jax.experimental.pallas import tpu as pltpu

# ----- small ViT config (scaled-down google/vit-base-patch16-224) -----
BATCH = 2
IN_CH = 3
IMG = 32
PATCH = 16
N_PATCH = (IMG // PATCH) ** 2        # 4 patches
SEQ = N_PATCH + 1                    # 5 tokens (CLS + patches)
HIDDEN = 128
HEADS = 4
HEAD_DIM = HIDDEN // HEADS           # 32
MLP = 4 * HIDDEN                     # 512
LAYERS = 2
NUM_CLASSES = 8
LN_EPS = 1e-12                       # HF ViT layer_norm_eps
ATTN_SCALE = 1.0 / math.sqrt(HEAD_DIM)
NEG_BIAS = -1e30                     # additive mask for cross-batch attention


# ---------------------------------------------------------------------------
# Fused Pallas kernel: the whole PlantVision.forward
# ---------------------------------------------------------------------------
def _layernorm(x, g, b):
    mean = jnp.mean(x, axis=-1, keepdims=True)
    xc = x - mean
    var = jnp.mean(xc * xc, axis=-1, keepdims=True)   # biased var, like torch LN
    return xc * jax.lax.rsqrt(var + LN_EPS) * g + b


def _gelu_exact(x):
    # exact (erf-based) GELU — matches torch / HF ViT "gelu"
    return 0.5 * x * (1.0 + jax.lax.erf(x * 0.7071067811865476))


def _plant_vision_kernel(
    # activations / constants
    patches_ref,                     # (B*NP, C*P*P)
    attn_bias_ref,                   # (B*S, B*S) block-diag 0 / -1e30
    # embedding params
    patch_w_ref, patch_b_ref,        # (C*P*P, D), (1, D)
    cls_ref, pos_ref,                # (1, D), (S, D)
    # stacked per-layer params (leading dim = LAYERS)
    ln1_g_ref, ln1_b_ref,            # (L, 1, D)
    wqkv_ref, bqkv_ref,              # (L, D, 3D), (L, 1, 3D)
    wo_ref, bo_ref,                  # (L, D, D), (L, 1, D)
    ln2_g_ref, ln2_b_ref,            # (L, 1, D)
    w1_ref, b1_ref,                  # (L, D, MLP), (L, 1, MLP)
    w2_ref, b2_ref,                  # (L, MLP, D), (L, 1, D)
    # final norm + heads
    lnf_g_ref, lnf_b_ref,            # (1, D)
    head1_w_ref, head1_b_ref,        # (S, D, NC), (1, NC)
    head2_w_ref, head2_b_ref,        # (NC, NC), (1, NC)
    # output
    out_ref,                         # (B, NC)
):
    # --- patch embedding (conv stride=PATCH == matmul over flattened patches) ---
    pe = jnp.dot(patches_ref[...], patch_w_ref[...],
                 preferred_element_type=jnp.float32) + patch_b_ref[...]   # (B*NP, D)

    # --- assemble tokens: [CLS, patches] + position embedding, flattened to (B*S, D) ---
    rows = []
    for b in range(BATCH):
        rows.append(cls_ref[...] + pos_ref[0:1, :])                               # CLS
        rows.append(pe[b * N_PATCH:(b + 1) * N_PATCH, :] + pos_ref[1:SEQ, :])     # patches
    h = jnp.concatenate(rows, axis=0)                                             # (B*S, D)
    # (dropout layers are identity in eval mode)

    attn_bias = attn_bias_ref[...]

    # --- transformer encoder: pre-LN ViT blocks, fully in-register/VMEM ---
    for l in range(LAYERS):
        hn = _layernorm(h, ln1_g_ref[l], ln1_b_ref[l])
        # fused QKV projection: one (B*S, 3D) matmul, static lane slices below
        qkv = jnp.dot(hn, wqkv_ref[l], preferred_element_type=jnp.float32) + bqkv_ref[l]

        ctx_parts = []
        for hh in range(HEADS):
            lo = hh * HEAD_DIM
            qh = qkv[:, lo:lo + HEAD_DIM]
            kh = qkv[:, HIDDEN + lo:HIDDEN + lo + HEAD_DIM]
            vh = qkv[:, 2 * HIDDEN + lo:2 * HIDDEN + lo + HEAD_DIM]
            s = jax.lax.dot_general(
                qh, kh, (((1,), (1,)), ((), ())),
                preferred_element_type=jnp.float32) * ATTN_SCALE + attn_bias
            m = jnp.max(s, axis=-1, keepdims=True)
            p = jnp.exp(s - m)
            p = p / jnp.sum(p, axis=-1, keepdims=True)
            ctx_parts.append(jnp.dot(p, vh, preferred_element_type=jnp.float32))
        ctx = jnp.concatenate(ctx_parts, axis=-1)                                 # (B*S, D)

        attn_out = jnp.dot(ctx, wo_ref[l], preferred_element_type=jnp.float32) + bo_ref[l]
        h = h + attn_out                                                          # residual 1

        hn2 = _layernorm(h, ln2_g_ref[l], ln2_b_ref[l])
        m1 = _gelu_exact(jnp.dot(hn2, w1_ref[l],
                                 preferred_element_type=jnp.float32) + b1_ref[l])
        m2 = jnp.dot(m1, w2_ref[l], preferred_element_type=jnp.float32) + b2_ref[l]
        h = h + m2                                                                # residual 2

    # --- final LayerNorm (vitNorm) ---
    hf = _layernorm(h, lnf_g_ref[...], lnf_b_ref[...])                            # (B*S, D)

    # --- vitFlatten -> relu(vitLinear) -> fc, fused; flatten realized token-wise ---
    # flat[b, s*D + d] == hf[b*S + s, d]  =>  flat @ W == sum_s token_s @ W[s*D:(s+1)*D]
    out1 = head1_b_ref[...]                                                       # (1, NC)
    for s in range(SEQ):
        tok = jnp.concatenate(
            [hf[b * SEQ + s:b * SEQ + s + 1, :] for b in range(BATCH)], axis=0)   # (B, D)
        out1 = out1 + jnp.dot(tok, head1_w_ref[s], preferred_element_type=jnp.float32)
    out1 = jnp.maximum(out1, 0.0)                                                 # ReLU
    out2 = jnp.dot(out1, head2_w_ref[...],
                   preferred_element_type=jnp.float32) + head2_b_ref[...]         # (B, NC)
    out_ref[...] = out2.astype(out_ref.dtype)


# ---------------------------------------------------------------------------
# Parameters (deterministic synthetic init; no checkpoint loading)
# ---------------------------------------------------------------------------
def init_params(key):
    def nrm(k, shape, scale=0.02):
        return scale * jax.random.normal(k, shape, dtype=jnp.float32)

    keys = jax.random.split(key, 8 + LAYERS)
    params = {
        "patch_w": nrm(keys[0], (IN_CH * PATCH * PATCH, HIDDEN)),
        "patch_b": jnp.zeros((HIDDEN,), jnp.float32),
        "cls": nrm(keys[1], (1, 1, HIDDEN)),
        "pos": nrm(keys[2], (1, SEQ, HIDDEN)),
        "lnf_g": jnp.ones((HIDDEN,), jnp.float32),
        "lnf_b": jnp.zeros((HIDDEN,), jnp.float32),
        "head1_w": nrm(keys[3], (SEQ * HIDDEN, NUM_CLASSES)),      # vitLinear
        "head1_b": jnp.zeros((NUM_CLASSES,), jnp.float32),
        "head2_w": nrm(keys[4], (NUM_CLASSES, NUM_CLASSES)),       # fc
        "head2_b": jnp.zeros((NUM_CLASSES,), jnp.float32),
        "layers": [],
    }
    for l in range(LAYERS):
        lk = jax.random.split(keys[8 + l], 6)
        params["layers"].append({
            "ln1_g": jnp.ones((HIDDEN,), jnp.float32),
            "ln1_b": jnp.zeros((HIDDEN,), jnp.float32),
            "wq": nrm(lk[0], (HIDDEN, HIDDEN)), "bq": jnp.zeros((HIDDEN,), jnp.float32),
            "wk": nrm(lk[1], (HIDDEN, HIDDEN)), "bk": jnp.zeros((HIDDEN,), jnp.float32),
            "wv": nrm(lk[2], (HIDDEN, HIDDEN)), "bv": jnp.zeros((HIDDEN,), jnp.float32),
            "wo": nrm(lk[3], (HIDDEN, HIDDEN)), "bo": jnp.zeros((HIDDEN,), jnp.float32),
            "ln2_g": jnp.ones((HIDDEN,), jnp.float32),
            "ln2_b": jnp.zeros((HIDDEN,), jnp.float32),
            "w1": nrm(lk[4], (HIDDEN, MLP)), "b1": jnp.zeros((MLP,), jnp.float32),
            "w2": nrm(lk[5], (MLP, HIDDEN)), "b2": jnp.zeros((HIDDEN,), jnp.float32),
        })
    return params


def pack_params(p):
    """One-time (outside jit) packing into the fused-kernel operand tuple."""
    L = p["layers"]

    def stack_w(name):
        return jnp.stack([lp[name] for lp in L], axis=0)

    def stack_b(name):
        return jnp.stack([lp[name].reshape(1, -1) for lp in L], axis=0)

    wqkv = jnp.stack([jnp.concatenate([lp["wq"], lp["wk"], lp["wv"]], axis=1) for lp in L],
                     axis=0)                                                   # (L, D, 3D)
    bqkv = jnp.stack([jnp.concatenate([lp["bq"], lp["bk"], lp["bv"]]).reshape(1, -1)
                      for lp in L], axis=0)                                    # (L, 1, 3D)

    batch_id = jnp.arange(BATCH * SEQ) // SEQ
    attn_bias = jnp.where(batch_id[:, None] == batch_id[None, :],
                          0.0, NEG_BIAS).astype(jnp.float32)                   # (B*S, B*S)

    return (
        attn_bias,
        p["patch_w"], p["patch_b"].reshape(1, HIDDEN),
        p["cls"].reshape(1, HIDDEN), p["pos"].reshape(SEQ, HIDDEN),
        stack_b("ln1_g"), stack_b("ln1_b"),
        wqkv, bqkv,
        stack_w("wo"), stack_b("bo"),
        stack_b("ln2_g"), stack_b("ln2_b"),
        stack_w("w1"), stack_b("b1"),
        stack_w("w2"), stack_b("b2"),
        p["lnf_g"].reshape(1, HIDDEN), p["lnf_b"].reshape(1, HIDDEN),
        p["head1_w"].reshape(SEQ, HIDDEN, NUM_CLASSES), p["head1_b"].reshape(1, NUM_CLASSES),
        p["head2_w"], p["head2_b"].reshape(1, NUM_CLASSES),
    )


# ---------------------------------------------------------------------------
# Forward pass == PlantVision.forward  (single fused pallas_call)
# ---------------------------------------------------------------------------
def plant_vision_forward(x, packed):
    B = x.shape[0]
    # patch extraction (layout glue): NCHW -> (B*N_PATCH, C*P*P), (C, ph, pw) row-major
    gh = IMG // PATCH
    patches = x.reshape(B, IN_CH, gh, PATCH, gh, PATCH)
    patches = patches.transpose(0, 2, 4, 1, 3, 5).reshape(
        B * N_PATCH, IN_CH * PATCH * PATCH)

    args = (patches,) + packed
    vmem = pl.BlockSpec(memory_space=pltpu.MemorySpace.VMEM)
    return pl.pallas_call(
        _plant_vision_kernel,
        out_shape=jax.ShapeDtypeStruct((B, NUM_CLASSES), jnp.float32),
        in_specs=[vmem] * len(args),
        out_specs=vmem,
    )(*args)


if __name__ == "__main__":
    key = jax.random.PRNGKey(0)
    pkey, xkey = jax.random.split(key)
    params = init_params(pkey)
    packed = pack_params(params)                      # one-time weight packing (outside jit)
    x = jax.random.normal(xkey, (BATCH, IN_CH, IMG, IMG), dtype=jnp.float32)  # NCHW

    fwd = jax.jit(plant_vision_forward)
    out = fwd(x, packed)
    jax.block_until_ready(out)
    assert out.shape == (BATCH, NUM_CLASSES) and out.dtype == jnp.float32
    print("KERNEL_OK")
</pallas_src>

<mosaic_0001>
module attributes {stable_mosaic.version = 11 : i64} {
  func.func @_plant_vision_kernel(%arg0: memref<8x768xf32, #tpu.memory_space<vmem>>, %arg1: memref<10x10xf32, #tpu.memory_space<vmem>>, %arg2: memref<768x128xf32, #tpu.memory_space<vmem>>, %arg3: memref<1x128xf32, #tpu.memory_space<vmem>>, %arg4: memref<1x128xf32, #tpu.memory_space<vmem>>, %arg5: memref<5x128xf32, #tpu.memory_space<vmem>>, %arg6: memref<2x1x128xf32, #tpu.memory_space<vmem>>, %arg7: memref<2x1x128xf32, #tpu.memory_space<vmem>>, %arg8: memref<2x128x384xf32, #tpu.memory_space<vmem>>, %arg9: memref<2x1x384xf32, #tpu.memory_space<vmem>>, %arg10: memref<2x128x128xf32, #tpu.memory_space<vmem>>, %arg11: memref<2x1x128xf32, #tpu.memory_space<vmem>>, %arg12: memref<2x1x128xf32, #tpu.memory_space<vmem>>, %arg13: memref<2x1x128xf32, #tpu.memory_space<vmem>>, %arg14: memref<2x128x512xf32, #tpu.memory_space<vmem>>, %arg15: memref<2x1x512xf32, #tpu.memory_space<vmem>>, %arg16: memref<2x512x128xf32, #tpu.memory_space<vmem>>, %arg17: memref<2x1x128xf32, #tpu.memory_space<vmem>>, %arg18: memref<1x128xf32, #tpu.memory_space<vmem>>, %arg19: memref<1x128xf32, #tpu.memory_space<vmem>>, %arg20: memref<5x128x8xf32, #tpu.memory_space<vmem>>, %arg21: memref<1x8xf32, #tpu.memory_space<vmem>>, %arg22: memref<8x8xf32, #tpu.memory_space<vmem>>, %arg23: memref<1x8xf32, #tpu.memory_space<vmem>>, %arg24: memref<2x8xf32, #tpu.memory_space<vmem>>) attributes {dimension_semantics = [], scalar_prefetch = 0 : i64, scratch_operands = 0 : i64, tpu.core_type = #tpu.core_type<tc>} {
    %c0 = arith.constant 0 : index
    %c0_0 = arith.constant 0 : index
    %0 = vector.load %arg0[%c0, %c0_0] : memref<8x768xf32, #tpu.memory_space<vmem>>, vector<8x768xf32>
    %c0_1 = arith.constant 0 : index
    %c0_2 = arith.constant 0 : index
    %1 = vector.load %arg2[%c0_1, %c0_2] : memref<768x128xf32, #tpu.memory_space<vmem>>, vector<768x128xf32>
    %cst = arith.constant dense<0.000000e+00> : vector<8x128xf32>
    %2 = tpu.matmul %0, %1, %cst {dimension_numbers = #tpu.dot_dimension_numbers<[1], [0], [0], [1], [0, 0, 1, 1], [], []>} : vector<8x768xf32>, vector<768x128xf32>, vector<8x128xf32> -> vector<8x128xf32>
    %c0_3 = arith.constant 0 : index
    %c0_4 = arith.constant 0 : index
    %3 = vector.load %arg3[%c0_3, %c0_4] : memref<1x128xf32, #tpu.memory_space<vmem>>, vector<1x128xf32>
    %4 = vector.broadcast %3 : vector<1x128xf32> to vector<8x128xf32>
    %5 = arith.addf %2, %4 : vector<8x128xf32>
    %c0_5 = arith.constant 0 : index
    %c0_6 = arith.constant 0 : index
    %6 = vector.load %arg4[%c0_5, %c0_6] : memref<1x128xf32, #tpu.memory_space<vmem>>, vector<1x128xf32>
    %c0_7 = arith.constant 0 : index
    %c0_8 = arith.constant 0 : index
    %7 = vector.load %arg5[%c0_7, %c0_8] : memref<5x128xf32, #tpu.memory_space<vmem>>, vector<1x128xf32>
    %8 = arith.addf %6, %7 : vector<1x128xf32>
    %9 = vector.extract_strided_slice %5 {offsets = [0, 0], sizes = [4, 128], strides = [1, 1]} : vector<8x128xf32> to vector<4x128xf32>
    %c1 = arith.constant 1 : index
    %c0_9 = arith.constant 0 : index
    %10 = vector.load %arg5[%c1, %c0_9] : memref<5x128xf32, #tpu.memory_space<vmem>>, vector<4x128xf32>
    %11 = arith.addf %9, %10 : vector<4x128xf32>
    %c0_10 = arith.constant 0 : index
    %c0_11 = arith.constant 0 : index
    %12 = vector.load %arg4[%c0_10, %c0_11] : memref<1x128xf32, #tpu.memory_space<vmem>>, vector<1x128xf32>
    %c0_12 = arith.constant 0 : index
    %c0_13 = arith.constant 0 : index
    %13 = vector.load %arg5[%c0_12, %c0_13] : memref<5x128xf32, #tpu.memory_space<vmem>>, vector<1x128xf32>
    %14 = arith.addf %12, %13 : vector<1x128xf32>
    %15 = vector.extract_strided_slice %5 {offsets = [4, 0], sizes = [4, 128], strides = [1, 1]} : vector<8x128xf32> to vector<4x128xf32>
    %c1_14 = arith.constant 1 : index
    %c0_15 = arith.constant 0 : index
    %16 = vector.load %arg5[%c1_14, %c0_15] : memref<5x128xf32, #tpu.memory_space<vmem>>, vector<4x128xf32>
    %17 = arith.addf %15, %16 : vector<4x128xf32>
    %18 = tpu.concatenate %8, %11, %14, %17 in 0 : vector<1x128xf32>, vector<4x128xf32>, vector<1x128xf32>, vector<4x128xf32> -> vector<10x128xf32>
    %c0_16 = arith.constant 0 : index
    %c0_17 = arith.constant 0 : index
    %19 = vector.load %arg1[%c0_16, %c0_17] : memref<10x10xf32, #tpu.memory_space<vmem>>, vector<10x10xf32>
    %c0_18 = arith.constant 0 : index
    %c0_19 = arith.constant 0 : index
    %c0_20 = arith.constant 0 : index
    %20 = vector.load %arg6[%c0_18, %c0_19, %c0_20] : memref<2x1x128xf32, #tpu.memory_space<vmem>>, vector<1x1x128xf32>
    %21 = vector.shape_cast %20 : vector<1x1x128xf32> to vector<1x128xf32>
    %c0_21 = arith.constant 0 : index
    %c0_22 = arith.constant 0 : index
    %c0_23 = arith.constant 0 : index
    %22 = vector.load %arg7[%c0_21, %c0_22, %c0_23] : memref<2x1x128xf32, #tpu.memory_space<vmem>>, vector<1x1x128xf32>
    %23 = vector.shape_cast %22 : vector<1x1x128xf32> to vector<1x128xf32>
    %cst_24 = arith.constant dense<0.000000e+00> : vector<10xf32>
    %24 = vector.multi_reduction <add>, %18, %cst_24 [1] : vector<10x128xf32> to vector<10xf32>
    %25 = vector.shape_cast %24 : vector<10xf32> to vector<10x1xf32>
    %cst_25 = arith.constant 1.280000e+02 : f32
    %26 = vector.broadcast %cst_25 : f32 to vector<10x1xf32>
    %27 = arith.divf %25, %26 : vector<10x1xf32>
    %28 = vector.broadcast %27 : vector<10x1xf32> to vector<10x128xf32>
    %29 = arith.subf %18, %28 : vector<10x128xf32>
    %30 = arith.mulf %29, %29 : vector<10x128xf32>
    %cst_26 = arith.constant dense<0.000000e+00> : vector<10xf32>
    %31 = vector.multi_reduction <add>, %30, %cst_26 [1] : vector<10x128xf32> to vector<10xf32>
    %32 = vector.shape_cast %31 : vector<10xf32> to vector<10x1xf32>
    %cst_27 = arith.constant 1.280000e+02 : f32
    %33 = vector.broadcast %cst_27 : f32 to vector<10x1xf32>
    %34 = arith.divf %32, %33 : vector<10x1xf32>
    %cst_28 = arith.constant 9.99999996E-13 : f32
    %35 = vector.broadcast %cst_28 : f32 to vector<10x1xf32>
    %36 = arith.addf %34, %35 : vector<10x1xf32>
    %37 = math.rsqrt %36 : vector<10x1xf32>
    %38 = vector.broadcast %37 : vector<10x1xf32> to vector<10x128xf32>
    %39 = arith.mulf %29, %38 : vector<10x128xf32>
    %40 = vector.broadcast %21 : vector<1x128xf32> to vector<10x128xf32>
    %41 = arith.mulf %39, %40 : vector<10x128xf32>
    %42 = vector.broadcast %23 : vector<1x128xf32> to vector<10x128xf32>
    %43 = arith.addf %41, %42 : vector<10x128xf32>
    %c0_29 = arith.constant 0 : index
    %c0_30 = arith.constant 0 : index
    %c0_31 = arith.constant 0 : index
    %44 = vector.load %arg8[%c0_29, %c0_30, %c0_31] : memref<2x128x384xf32, #tpu.memory_space<vmem>>, vector<1x128x384xf32>
    %45 = vector.shape_cast %44 : vector<1x128x384xf32> to vector<128x384xf32>
    %cst_32 = arith.constant dense<0.000000e+00> : vector<10x384xf32>
    %46 = tpu.matmul %43, %45, %cst_32 {dimension_numbers = #tpu.dot_dimension_numbers<[1], [0], [0], [1], [0, 0, 1, 1], [], []>} : vector<10x128xf32>, vector<128x384xf32>, vector<10x384xf32> -> vector<10x384xf32>
    %c0_33 = arith.constant 0 : index
    %c0_34 = arith.constant 0 : index
    %c0_35 = arith.constant 0 : index
    %47 = vector.load %arg9[%c0_33, %c0_34, %c0_35] : memref<2x1x384xf32, #tpu.memory_space<vmem>>, vector<1x1x384xf32>
    %48 = vector.shape_cast %47 : vector<1x1x384xf32> to vector<1x384xf32>
    %49 = vector.broadcast %48 : vector<1x384xf32> to vector<10x384xf32>
    %50 = arith.addf %46, %49 : vector<10x384xf32>
    %51 = vector.extract_strided_slice %50 {offsets = [0, 0], sizes = [10, 32], strides = [1, 1]} : vector<10x384xf32> to vector<10x32xf32>
    %52 = vector.extract_strided_slice %50 {offsets = [0, 128], sizes = [10, 32], strides = [1, 1]} : vector<10x384xf32> to vector<10x32xf32>
    %53 = vector.extract_strided_slice %50 {offsets = [0, 256], sizes = [10, 32], strides = [1, 1]} : vector<10x384xf32> to vector<10x32xf32>
    %cst_36 = arith.constant dense<0.000000e+00> : vector<10x10xf32>
    %54 = tpu.matmul %51, %52, %cst_36 {dimension_numbers = #tpu.dot_dimension_numbers<[1], [1], [0], [0], [0, 0, 1, 0], [], []>} : vector<10x32xf32>, vector<10x32xf32>, vector<10x10xf32> -> vector<10x10xf32>
    %cst_37 = arith.constant 0.176776692 : f32
    %55 = vector.broadcast %cst_37 : f32 to vector<10x10xf32>
    %56 = arith.mulf %54, %55 : vector<10x10xf32>
    %57 = arith.addf %56, %19 : vector<10x10xf32>
    %cst_38 = arith.constant dense<0xFF800000> : vector<10xf32>
    %58 = vector.multi_reduction <maximumf>, %57, %cst_38 [1] : vector<10x10xf32> to vector<10xf32>
    %59 = vector.shape_cast %58 : vector<10xf32> to vector<10x1xf32>
    %60 = vector.broadcast %59 : vector<10x1xf32> to vector<10x10xf32>
    %61 = arith.subf %57, %60 : vector<10x10xf32>
    %62 = math.exp %61 : vector<10x10xf32>
    %cst_39 = arith.constant dense<0.000000e+00> : vector<10xf32>
    %63 = vector.multi_reduction <add>, %62, %cst_39 [1] : vector<10x10xf32> to vector<10xf32>
    %64 = vector.shape_cast %63 : vector<10xf32> to vector<10x1xf32>
    %65 = vector.broadcast %64 : vector<10x1xf32> to vector<10x10xf32>
    %66 = arith.divf %62, %65 : vector<10x10xf32>
    %cst_40 = arith.constant dense<0.000000e+00> : vector<10x32xf32>
    %67 = tpu.matmul %66, %53, %cst_40 {dimension_numbers = #tpu.dot_dimension_numbers<[1], [0], [0], [1], [0, 0, 1, 1], [], []>} : vector<10x10xf32>, vector<10x32xf32>, vector<10x32xf32> -> vector<10x32xf32>
    %68 = vector.extract_strided_slice %50 {offsets = [0, 32], sizes = [10, 32], strides = [1, 1]} : vector<10x384xf32> to vector<10x32xf32>
    %69 = vector.extract_strided_slice %50 {offsets = [0, 160], sizes = [10, 32], strides = [1, 1]} : vector<10x384xf32> to vector<10x32xf32>
    %70 = vector.extract_strided_slice %50 {offsets = [0, 288], sizes = [10, 32], strides = [1, 1]} : vector<10x384xf32> to vector<10x32xf32>
    %cst_41 = arith.constant dense<0.000000e+00> : vector<10x10xf32>
    %71 = tpu.matmul %68, %69, %cst_41 {dimension_numbers = #tpu.dot_dimension_numbers<[1], [1], [0], [0], [0, 0, 1, 0], [], []>} : vector<10x32xf32>, vector<10x32xf32>, vector<10x10xf32> -> vector<10x10xf32>
    %cst_42 = arith.constant 0.176776692 : f32
    %72 = vector.broadcast %cst_42 : f32 to vector<10x10xf32>
    %73 = arith.mulf %71, %72 : vector<10x10xf32>
    %74 = arith.addf %73, %19 : vector<10x10xf32>
    %cst_43 = arith.constant dense<0xFF800000> : vector<10xf32>
    %75 = vector.multi_reduction <maximumf>, %74, %cst_43 [1] : vector<10x10xf32> to vector<10xf32>
    %76 = vector.shape_cast %75 : vector<10xf32> to vector<10x1xf32>
    %77 = vector.broadcast %76 : vector<10x1xf32> to vector<10x10xf32>
    %78 = arith.subf %74, %77 : vector<10x10xf32>
    %79 = math.exp %78 : vector<10x10xf32>
    %cst_44 = arith.constant dense<0.000000e+00> : vector<10xf32>
    %80 = vector.multi_reduction <add>, %79, %cst_44 [1] : vector<10x10xf32> to vector<10xf32>
    %81 = vector.shape_cast %80 : vector<10xf32> to vector<10x1xf32>
    %82 = vector.broadcast %81 : vector<10x1xf32> to vector<10x10xf32>
    %83 = arith.divf %79, %82 : vector<10x10xf32>
    %cst_45 = arith.constant dense<0.000000e+00> : vector<10x32xf32>
    %84 = tpu.matmul %83, %70, %cst_45 {dimension_numbers = #tpu.dot_dimension_numbers<[1], [0], [0], [1], [0, 0, 1, 1], [], []>} : vector<10x10xf32>, vector<10x32xf32>, vector<10x32xf32> -> vector<10x32xf32>
    %85 = vector.extract_strided_slice %50 {offsets = [0, 64], sizes = [10, 32], strides = [1, 1]} : vector<10x384xf32> to vector<10x32xf32>
    %86 = vector.extract_strided_slice %50 {offsets = [0, 192], sizes = [10, 32], strides = [1, 1]} : vector<10x384xf32> to vector<10x32xf32>
    %87 = vector.extract_strided_slice %50 {offsets = [0, 320], sizes = [10, 32], strides = [1, 1]} : vector<10x384xf32> to vector<10x32xf32>
    %cst_46 = arith.constant dense<0.000000e+00> : vector<10x10xf32>
    %88 = tpu.matmul %85, %86, %cst_46 {dimension_numbers = #tpu.dot_dimension_numbers<[1], [1], [0], [0], [0, 0, 1, 0], [], []>} : vector<10x32xf32>, vector<10x32xf32>, vector<10x10xf32> -> vector<10x10xf32>
    %cst_47 = arith.constant 0.176776692 : f32
    %89 = vector.broadcast %cst_47 : f32 to vector<10x10xf32>
    %90 = arith.mulf %88, %89 : vector<10x10xf32>
    %91 = arith.addf %90, %19 : vector<10x10xf32>
    %cst_48 = arith.constant dense<0xFF800000> : vector<10xf32>
    %92 = vector.multi_reduction <maximumf>, %91, %cst_48 [1] : vector<10x10xf32> to vector<10xf32>
    %93 = vector.shape_cast %92 : vector<10xf32> to vector<10x1xf32>
    %94 = vector.broadcast %93 : vector<10x1xf32> to vector<10x10xf32>
    %95 = arith.subf %91, %94 : vector<10x10xf32>
    %96 = math.exp %95 : vector<10x10xf32>
    %cst_49 = arith.constant dense<0.000000e+00> : vector<10xf32>
    %97 = vector.multi_reduction <add>, %96, %cst_49 [1] : vector<10x10xf32> to vector<10xf32>
    %98 = vector.shape_cast %97 : vector<10xf32> to vector<10x1xf32>
    %99 = vector.broadcast %98 : vector<10x1xf32> to vector<10x10xf32>
    %100 = arith.divf %96, %99 : vector<10x10xf32>
    %cst_50 = arith.constant dense<0.000000e+00> : vector<10x32xf32>
    %101 = tpu.matmul %100, %87, %cst_50 {dimension_numbers = #tpu.dot_dimension_numbers<[1], [0], [0], [1], [0, 0, 1, 1], [], []>} : vector<10x10xf32>, vector<10x32xf32>, vector<10x32xf32> -> vector<10x32xf32>
    %102 = vector.extract_strided_slice %50 {offsets = [0, 96], sizes = [10, 32], strides = [1, 1]} : vector<10x384xf32> to vector<10x32xf32>
    %103 = vector.extract_strided_slice %50 {offsets = [0, 224], sizes = [10, 32], strides = [1, 1]} : vector<10x384xf32> to vector<10x32xf32>
    %104 = vector.extract_strided_slice %50 {offsets = [0, 352], sizes = [10, 32], strides = [1, 1]} : vector<10x384xf32> to vector<10x32xf32>
    %cst_51 = arith.constant dense<0.000000e+00> : vector<10x10xf32>
    %105 = tpu.matmul %102, %103, %cst_51 {dimension_numbers = #tpu.dot_dimension_numbers<[1], [1], [0], [0], [0, 0, 1, 0], [], []>} : vector<10x32xf32>, vector<10x32xf32>, vector<10x10xf32> -> vector<10x10xf32>
    %cst_52 = arith.constant 0.176776692 : f32
    %106 = vector.broadcast %cst_52 : f32 to vector<10x10xf32>
    %107 = arith.mulf %105, %106 : vector<10x10xf32>
    %108 = arith.addf %107, %19 : vector<10x10xf32>
    %cst_53 = arith.constant dense<0xFF800000> : vector<10xf32>
    %109 = vector.multi_reduction <maximumf>, %108, %cst_53 [1] : vector<10x10xf32> to vector<10xf32>
    %110 = vector.shape_cast %109 : vector<10xf32> to vector<10x1xf32>
    %111 = vector.broadcast %110 : vector<10x1xf32> to vector<10x10xf32>
    %112 = arith.subf %108, %111 : vector<10x10xf32>
    %113 = math.exp %112 : vector<10x10xf32>
    %cst_54 = arith.constant dense<0.000000e+00> : vector<10xf32>
    %114 = vector.multi_reduction <add>, %113, %cst_54 [1] : vector<10x10xf32> to vector<10xf32>
    %115 = vector.shape_cast %114 : vector<10xf32> to vector<10x1xf32>
    %116 = vector.broadcast %115 : vector<10x1xf32> to vector<10x10xf32>
    %117 = arith.divf %113, %116 : vector<10x10xf32>
    %cst_55 = arith.constant dense<0.000000e+00> : vector<10x32xf32>
    %118 = tpu.matmul %117, %104, %cst_55 {dimension_numbers = #tpu.dot_dimension_numbers<[1], [0], [0], [1], [0, 0, 1, 1], [], []>} : vector<10x10xf32>, vector<10x32xf32>, vector<10x32xf32> -> vector<10x32xf32>
    %119 = tpu.concatenate %67, %84, %101, %118 in 1 : vector<10x32xf32>, vector<10x32xf32>, vector<10x32xf32>, vector<10x32xf32> -> vector<10x128xf32>
    %c0_56 = arith.constant 0 : index
    %c0_57 = arith.constant 0 : index
    %c0_58 = arith.constant 0 : index
    %120 = vector.load %arg10[%c0_56, %c0_57, %c0_58] : memref<2x128x128xf32, #tpu.memory_space<vmem>>, vector<1x128x128xf32>
    %121 = vector.shape_cast %120 : vector<1x128x128xf32> to vector<128x128xf32>
    %cst_59 = arith.constant dense<0.000000e+00> : vector<10x128xf32>
    %122 = tpu.matmul %119, %121, %cst_59 {dimension_numbers = #tpu.dot_dimension_numbers<[1], [0], [0], [1], [0, 0, 1, 1], [], []>} : vector<10x128xf32>, vector<128x128xf32>, vector<10x128xf32> -> vector<10x128xf32>
    %c0_60 = arith.constant 0 : index
    %c0_61 = arith.constant 0 : index
    %c0_62 = arith.constant 0 : index
    %123 = vector.load %arg11[%c0_60, %c0_61, %c0_62] : memref<2x1x128xf32, #tpu.memory_space<vmem>>, vector<1x1x128xf32>
    %124 = vector.shape_cast %123 : vector<1x1x128xf32> to vector<1x128xf32>
    %125 = vector.broadcast %124 : vector<1x128xf32> to vector<10x128xf32>
    %126 = arith.addf %122, %125 : vector<10x128xf32>
    %127 = arith.addf %18, %126 : vector<10x128xf32>
    %c0_63 = arith.constant 0 : index
    %c0_64 = arith.constant 0 : index
    %c0_65 = arith.constant 0 : index
    %128 = vector.load %arg12[%c0_63, %c0_64, %c0_65] : memref<2x1x128xf32, #tpu.memory_space<vmem>>, vector<1x1x128xf32>
    %129 = vector.shape_cast %128 : vector<1x1x128xf32> to vector<1x128xf32>
    %c0_66 = arith.constant 0 : index
    %c0_67 = arith.constant 0 : index
    %c0_68 = arith.constant 0 : index
    %130 = vector.load %arg13[%c0_66, %c0_67, %c0_68] : memref<2x1x128xf32, #tpu.memory_space<vmem>>, vector<1x1x128xf32>
    %131 = vector.shape_cast %130 : vector<1x1x128xf32> to vector<1x128xf32>
    %cst_69 = arith.constant dense<0.000000e+00> : vector<10xf32>
    %132 = vector.multi_reduction <add>, %127, %cst_69 [1] : vector<10x128xf32> to vector<10xf32>
    %133 = vector.shape_cast %132 : vector<10xf32> to vector<10x1xf32>
    %cst_70 = arith.constant 1.280000e+02 : f32
    %134 = vector.broadcast %cst_70 : f32 to vector<10x1xf32>
    %135 = arith.divf %133, %134 : vector<10x1xf32>
    %136 = vector.broadcast %135 : vector<10x1xf32> to vector<10x128xf32>
    %137 = arith.subf %127, %136 : vector<10x128xf32>
    %138 = arith.mulf %137, %137 : vector<10x128xf32>
    %cst_71 = arith.constant dense<0.000000e+00> : vector<10xf32>
    %139 = vector.multi_reduction <add>, %138, %cst_71 [1] : vector<10x128xf32> to vector<10xf32>
    %140 = vector.shape_cast %139 : vector<10xf32> to vector<10x1xf32>
    %cst_72 = arith.constant 1.280000e+02 : f32
    %141 = vector.broadcast %cst_72 : f32 to vector<10x1xf32>
    %142 = arith.divf %140, %141 : vector<10x1xf32>
    %cst_73 = arith.constant 9.99999996E-13 : f32
    %143 = vector.broadcast %cst_73 : f32 to vector<10x1xf32>
    %144 = arith.addf %142, %143 : vector<10x1xf32>
    %145 = math.rsqrt %144 : vector<10x1xf32>
    %146 = vector.broadcast %145 : vector<10x1xf32> to vector<10x128xf32>
    %147 = arith.mulf %137, %146 : vector<10x128xf32>
    %148 = vector.broadcast %129 : vector<1x128xf32> to vector<10x128xf32>
    %149 = arith.mulf %147, %148 : vector<10x128xf32>
    %150 = vector.broadcast %131 : vector<1x128xf32> to vector<10x128xf32>
    %151 = arith.addf %149, %150 : vector<10x128xf32>
    %c0_74 = arith.constant 0 : index
    %c0_75 = arith.constant 0 : index
    %c0_76 = arith.constant 0 : index
    %152 = vector.load %arg14[%c0_74, %c0_75, %c0_76] : memref<2x128x512xf32, #tpu.memory_space<vmem>>, vector<1x128x512xf32>
    %153 = vector.shape_cast %152 : vector<1x128x512xf32> to vector<128x512xf32>
    %cst_77 = arith.constant dense<0.000000e+00> : vector<10x512xf32>
    %154 = tpu.matmul %151, %153, %cst_77 {dimension_numbers = #tpu.dot_dimension_numbers<[1], [0], [0], [1], [0, 0, 1, 1], [], []>} : vector<10x128xf32>, vector<128x512xf32>, vector<10x512xf32> -> vector<10x512xf32>
    %c0_78 = arith.constant 0 : index
    %c0_79 = arith.constant 0 : index
    %c0_80 = arith.constant 0 : index
    %155 = vector.load %arg15[%c0_78, %c0_79, %c0_80] : memref<2x1x512xf32, #tpu.memory_space<vmem>>, vector<1x1x512xf32>
    %156 = vector.shape_cast %155 : vector<1x1x512xf32> to vector<1x512xf32>
    %157 = vector.broadcast %156 : vector<1x512xf32> to vector<10x512xf32>
    %158 = arith.addf %154, %157 : vector<10x512xf32>
    %cst_81 = arith.constant 5.000000e-01 : f32
    %159 = vector.broadcast %cst_81 : f32 to vector<10x512xf32>
    %160 = arith.mulf %159, %158 : vector<10x512xf32>
    %cst_82 = arith.constant 0.707106769 : f32
    %161 = vector.broadcast %cst_82 : f32 to vector<10x512xf32>
    %162 = arith.mulf %158, %161 : vector<10x512xf32>
    %163 = math.erf %162 : vector<10x512xf32>
    %cst_83 = arith.constant 1.000000e+00 : f32
    %164 = vector.broadcast %cst_83 : f32 to vector<10x512xf32>
    %165 = arith.addf %164, %163 : vector<10x512xf32>
    %166 = arith.mulf %160, %165 : vector<10x512xf32>
    %c0_84 = arith.constant 0 : index
    %c0_85 = arith.constant 0 : index
    %c0_86 = arith.constant 0 : index
    %167 = vector.load %arg16[%c0_84, %c0_85, %c0_86] : memref<2x512x128xf32, #tpu.memory_space<vmem>>, vector<1x512x128xf32>
    %168 = vector.shape_cast %167 : vector<1x512x128xf32> to vector<512x128xf32>
    %cst_87 = arith.constant dense<0.000000e+00> : vector<10x128xf32>
    %169 = tpu.matmul %166, %168, %cst_87 {dimension_numbers = #tpu.dot_dimension_numbers<[1], [0], [0], [1], [0, 0, 1, 1], [], []>} : vector<10x512xf32>, vector<512x128xf32>, vector<10x128xf32> -> vector<10x128xf32>
    %c0_88 = arith.constant 0 : index
    %c0_89 = arith.constant 0 : index
    %c0_90 = arith.constant 0 : index
    %170 = vector.load %arg17[%c0_88, %c0_89, %c0_90] : memref<2x1x128xf32, #tpu.memory_space<vmem>>, vector<1x1x128xf32>
    %171 = vector.shape_cast %170 : vector<1x1x128xf32> to vector<1x128xf32>
    %172 = vector.broadcast %171 : vector<1x128xf32> to vector<10x128xf32>
    %173 = arith.addf %169, %172 : vector<10x128xf32>
    %174 = arith.addf %127, %173 : vector<10x128xf32>
    %c1_91 = arith.constant 1 : index
    %c0_92 = arith.constant 0 : index
    %c0_93 = arith.constant 0 : index
    %175 = vector.load %arg6[%c1_91, %c0_92, %c0_93] : memref<2x1x128xf32, #tpu.memory_space<vmem>>, vector<1x1x128xf32>
    %176 = vector.shape_cast %175 : vector<1x1x128xf32> to vector<1x128xf32>
    %c1_94 = arith.constant 1 : index
    %c0_95 = arith.constant 0 : index
    %c0_96 = arith.constant 0 : index
    %177 = vector.load %arg7[%c1_94, %c0_95, %c0_96] : memref<2x1x128xf32, #tpu.memory_space<vmem>>, vector<1x1x128xf32>
    %178 = vector.shape_cast %177 : vector<1x1x128xf32> to vector<1x128xf32>
    %cst_97 = arith.constant dense<0.000000e+00> : vector<10xf32>
    %179 = vector.multi_reduction <add>, %174, %cst_97 [1] : vector<10x128xf32> to vector<10xf32>
    %180 = vector.shape_cast %179 : vector<10xf32> to vector<10x1xf32>
    %cst_98 = arith.constant 1.280000e+02 : f32
    %181 = vector.broadcast %cst_98 : f32 to vector<10x1xf32>
    %182 = arith.divf %180, %181 : vector<10x1xf32>
    %183 = vector.broadcast %182 : vector<10x1xf32> to vector<10x128xf32>
    %184 = arith.subf %174, %183 : vector<10x128xf32>
    %185 = arith.mulf %184, %184 : vector<10x128xf32>
    %cst_99 = arith.constant dense<0.000000e+00> : vector<10xf32>
    %186 = vector.multi_reduction <add>, %185, %cst_99 [1] : vector<10x128xf32> to vector<10xf32>
    %187 = vector.shape_cast %186 : vector<10xf32> to vector<10x1xf32>
    %cst_100 = arith.constant 1.280000e+02 : f32
    %188 = vector.broadcast %cst_100 : f32 to vector<10x1xf32>
    %189 = arith.divf %187, %188 : vector<10x1xf32>
    %cst_101 = arith.constant 9.99999996E-13 : f32
    %190 = vector.broadcast %cst_101 : f32 to vector<10x1xf32>
    %191 = arith.addf %189, %190 : vector<10x1xf32>
    %192 = math.rsqrt %191 : vector<10x1xf32>
    %193 = vector.broadcast %192 : vector<10x1xf32> to vector<10x128xf32>
    %194 = arith.mulf %184, %193 : vector<10x128xf32>
    %195 = vector.broadcast %176 : vector<1x128xf32> to vector<10x128xf32>
    %196 = arith.mulf %194, %195 : vector<10x128xf32>
    %197 = vector.broadcast %178 : vector<1x128xf32> to vector<10x128xf32>
    %198 = arith.addf %196, %197 : vector<10x128xf32>
    %c1_102 = arith.constant 1 : index
    %c0_103 = arith.constant 0 : index
    %c0_104 = arith.constant 0 : index
    %199 = vector.load %arg8[%c1_102, %c0_103, %c0_104] : memref<2x128x384xf32, #tpu.memory_space<vmem>>, vector<1x128x384xf32>
    %200 = vector.shape_cast %199 : vector<1x128x384xf32> to vector<128x384xf32>
    %cst_105 = arith.constant dense<0.000000e+00> : vector<10x384xf32>
    %201 = tpu.matmul %198, %200, %cst_105 {dimension_numbers = #tpu.dot_dimension_numbers<[1], [0], [0], [1], [0, 0, 1, 1], [], []>} : vector<10x128xf32>, vector<128x384xf32>, vector<10x384xf32> -> vector<10x384xf32>
    %c1_106 = arith.constant 1 : index
    %c0_107 = arith.constant 0 : index
    %c0_108 = arith.constant 0 : index
    %202 = vector.load %arg9[%c1_106, %c0_107, %c0_108] : memref<2x1x384xf32, #tpu.memory_space<vmem>>, vector<1x1x384xf32>
    %203 = vector.shape_cast %202 : vector<1x1x384xf32> to vector<1x384xf32>
    %204 = vector.broadcast %203 : vector<1x384xf32> to vector<10x384xf32>
    %205 = arith.addf %201, %204 : vector<10x384xf32>
    %206 = vector.extract_strided_slice %205 {offsets = [0, 0], sizes = [10, 32], strides = [1, 1]} : vector<10x384xf32> to vector<10x32xf32>
    %207 = vector.extract_strided_slice %205 {offsets = [0, 128], sizes = [10, 32], strides = [1, 1]} : vector<10x384xf32> to vector<10x32xf32>
    %208 = vector.extract_strided_slice %205 {offsets = [0, 256], sizes = [10, 32], strides = [1, 1]} : vector<10x384xf32> to vector<10x32xf32>
    %cst_109 = arith.constant dense<0.000000e+00> : vector<10x10xf32>
    %209 = tpu.matmul %206, %207, %cst_109 {dimension_numbers = #tpu.dot_dimension_numbers<[1], [1], [0], [0], [0, 0, 1, 0], [], []>} : vector<10x32xf32>, vector<10x32xf32>, vector<10x10xf32> -> vector<10x10xf32>
    %cst_110 = arith.constant 0.176776692 : f32
    %210 = vector.broadcast %cst_110 : f32 to vector<10x10xf32>
    %211 = arith.mulf %209, %210 : vector<10x10xf32>
    %212 = arith.addf %211, %19 : vector<10x10xf32>
    %cst_111 = arith.constant dense<0xFF800000> : vector<10xf32>
    %213 = vector.multi_reduction <maximumf>, %212, %cst_111 [1] : vector<10x10xf32> to vector<10xf32>
    %214 = vector.shape_cast %213 : vector<10xf32> to vector<10x1xf32>
    %215 = vector.broadcast %214 : vector<10x1xf32> to vector<10x10xf32>
    %216 = arith.subf %212, %215 : vector<10x10xf32>
    %217 = math.exp %216 : vector<10x10xf32>
    %cst_112 = arith.constant dense<0.000000e+00> : vector<10xf32>
    %218 = vector.multi_reduction <add>, %217, %cst_112 [1] : vector<10x10xf32> to vector<10xf32>
    %219 = vector.shape_cast %218 : vector<10xf32> to vector<10x1xf32>
    %220 = vector.broadcast %219 : vector<10x1xf32> to vector<10x10xf32>
    %221 = arith.divf %217, %220 : vector<10x10xf32>
    %cst_113 = arith.constant dense<0.000000e+00> : vector<10x32xf32>
    %222 = tpu.matmul %221, %208, %cst_113 {dimension_numbers = #tpu.dot_dimension_numbers<[1], [0], [0], [1], [0, 0, 1, 1], [], []>} : vector<10x10xf32>, vector<10x32xf32>, vector<10x32xf32> -> vector<10x32xf32>
    %223 = vector.extract_strided_slice %205 {offsets = [0, 32], sizes = [10, 32], strides = [1, 1]} : vector<10x384xf32> to vector<10x32xf32>
    %224 = vector.extract_strided_slice %205 {offsets = [0, 160], sizes = [10, 32], strides = [1, 1]} : vector<10x384xf32> to vector<10x32xf32>
    %225 = vector.extract_strided_slice %205 {offsets = [0, 288], sizes = [10, 32], strides = [1, 1]} : vector<10x384xf32> to vector<10x32xf32>
    %cst_114 = arith.constant dense<0.000000e+00> : vector<10x10xf32>
    %226 = tpu.matmul %223, %224, %cst_114 {dimension_numbers = #tpu.dot_dimension_numbers<[1], [1], [0], [0], [0, 0, 1, 0], [], []>} : vector<10x32xf32>, vector<10x32xf32>, vector<10x10xf32> -> vector<10x10xf32>
    %cst_115 = arith.constant 0.176776692 : f32
    %227 = vector.broadcast %cst_115 : f32 to vector<10x10xf32>
    %228 = arith.mulf %226, %227 : vector<10x10xf32>
    %229 = arith.addf %228, %19 : vector<10x10xf32>
    %cst_116 = arith.constant dense<0xFF800000> : vector<10xf32>
    %230 = vector.multi_reduction <maximumf>, %229, %cst_116 [1] : vector<10x10xf32> to vector<10xf32>
    %231 = vector.shape_cast %230 : vector<10xf32> to vector<10x1xf32>
    %232 = vector.broadcast %231 : vector<10x1xf32> to vector<10x10xf32>
    %233 = arith.subf %229, %232 : vector<10x10xf32>
    %234 = math.exp %233 : vector<10x10xf32>
    %cst_117 = arith.constant dense<0.000000e+00> : vector<10xf32>
    %235 = vector.multi_reduction <add>, %234, %cst_117 [1] : vector<10x10xf32> to vector<10xf32>
    %236 = vector.shape_cast %235 : vector<10xf32> to vector<10x1xf32>
    %237 = vector.broadcast %236 : vector<10x1xf32> to vector<10x10xf32>
    %238 = arith.divf %234, %237 : vector<10x10xf32>
    %cst_118 = arith.constant dense<0.000000e+00> : vector<10x32xf32>
    %239 = tpu.matmul %238, %225, %cst_118 {dimension_numbers = #tpu.dot_dimension_numbers<[1], [0], [0], [1], [0, 0, 1, 1], [], []>} : vector<10x10xf32>, vector<10x32xf32>, vector<10x32xf32> -> vector<10x32xf32>
    %240 = vector.extract_strided_slice %205 {offsets = [0, 64], sizes = [10, 32], strides = [1, 1]} : vector<10x384xf32> to vector<10x32xf32>
    %241 = vector.extract_strided_slice %205 {offsets = [0, 192], sizes = [10, 32], strides = [1, 1]} : vector<10x384xf32> to vector<10x32xf32>
    %242 = vector.extract_strided_slice %205 {offsets = [0, 320], sizes = [10, 32], strides = [1, 1]} : vector<10x384xf32> to vector<10x32xf32>
    %cst_119 = arith.constant dense<0.000000e+00> : vector<10x10xf32>
    %243 = tpu.matmul %240, %241, %cst_119 {dimension_numbers = #tpu.dot_dimension_numbers<[1], [1], [0], [0], [0, 0, 1, 0], [], []>} : vector<10x32xf32>, vector<10x32xf32>, vector<10x10xf32> -> vector<10x10xf32>
    %cst_120 = arith.constant 0.176776692 : f32
    %244 = vector.broadcast %cst_120 : f32 to vector<10x10xf32>
    %245 = arith.mulf %243, %244 : vector<10x10xf32>
    %246 = arith.addf %245, %19 : vector<10x10xf32>
    %cst_121 = arith.constant dense<0xFF800000> : vector<10xf32>
    %247 = vector.multi_reduction <maximumf>, %246, %cst_121 [1] : vector<10x10xf32> to vector<10xf32>
    %248 = vector.shape_cast %247 : vector<10xf32> to vector<10x1xf32>
    %249 = vector.broadcast %248 : vector<10x1xf32> to vector<10x10xf32>
    %250 = arith.subf %246, %249 : vector<10x10xf32>
    %251 = math.exp %250 : vector<10x10xf32>
    %cst_122 = arith.constant dense<0.000000e+00> : vector<10xf32>
    %252 = vector.multi_reduction <add>, %251, %cst_122 [1] : vector<10x10xf32> to vector<10xf32>
    %253 = vector.shape_cast %252 : vector<10xf32> to vector<10x1xf32>
    %254 = vector.broadcast %253 : vector<10x1xf32> to vector<10x10xf32>
    %255 = arith.divf %251, %254 : vector<10x10xf32>
    %cst_123 = arith.constant dense<0.000000e+00> : vector<10x32xf32>
    %256 = tpu.matmul %255, %242, %cst_123 {dimension_numbers = #tpu.dot_dimension_numbers<[1], [0], [0], [1], [0, 0, 1, 1], [], []>} : vector<10x10xf32>, vector<10x32xf32>, vector<10x32xf32> -> vector<10x32xf32>
    %257 = vector.extract_strided_slice %205 {offsets = [0, 96], sizes = [10, 32], strides = [1, 1]} : vector<10x384xf32> to vector<10x32xf32>
    %258 = vector.extract_strided_slice %205 {offsets = [0, 224], sizes = [10, 32], strides = [1, 1]} : vector<10x384xf32> to vector<10x32xf32>
    %259 = vector.extract_strided_slice %205 {offsets = [0, 352], sizes = [10, 32], strides = [1, 1]} : vector<10x384xf32> to vector<10x32xf32>
    %cst_124 = arith.constant dense<0.000000e+00> : vector<10x10xf32>
    %260 = tpu.matmul %257, %258, %cst_124 {dimension_numbers = #tpu.dot_dimension_numbers<[1], [1], [0], [0], [0, 0, 1, 0], [], []>} : vector<10x32xf32>, vector<10x32xf32>, vector<10x10xf32> -> vector<10x10xf32>
    %cst_125 = arith.constant 0.176776692 : f32
    %261 = vector.broadcast %cst_125 : f32 to vector<10x10xf32>
    %262 = arith.mulf %260, %261 : vector<10x10xf32>
    %263 = arith.addf %262, %19 : vector<10x10xf32>
    %cst_126 = arith.constant dense<0xFF800000> : vector<10xf32>
    %264 = vector.multi_reduction <maximumf>, %263, %cst_126 [1] : vector<10x10xf32> to vector<10xf32>
    %265 = vector.shape_cast %264 : vector<10xf32> to vector<10x1xf32>
    %266 = vector.broadcast %265 : vector<10x1xf32> to vector<10x10xf32>
    %267 = arith.subf %263, %266 : vector<10x10xf32>
    %268 = math.exp %267 : vector<10x10xf32>
    %cst_127 = arith.constant dense<0.000000e+00> : vector<10xf32>
    %269 = vector.multi_reduction <add>, %268, %cst_127 [1] : vector<10x10xf32> to vector<10xf32>
    %270 = vector.shape_cast %269 : vector<10xf32> to vector<10x1xf32>
    %271 = vector.broadcast %270 : vector<10x1xf32> to vector<10x10xf32>
    %272 = arith.divf %268, %271 : vector<10x10xf32>
    %cst_128 = arith.constant dense<0.000000e+00> : vector<10x32xf32>
    %273 = tpu.matmul %272, %259, %cst_128 {dimension_numbers = #tpu.dot_dimension_numbers<[1], [0], [0], [1], [0, 0, 1, 1], [], []>} : vector<10x10xf32>, vector<10x32xf32>, vector<10x32xf32> -> vector<10x32xf32>
    %274 = tpu.concatenate %222, %239, %256, %273 in 1 : vector<10x32xf32>, vector<10x32xf32>, vector<10x32xf32>, vector<10x32xf32> -> vector<10x128xf32>
    %c1_129 = arith.constant 1 : index
    %c0_130 = arith.constant 0 : index
    %c0_131 = arith.constant 0 : index
    %275 = vector.load %arg10[%c1_129, %c0_130, %c0_131] : memref<2x128x128xf32, #tpu.memory_space<vmem>>, vector<1x128x128xf32>
    %276 = vector.shape_cast %275 : vector<1x128x128xf32> to vector<128x128xf32>
    %cst_132 = arith.constant dense<0.000000e+00> : vector<10x128xf32>
    %277 = tpu.matmul %274, %276, %cst_132 {dimension_numbers = #tpu.dot_dimension_numbers<[1], [0], [0], [1], [0, 0, 1, 1], [], []>} : vector<10x128xf32>, vector<128x128xf32>, vector<10x128xf32> -> vector<10x128xf32>
    %c1_133 = arith.constant 1 : index
    %c0_134 = arith.constant 0 : index
    %c0_135 = arith.constant 0 : index
    %278 = vector.load %arg11[%c1_133, %c0_134, %c0_135] : memref<2x1x128xf32, #tpu.memory_space<vmem>>, vector<1x1x128xf32>
    %279 = vector.shape_cast %278 : vector<1x1x128xf32> to vector<1x128xf32>
    %280 = vector.broadcast %279 : vector<1x128xf32> to vector<10x128xf32>
    %281 = arith.addf %277, %280 : vector<10x128xf32>
    %282 = arith.addf %174, %281 : vector<10x128xf32>
    %c1_136 = arith.constant 1 : index
    %c0_137 = arith.constant 0 : index
    %c0_138 = arith.constant 0 : index
    %283 = vector.load %arg12[%c1_136, %c0_137, %c0_138] : memref<2x1x128xf32, #tpu.memory_space<vmem>>, vector<1x1x128xf32>
    %284 = vector.shape_cast %283 : vector<1x1x128xf32> to vector<1x128xf32>
    %c1_139 = arith.constant 1 : index
    %c0_140 = arith.constant 0 : index
    %c0_141 = arith.constant 0 : index
    %285 = vector.load %arg13[%c1_139, %c0_140, %c0_141] : memref<2x1x128xf32, #tpu.memory_space<vmem>>, vector<1x1x128xf32>
    %286 = vector.shape_cast %285 : vector<1x1x128xf32> to vector<1x128xf32>
    %cst_142 = arith.constant dense<0.000000e+00> : vector<10xf32>
    %287 = vector.multi_reduction <add>, %282, %cst_142 [1] : vector<10x128xf32> to vector<10xf32>
    %288 = vector.shape_cast %287 : vector<10xf32> to vector<10x1xf32>
    %cst_143 = arith.constant 1.280000e+02 : f32
    %289 = vector.broadcast %cst_143 : f32 to vector<10x1xf32>
    %290 = arith.divf %288, %289 : vector<10x1xf32>
    %291 = vector.broadcast %290 : vector<10x1xf32> to vector<10x128xf32>
    %292 = arith.subf %282, %291 : vector<10x128xf32>
    %293 = arith.mulf %292, %292 : vector<10x128xf32>
    %cst_144 = arith.constant dense<0.000000e+00> : vector<10xf32>
    %294 = vector.multi_reduction <add>, %293, %cst_144 [1] : vector<10x128xf32> to vector<10xf32>
    %295 = vector.shape_cast %294 : vector<10xf32> to vector<10x1xf32>
    %cst_145 = arith.constant 1.280000e+02 : f32
    %296 = vector.broadcast %cst_145 : f32 to vector<10x1xf32>
    %297 = arith.divf %295, %296 : vector<10x1xf32>
    %cst_146 = arith.constant 9.99999996E-13 : f32
    %298 = vector.broadcast %cst_146 : f32 to vector<10x1xf32>
    %299 = arith.addf %297, %298 : vector<10x1xf32>
    %300 = math.rsqrt %299 : vector<10x1xf32>
    %301 = vector.broadcast %300 : vector<10x1xf32> to vector<10x128xf32>
    %302 = arith.mulf %292, %301 : vector<10x128xf32>
    %303 = vector.broadcast %284 : vector<1x128xf32> to vector<10x128xf32>
    %304 = arith.mulf %302, %303 : vector<10x128xf32>
    %305 = vector.broadcast %286 : vector<1x128xf32> to vector<10x128xf32>
    %306 = arith.addf %304, %305 : vector<10x128xf32>
    %c1_147 = arith.constant 1 : index
    %c0_148 = arith.constant 0 : index
    %c0_149 = arith.constant 0 : index
    %307 = vector.load %arg14[%c1_147, %c0_148, %c0_149] : memref<2x128x512xf32, #tpu.memory_space<vmem>>, vector<1x128x512xf32>
    %308 = vector.shape_cast %307 : vector<1x128x512xf32> to vector<128x512xf32>
    %cst_150 = arith.constant dense<0.000000e+00> : vector<10x512xf32>
    %309 = tpu.matmul %306, %308, %cst_150 {dimension_numbers = #tpu.dot_dimension_numbers<[1], [0], [0], [1], [0, 0, 1, 1], [], []>} : vector<10x128xf32>, vector<128x512xf32>, vector<10x512xf32> -> vector<10x512xf32>
    %c1_151 = arith.constant 1 : index
    %c0_152 = arith.constant 0 : index
    %c0_153 = arith.constant 0 : index
    %310 = vector.load %arg15[%c1_151, %c0_152, %c0_153] : memref<2x1x512xf32, #tpu.memory_space<vmem>>, vector<1x1x512xf32>
    %311 = vector.shape_cast %310 : vector<1x1x512xf32> to vector<1x512xf32>
    %312 = vector.broadcast %311 : vector<1x512xf32> to vector<10x512xf32>
    %313 = arith.addf %309, %312 : vector<10x512xf32>
    %cst_154 = arith.constant 5.000000e-01 : f32
    %314 = vector.broadcast %cst_154 : f32 to vector<10x512xf32>
    %315 = arith.mulf %314, %313 : vector<10x512xf32>
    %cst_155 = arith.constant 0.707106769 : f32
    %316 = vector.broadcast %cst_155 : f32 to vector<10x512xf32>
    %317 = arith.mulf %313, %316 : vector<10x512xf32>
    %318 = math.erf %317 : vector<10x512xf32>
    %cst_156 = arith.constant 1.000000e+00 : f32
    %319 = vector.broadcast %cst_156 : f32 to vector<10x512xf32>
    %320 = arith.addf %319, %318 : vector<10x512xf32>
    %321 = arith.mulf %315, %320 : vector<10x512xf32>
    %c1_157 = arith.constant 1 : index
    %c0_158 = arith.constant 0 : index
    %c0_159 = arith.constant 0 : index
    %322 = vector.load %arg16[%c1_157, %c0_158, %c0_159] : memref<2x512x128xf32, #tpu.memory_space<vmem>>, vector<1x512x128xf32>
    %323 = vector.shape_cast %322 : vector<1x512x128xf32> to vector<512x128xf32>
    %cst_160 = arith.constant dense<0.000000e+00> : vector<10x128xf32>
    %324 = tpu.matmul %321, %323, %cst_160 {dimension_numbers = #tpu.dot_dimension_numbers<[1], [0], [0], [1], [0, 0, 1, 1], [], []>} : vector<10x512xf32>, vector<512x128xf32>, vector<10x128xf32> -> vector<10x128xf32>
    %c1_161 = arith.constant 1 : index
    %c0_162 = arith.constant 0 : index
    %c0_163 = arith.constant 0 : index
    %325 = vector.load %arg17[%c1_161, %c0_162, %c0_163] : memref<2x1x128xf32, #tpu.memory_space<vmem>>, vector<1x1x128xf32>
    %326 = vector.shape_cast %325 : vector<1x1x128xf32> to vector<1x128xf32>
    %327 = vector.broadcast %326 : vector<1x128xf32> to vector<10x128xf32>
    %328 = arith.addf %324, %327 : vector<10x128xf32>
    %329 = arith.addf %282, %328 : vector<10x128xf32>
    %c0_164 = arith.constant 0 : index
    %c0_165 = arith.constant 0 : index
    %330 = vector.load %arg18[%c0_164, %c0_165] : memref<1x128xf32, #tpu.memory_space<vmem>>, vector<1x128xf32>
    %c0_166 = arith.constant 0 : index
    %c0_167 = arith.constant 0 : index
    %331 = vector.load %arg19[%c0_166, %c0_167] : memref<1x128xf32, #tpu.memory_space<vmem>>, vector<1x128xf32>
    %cst_168 = arith.constant dense<0.000000e+00> : vector<10xf32>
    %332 = vector.multi_reduction <add>, %329, %cst_168 [1] : vector<10x128xf32> to vector<10xf32>
    %333 = vector.shape_cast %332 : vector<10xf32> to vector<10x1xf32>
    %cst_169 = arith.constant 1.280000e+02 : f32
    %334 = vector.broadcast %cst_169 : f32 to vector<10x1xf32>
    %335 = arith.divf %333, %334 : vector<10x1xf32>
    %336 = vector.broadcast %335 : vector<10x1xf32> to vector<10x128xf32>
    %337 = arith.subf %329, %336 : vector<10x128xf32>
    %338 = arith.mulf %337, %337 : vector<10x128xf32>
    %cst_170 = arith.constant dense<0.000000e+00> : vector<10xf32>
    %339 = vector.multi_reduction <add>, %338, %cst_170 [1] : vector<10x128xf32> to vector<10xf32>
    %340 = vector.shape_cast %339 : vector<10xf32> to vector<10x1xf32>
    %cst_171 = arith.constant 1.280000e+02 : f32
    %341 = vector.broadcast %cst_171 : f32 to vector<10x1xf32>
    %342 = arith.divf %340, %341 : vector<10x1xf32>
    %cst_172 = arith.constant 9.99999996E-13 : f32
    %343 = vector.broadcast %cst_172 : f32 to vector<10x1xf32>
    %344 = arith.addf %342, %343 : vector<10x1xf32>
    %345 = math.rsqrt %344 : vector<10x1xf32>
    %346 = vector.broadcast %345 : vector<10x1xf32> to vector<10x128xf32>
    %347 = arith.mulf %337, %346 : vector<10x128xf32>
    %348 = vector.broadcast %330 : vector<1x128xf32> to vector<10x128xf32>
    %349 = arith.mulf %347, %348 : vector<10x128xf32>
    %350 = vector.broadcast %331 : vector<1x128xf32> to vector<10x128xf32>
    %351 = arith.addf %349, %350 : vector<10x128xf32>
    %c0_173 = arith.constant 0 : index
    %c0_174 = arith.constant 0 : index
    %352 = vector.load %arg21[%c0_173, %c0_174] : memref<1x8xf32, #tpu.memory_space<vmem>>, vector<1x8xf32>
    %353 = vector.extract_strided_slice %351 {offsets = [0, 0], sizes = [1, 128], strides = [1, 1]} : vector<10x128xf32> to vector<1x128xf32>
    %354 = vector.extract_strided_slice %351 {offsets = [5, 0], sizes = [1, 128], strides = [1, 1]} : vector<10x128xf32> to vector<1x128xf32>
    %355 = tpu.concatenate %353, %354 in 0 : vector<1x128xf32>, vector<1x128xf32> -> vector<2x128xf32>
    %c0_175 = arith.constant 0 : index
    %c0_176 = arith.constant 0 : index
    %c0_177 = arith.constant 0 : index
    %356 = vector.load %arg20[%c0_175, %c0_176, %c0_177] : memref<5x128x8xf32, #tpu.memory_space<vmem>>, vector<1x128x8xf32>
    %357 = vector.shape_cast %356 : vector<1x128x8xf32> to vector<128x8xf32>
    %cst_178 = arith.constant dense<0.000000e+00> : vector<2x8xf32>
    %358 = tpu.matmul %355, %357, %cst_178 {dimension_numbers = #tpu.dot_dimension_numbers<[1], [0], [0], [1], [0, 0, 1, 1], [], []>} : vector<2x128xf32>, vector<128x8xf32>, vector<2x8xf32> -> vector<2x8xf32>
    %359 = vector.broadcast %352 : vector<1x8xf32> to vector<2x8xf32>
    %360 = arith.addf %359, %358 : vector<2x8xf32>
    %361 = vector.extract_strided_slice %351 {offsets = [1, 0], sizes = [1, 128], strides = [1, 1]} : vector<10x128xf32> to vector<1x128xf32>
    %362 = vector.extract_strided_slice %351 {offsets = [6, 0], sizes = [1, 128], strides = [1, 1]} : vector<10x128xf32> to vector<1x128xf32>
    %363 = tpu.concatenate %361, %362 in 0 : vector<1x128xf32>, vector<1x128xf32> -> vector<2x128xf32>
    %c1_179 = arith.constant 1 : index
    %c0_180 = arith.constant 0 : index
    %c0_181 = arith.constant 0 : index
    %364 = vector.load %arg20[%c1_179, %c0_180, %c0_181] : memref<5x128x8xf32, #tpu.memory_space<vmem>>, vector<1x128x8xf32>
    %365 = vector.shape_cast %364 : vector<1x128x8xf32> to vector<128x8xf32>
    %cst_182 = arith.constant dense<0.000000e+00> : vector<2x8xf32>
    %366 = tpu.matmul %363, %365, %cst_182 {dimension_numbers = #tpu.dot_dimension_numbers<[1], [0], [0], [1], [0, 0, 1, 1], [], []>} : vector<2x128xf32>, vector<128x8xf32>, vector<2x8xf32> -> vector<2x8xf32>
    %367 = arith.addf %360, %366 : vector<2x8xf32>
    %368 = vector.extract_strided_slice %351 {offsets = [2, 0], sizes = [1, 128], strides = [1, 1]} : vector<10x128xf32> to vector<1x128xf32>
    %369 = vector.extract_strided_slice %351 {offsets = [7, 0], sizes = [1, 128], strides = [1, 1]} : vector<10x128xf32> to vector<1x128xf32>
    %370 = tpu.concatenate %368, %369 in 0 : vector<1x128xf32>, vector<1x128xf32> -> vector<2x128xf32>
    %c2 = arith.constant 2 : index
    %c0_183 = arith.constant 0 : index
    %c0_184 = arith.constant 0 : index
    %371 = vector.load %arg20[%c2, %c0_183, %c0_184] : memref<5x128x8xf32, #tpu.memory_space<vmem>>, vector<1x128x8xf32>
    %372 = vector.shape_cast %371 : vector<1x128x8xf32> to vector<128x8xf32>
    %cst_185 = arith.constant dense<0.000000e+00> : vector<2x8xf32>
    %373 = tpu.matmul %370, %372, %cst_185 {dimension_numbers = #tpu.dot_dimension_numbers<[1], [0], [0], [1], [0, 0, 1, 1], [], []>} : vector<2x128xf32>, vector<128x8xf32>, vector<2x8xf32> -> vector<2x8xf32>
    %374 = arith.addf %367, %373 : vector<2x8xf32>
    %375 = vector.extract_strided_slice %351 {offsets = [3, 0], sizes = [1, 128], strides = [1, 1]} : vector<10x128xf32> to vector<1x128xf32>
    %376 = vector.extract_strided_slice %351 {offsets = [8, 0], sizes = [1, 128], strides = [1, 1]} : vector<10x128xf32> to vector<1x128xf32>
    %377 = tpu.concatenate %375, %376 in 0 : vector<1x128xf32>, vector<1x128xf32> -> vector<2x128xf32>
    %c3 = arith.constant 3 : index
    %c0_186 = arith.constant 0 : index
    %c0_187 = arith.constant 0 : index
    %378 = vector.load %arg20[%c3, %c0_186, %c0_187] : memref<5x128x8xf32, #tpu.memory_space<vmem>>, vector<1x128x8xf32>
    %379 = vector.shape_cast %378 : vector<1x128x8xf32> to vector<128x8xf32>
    %cst_188 = arith.constant dense<0.000000e+00> : vector<2x8xf32>
    %380 = tpu.matmul %377, %379, %cst_188 {dimension_numbers = #tpu.dot_dimension_numbers<[1], [0], [0], [1], [0, 0, 1, 1], [], []>} : vector<2x128xf32>, vector<128x8xf32>, vector<2x8xf32> -> vector<2x8xf32>
    %381 = arith.addf %374, %380 : vector<2x8xf32>
    %382 = vector.extract_strided_slice %351 {offsets = [4, 0], sizes = [1, 128], strides = [1, 1]} : vector<10x128xf32> to vector<1x128xf32>
    %383 = vector.extract_strided_slice %351 {offsets = [9, 0], sizes = [1, 128], strides = [1, 1]} : vector<10x128xf32> to vector<1x128xf32>
    %384 = tpu.concatenate %382, %383 in 0 : vector<1x128xf32>, vector<1x128xf32> -> vector<2x128xf32>
    %c4 = arith.constant 4 : index
    %c0_189 = arith.constant 0 : index
    %c0_190 = arith.constant 0 : index
    %385 = vector.load %arg20[%c4, %c0_189, %c0_190] : memref<5x128x8xf32, #tpu.memory_space<vmem>>, vector<1x128x8xf32>
    %386 = vector.shape_cast %385 : vector<1x128x8xf32> to vector<128x8xf32>
    %cst_191 = arith.constant dense<0.000000e+00> : vector<2x8xf32>
    %387 = tpu.matmul %384, %386, %cst_191 {dimension_numbers = #tpu.dot_dimension_numbers<[1], [0], [0], [1], [0, 0, 1, 1], [], []>} : vector<2x128xf32>, vector<128x8xf32>, vector<2x8xf32> -> vector<2x8xf32>
    %388 = arith.addf %381, %387 : vector<2x8xf32>
    %cst_192 = arith.constant 0.000000e+00 : f32
    %389 = vector.broadcast %cst_192 : f32 to vector<2x8xf32>
    %390 = arith.maximumf %388, %389 : vector<2x8xf32>
    %c0_193 = arith.constant 0 : index
    %c0_194 = arith.constant 0 : index
    %391 = vector.load %arg22[%c0_193, %c0_194] : memref<8x8xf32, #tpu.memory_space<vmem>>, vector<8x8xf32>
    %cst_195 = arith.constant dense<0.000000e+00> : vector<2x8xf32>
    %392 = tpu.matmul %390, %391, %cst_195 {dimension_numbers = #tpu.dot_dimension_numbers<[1], [0], [0], [1], [0, 0, 1, 1], [], []>} : vector<2x8xf32>, vector<8x8xf32>, vector<2x8xf32> -> vector<2x8xf32>
    %c0_196 = arith.constant 0 : index
    %c0_197 = arith.constant 0 : index
    %393 = vector.load %arg23[%c0_196, %c0_197] : memref<1x8xf32, #tpu.memory_space<vmem>>, vector<1x8xf32>
    %394 = vector.broadcast %393 : vector<1x8xf32> to vector<2x8xf32>
    %395 = arith.addf %392, %394 : vector<2x8xf32>
    %c0_198 = arith.constant 0 : index
    %c0_199 = arith.constant 0 : index
    %396 = vector.load %arg24[%c0_198, %c0_199] : memref<2x8xf32, #tpu.memory_space<vmem>>, vector<2x8xf32>
    tpu.vector_store %arg24[%c0_198, %c0_199], %395 {strides = array<i32>} : memref<2x8xf32, #tpu.memory_space<vmem>>, vector<2x8xf32>,
    return
  }
}

</mosaic_0001>

<bundles_post_ra>
// kernel: plant_vision_forward.1
= control target key start
LH: loop header
LB: loop body
LE: loop exit
PB: predicated region body
PF: predicated region fallthrough
CT: control target
= control target key end

     0   :  { %s8702_s0 = inlined_call_operand.vmem [shape: f32[8,768], index: 0, kind: input, shape index: {}]   ;;  %s8703_s1 = inlined_call_operand.vmem [shape: f32[10,10], index: 1, kind: input, shape index: {}]   ;;  %s8704_s2 = inlined_call_operand.hbm [shape: f32[768,128], index: 2, kind: input, shape index: {}]   ;;  %s8705_s3 = inlined_call_operand.vmem [shape: f32[1,128], index: 3, kind: input, shape index: {}]   ;;  %s8706_s4 = inlined_call_operand.vmem [shape: f32[1,128], index: 4, kind: input, shape index: {}]   ;;  %s8707_s5 = inlined_call_operand.vmem [shape: f32[5,128], index: 5, kind: input, shape index: {}]   ;;  %s8708_s6 = inlined_call_operand.vmem [shape: f32[2,1,128], index: 6, kind: input, shape index: {}]   ;;  %s8709_s7 = inlined_call_operand.vmem [shape: f32[2,1,128], index: 7, kind: input, shape index: {}]   ;;  %s8710_s8 = inlined_call_operand.hbm [shape: f32[2,128,384], index: 8, kind: input, shape index: {}]   ;;  %s8711_s9 = inlined_call_operand.vmem [shape: f32[2,1,384], index: 9, kind: input, shape index: {}]   ;;  %s8712_s10 = inlined_call_operand.vmem [shape: f32[2,128,128], index: 10, kind: input, shape index: {}]   ;;  %s8713_s11 = inlined_call_operand.vmem [shape: f32[2,1,128], index: 11, kind: input, shape index: {}]   ;;  %s8714_s12 = inlined_call_operand.vmem [shape: f32[2,1,128], index: 12, kind: input, shape index: {}]   ;;  %s8715_s13 = inlined_call_operand.vmem [shape: f32[2,1,128], index: 13, kind: input, shape index: {}]   ;;  %s8716_s14 = inlined_call_operand.vmem [shape: f32[2,128,512], index: 14, kind: input, shape index: {}]   ;;  %s8717_s15 = inlined_call_operand.vmem [shape: f32[2,1,512], index: 15, kind: input, shape index: {}]   ;;  %s8718_s16 = inlined_call_operand.vmem [shape: f32[2,512,128], index: 16, kind: input, shape index: {}]   ;;  %s8719_s17 = inlined_call_operand.vmem [shape: f32[2,1,128], index: 17, kind: input, shape index: {}]   ;;  %s8720_s18 = inlined_call_operand.vmem [shape: f32[1,128], index: 18, kind: input, shape index: {}]   ;;  %s8721_s19 = inlined_call_operand.vmem [shape: f32[1,128], index: 19, kind: input, shape index: {}]   ;;  %s8722_s20 = inlined_call_operand.vmem [shape: f32[5,128,8], index: 20, kind: input, shape index: {}]   ;;  %s8723_s21 = inlined_call_operand.vmem [shape: f32[1,8], index: 21, kind: input, shape index: {}]   ;;  %s8724_s22 = inlined_call_operand.vmem [shape: f32[8,8], index: 22, kind: input, shape index: {}]   ;;  %s8725_s23 = inlined_call_operand.vmem [shape: f32[1,8], index: 23, kind: input, shape index: {}]   ;;  %s8726_s24 = inlined_call_operand.hbm [shape: f32[2,8], index: 24, kind: output, shape index: {}]  }
   0x1   :  { %8735 = sst [smem:[#allocation11_spill]] %s8702_s0 }
   0x2   :  { %8736 = sst [smem:[#allocation12_spill]] %s8703_s1 }
   0x3   :  { %8737 = sst [smem:[#allocation13_spill]] %s8704_s2 }
   0x4   :  { %8738 = sst [smem:[#allocation14_spill]] %s8705_s3 }
   0x5   :  { %8739 = sst [smem:[#allocation15_spill]] %s8706_s4 }
   0x6   :  { %8740 = sst [smem:[#allocation16_spill]] %s8707_s5 }
   0x7   :  { %8741 = sst [smem:[#allocation17_spill]] %s8708_s6 }
   0x8   :  { %8742 = sst [smem:[#allocation18_spill]] %s8709_s7 }
   0x9   :  { %8743 = sst [smem:[#allocation19_spill]] %s8710_s8 }
   0xa   :  { %8744 = sst [smem:[#allocation20_spill]] %s8725_s23 }
   0xb   :  { %8745 = sst [smem:[#allocation21_spill]] %s8726_s24 }
   0xc   :  { %29 = vsyncpa [#allocation3], 0 }
   0xd   :  { %30 = vsyncpa [#allocation6], 0 }
   0xe   :  { %31 = vsyncpa [#allocation4], 0  ;;  %s6841_s5 = smov [#allocation2]   ;;  %s8746_s6 = sld [smem:[#allocation13_spill]] }
   0xf   :  { %s41_s26 = sshll.u32 %s6841_s5, 4  ;;  %s42_s26 = int_to_ptr.vmem [resolvable:$true] %s41_s26 }
  0x14   :  { %s6769_s2 = scalar_lea.hbm %s8746_s6, 12288 }
  0x15   :  { %p6770_p0 = scmp.ne.s32.totalorder %s8746_s6, %s6769_s2  ;;  %p6773_p1 = scmp.lt.u32.totalorder %s6769_s2, %s8746_s6 }
  0x17   :  { %p6775_p2 = pnand %p6773_p1, %p6770_p0 }
  0x19   :  { %6778 = shalt.err (!%p6775_p2)
}
  0x1a   :  { %s6779_s3 = scalar_lea.vmem %s42_s26, 12288  ;;  %p6784_p4 = scmp.lt.s32.totalorder %s42_s26, %s42_s26 }
  0x1b   :  { %p6780_p3 = scmp.ne.s32.totalorder %s42_s26, %s6779_s3  ;;  %p6785_p5 = scmp.lt.s32.totalorder %s6779_s3, %s6779_s3 }
  0x1d   :  { %p6786_p6 = por %p6785_p5, %p6784_p4 }
  0x1f   :  { %p6787_p7 = pnand %p6786_p6, %p6780_p3 }
  0x21   :  { %6790 = shalt.err (!%p6787_p7)
}
  0x22   :  { %s6842_s25 = smov 128   ;;  %s6843_s8 = smov 8  }
  0x23   :  { %47 = dma.hbm_to_vmem [thread:$0]  %s8746_s6, 12288, %s42_s26, [#allocation3], %s6842_s25, %s6842_s25, %s6843_s8  }
  0x24   :  { %s6844_s5 = smov [#allocation5]   ;;  %s8747_s29 = sld [smem:[#allocation19_spill]] }
  0x25   :  { %s63_s27 = sshll.u32 %s6844_s5, 4  ;;  %s64_s27 = int_to_ptr.vmem [resolvable:$true] %s63_s27 }
  0x2a   :  { %s6791_s0 = scalar_lea.hbm %s8747_s29, 12288 }
  0x2b   :  { %p6792_p8 = scmp.ne.s32.totalorder %s8747_s29, %s6791_s0  ;;  %p6795_p9 = scmp.lt.u32.totalorder %s6791_s0, %s8747_s29 }
  0x2d   :  { %p6797_p10 = pnand %p6795_p9, %p6792_p8 }
  0x2f   :  { %6800 = shalt.err (!%p6797_p10)
}
  0x30   :  { %s6801_s23 = scalar_lea.vmem %s64_s27, 12288  ;;  %p6806_p12 = scmp.lt.s32.totalorder %s64_s27, %s64_s27 }
  0x31   :  { %p6802_p11 = scmp.ne.s32.totalorder %s64_s27, %s6801_s23  ;;  %p6807_p13 = scmp.lt.s32.totalorder %s6801_s23, %s6801_s23 }
  0x33   :  { %p6808_p0 = por %p6807_p13, %p6806_p12 }
  0x35   :  { %p6809_p1 = pnand %p6808_p0, %p6802_p11 }
  0x37   :  { %6812 = shalt.err (!%p6809_p1)
}
  0x38   :  { %s6845_s26 = smov 384   ;;  %s6846_s6 = smov 24  }
  0x39   :  { %69 = dma.hbm_to_vmem [thread:$0]  %s8747_s29, 12288, %s64_s27, [#allocation6], %s6845_s26, %s6845_s26, %s6846_s6  }
  0x3a   :  { %6835 = dma.done.wait [#allocation3], 12288  }
  0x3b   :  { %6836 = vsyncadd [#allocation3], 4294955008 }
  0x3c   :  { %6837 = dma.done.wait [#allocation6], 12288  }
  0x3d   :  { %6838 = vsyncadd [#allocation6], 4294955008  ;;  %v128_v0 = vld [vmem:[#allocation2 + $0x80] sm:$0xff]  ;;  %v129_v1 = vld [vmem:[#allocation2 + $0x88] sm:$0xff]  ;;  %s8748_s4 = sld [smem:[#allocation11_spill]]  ;;  %s8749_s25 = sld [smem:[#allocation14_spill]] }
  0x3e   :  { %v112_v2 = vld [vmem:[#allocation2] sm:$0xff]  ;;  %v5779_v3 = vpack.c.bf16 %v129_v1, %v128_v0  ;;  %v113_v4 = vld [vmem:[#allocation2 + $0x8] sm:$0xff]  ;;  %v130_v5 = vld [vmem:[#allocation2 + $0x90] sm:$0xff]  ;;  %s8750_s24 = sld [smem:[#allocation16_spill]]  ;;  %s8751_s5 = sld [smem:[#allocation15_spill]]  ;;  %vm446_vm0 = vcmask 1040384  }
  0x3f   :  { %v131_v6 = vld [vmem:[#allocation2 + $0x98] sm:$0xff]  ;;  %v5781_v7 = vpack.c.bf16 %v113_v4, %v112_v2  ;;  %v114_v9 = vld [vmem:[#allocation2 + $0x10] sm:$0xff]  ;;  %v132_v11 = vld [vmem:[#allocation2 + $0xa0] sm:$0xff]  ;;  %vm448_vm1 = vcmask 1044480   ;;  %vm450_vm2 = vcmask 1045504   ;;  %vm458_vm3 = vcmask 1041408  }
  0x40   :  { %v5783_v8 = vpack.c.bf16 %v131_v6, %v130_v5  ;;  %v115_v10 = vld [vmem:[#allocation2 + $0x18] sm:$0xff]  ;;  %5780 = vmatprep.subr.bf16.mxu0 %v5779_v3  ;;  %v133_v12 = vld [vmem:[#allocation2 + $0xa8] sm:$0xff]  ;;  %v116_v15 = vld [vmem:[#allocation2 + $0x20] sm:$0xff]  ;;  %s8752_s0 = sld [smem:[#allocation17_spill]]  ;;  %s8753_s3 = sld [smem:[#allocation18_spill]]  ;;  %vm715_vm4 = vcmask 261120  }
  0x41   :  { %5782 = vmatpush3.bf16.msra.mxu0 %v5781_v7  ;;  %v5785_v13 = vpack.c.bf16 %v115_v10, %v114_v9  ;;  %v5787_v14 = vpack.c.bf16 %v133_v12, %v132_v11  ;;  %v117_v16 = vld [vmem:[#allocation2 + $0x28] sm:$0xff]  ;;  %v134_v17 = vld [vmem:[#allocation2 + $0xb0] sm:$0xff]  ;;  %v135_v18 = vld [vmem:[#allocation2 + $0xb8] sm:$0xff]  ;;  %vm6848_vm6 = vmmov 1   ;;  %s8758_s23 = sld [smem:[#allocation12_spill]]  ;;  %vm811_vm8 = vcmask 74752  }
  0x42   :  { %5784 = vmatprep.subr.bf16.mxu0 %v5783_v8  ;;  %v5789_v19 = vpack.c.bf16 %v117_v16, %v116_v15  ;;  %v5791_v20 = vpack.c.bf16 %v135_v18, %v134_v17  ;;  %v118_v21 = vld [vmem:[#allocation2 + $0x30] sm:$0xff]  ;;  %v119_v22 = vld [vmem:[#allocation2 + $0x38] sm:$0xff]  ;;  %v136_v23 = vld [vmem:[#allocation2 + $0xc0] sm:$0xff]  ;;  %vm807_vm9 = vcmask 80896   ;;  %s6849_s1 = smov 96   ;;  %s6851_s27 = smov 64  }
  0x43   :  { %v137_v24 = vld [vmem:[#allocation2 + $0xc8] sm:$0xff]  ;;  %v5793_v26 = vpack.c.bf16 %v119_v22, %v118_v21  ;;  %v120_v28 = vld [vmem:[#allocation2 + $0x40] sm:$0xff]  ;;  %v138_v30 = vld [vmem:[#allocation2 + $0xd0] sm:$0xff]  ;;  %vm1557_vm10 = vcmask 523264   ;;  %vm1560_vm11 = vcmask 785408   ;;  %vm6853_vm12 = vmmov 0  }
  0x44   :  { %v107_v25 = vld [vmem:[%s8748_s4 + $0x8] sm:$0xff]  ;;  %v5795_v27 = vpack.c.bf16 %v137_v24, %v136_v23  ;;  %v139_v31 = vld [vmem:[#allocation2 + $0xd8] sm:$0xff]  ;;  %v122_v34 = vld [vmem:[#allocation2 + $0x50] sm:$0xff]  ;;  %vm4485_vm13 = vcmask 64512   ;;  %s8759_s2 = sld [smem:[#allocation20_spill]]  ;;  %s6854_s29 = smov [#allocation7]  }
  0x45   :  { %5786 = vmatpush3.bf16.msra.mxu0 %v5785_v13  ;;  %279 = vmatprep.mubr.f32.mxu0 %v107_v25  ;;  %v121_v29 = vld [vmem:[#allocation2 + $0x48] sm:$0xff]  ;;  %v5799_v33 = vpack.c.bf16 %v139_v31, %v138_v30  ;;  %v123_v35 = vld [vmem:[#allocation2 + $0x58] sm:$0xff]  ;;  %v140_v36 = vld [vmem:[#allocation2 + $0xe0] sm:$0xff]  ;;  %vm4559_vm14 = vcmask 58368  }
  0x46   :  { %5788 = vmatprep.subr.bf16.mxu0 %v5787_v14  ;;  %v5797_v32 = vpack.c.bf16 %v121_v29, %v120_v28  ;;  %v141_v37 = vld [vmem:[#allocation2 + $0xe8] sm:$0xff]  ;;  %v5801_v38 = vpack.c.bf16 %v123_v35, %v122_v34  ;;  %v124_v40 = vld [vmem:[#allocation2 + $0x60] sm:$0xff]  ;;  %v142_v42 = vld [vmem:[#allocation2 + $0xf0] sm:$0xff] }
  0x47   :  { %v5803_v39 = vpack.c.bf16 %v141_v37, %v140_v36  ;;  %v125_v41 = vld [vmem:[#allocation2 + $0x68] sm:$0xff]  ;;  %v143_v43 = vld [vmem:[#allocation2 + $0xf8] sm:$0xff]  ;;  %v126_v46 = vld [vmem:[#allocation2 + $0x70] sm:$0xff] }
  0x48   :  { %v5805_v44 = vpack.c.bf16 %v125_v41, %v124_v40  ;;  %v5807_v45 = vpack.c.bf16 %v143_v43, %v142_v42  ;;  %v127_v47 = vld [vmem:[#allocation2 + $0x78] sm:$0xff]  ;;  %v160_v48 = vld [vmem:[#allocation2 + $0x180] sm:$0xff]  ;;  %v161_v49 = vld [vmem:[#allocation2 + $0x188] sm:$0xff] }
  0x49   :  { %5790 = vmatpush3.bf16.msra.mxu0 %v5789_v19  ;;  %v5809_v50 = vpack.c.bf16 %v127_v47, %v126_v46  ;;  %v5811_v51 = vpack.c.bf16 %v161_v49, %v160_v48  ;;  %v144_v52 = vld [vmem:[#allocation2 + $0x100] sm:$0xff]  ;;  %v145_v53 = vld [vmem:[#allocation2 + $0x108] sm:$0xff]  ;;  %v162_v54 = vld [vmem:[#allocation2 + $0x190] sm:$0xff] }
  0x4a   :  { %5792 = vmatprep.subr.bf16.mxu0 %v5791_v20  ;;  %v163_v55 = vld [vmem:[#allocation2 + $0x198] sm:$0xff]  ;;  %v106_v56 = vld [vmem:[%s8748_s4] sm:$0xff]  ;;  %v5813_v57 = vpack.c.bf16 %v145_v53, %v144_v52  ;;  %v146_v59 = vld [vmem:[#allocation2 + $0x110] sm:$0xff] }
  0x4b   :  { %v5815_v58 = vpack.c.bf16 %v163_v55, %v162_v54  ;;  %v147_v60 = vld [vmem:[#allocation2 + $0x118] sm:$0xff]  ;;  %v164_v62 = vld [vmem:[#allocation2 + $0x1a0] sm:$0xff]  ;;  %v165_v63 = vld [vmem:[#allocation2 + $0x1a8] sm:$0xff] }
  0x4c   :  { %v109_v61 = vld [vmem:[%s8748_s4 + $0x18] sm:$0xff]  ;;  %v5817_v0 = vpack.c.bf16 %v147_v60, %v146_v59  ;;  %v5819_v1 = vpack.c.bf16 %v165_v63, %v164_v62  ;;  %v148_v2 = vld [vmem:[#allocation2 + $0x120] sm:$0xff]  ;;  %v149_v3 = vld [vmem:[#allocation2 + $0x128] sm:$0xff] }
  0x4d   :  { %5794 = vmatpush3.bf16.msra.mxu0 %v5793_v26  ;;  %v166_v4 = vld [vmem:[#allocation2 + $0x1b0] sm:$0xff]  ;;  %v167_v5 = vld [vmem:[#allocation2 + $0x1b8] sm:$0xff]  ;;  %v5821_v6 = vpack.c.bf16 %v149_v3, %v148_v2  ;;  %v168_v10 = vld [vmem:[#allocation2 + $0x1c0] sm:$0xff] }
  0x4e   :  { %5796 = vmatprep.subr.bf16.mxu0 %v5795_v27  ;;  %v5823_v7 = vpack.c.bf16 %v167_v5, %v166_v4  ;;  %v150_v8 = vld [vmem:[#allocation2 + $0x130] sm:$0xff]  ;;  %v151_v9 = vld [vmem:[#allocation2 + $0x138] sm:$0xff]  ;;  %v169_v11 = vld [vmem:[#allocation2 + $0x1c8] sm:$0xff] }
  0x4f   :  { %v5825_v12 = vpack.c.bf16 %v151_v9, %v150_v8  ;;  %v5827_v13 = vpack.c.bf16 %v169_v11, %v168_v10  ;;  %v152_v14 = vld [vmem:[#allocation2 + $0x140] sm:$0xff]  ;;  %v153_v15 = vld [vmem:[#allocation2 + $0x148] sm:$0xff]  ;;  %v170_v16 = vld [vmem:[#allocation2 + $0x1d0] sm:$0xff] }
  0x50   :  { %v171_v17 = vld [vmem:[#allocation2 + $0x1d8] sm:$0xff]  ;;  %v5829_v18 = vpack.c.bf16 %v153_v15, %v152_v14  ;;  %v154_v20 = vld [vmem:[#allocation2 + $0x150] sm:$0xff]  ;;  %v172_v22 = vld [vmem:[#allocation2 + $0x1e0] sm:$0xff] }
  0x51   :  { %5798 = vmatpush3.bf16.msra.mxu0 %v5797_v32  ;;  %v5831_v19 = vpack.c.bf16 %v171_v17, %v170_v16  ;;  %v155_v21 = vld [vmem:[#allocation2 + $0x158] sm:$0xff]  ;;  %v173_v23 = vld [vmem:[#allocation2 + $0x1e8] sm:$0xff]  ;;  %v156_v26 = vld [vmem:[#allocation2 + $0x160] sm:$0xff] }
  0x52   :  { %5800 = vmatprep.subr.bf16.mxu0 %v5799_v33  ;;  %v5833_v24 = vpack.c.bf16 %v155_v21, %v154_v20  ;;  %v5835_v25 = vpack.c.bf16 %v173_v23, %v172_v22  ;;  %v157_v27 = vld [vmem:[#allocation2 + $0x168] sm:$0xff]  ;;  %v174_v28 = vld [vmem:[#allocation2 + $0x1f0] sm:$0xff]  ;;  %v175_v29 = vld [vmem:[#allocation2 + $0x1f8] sm:$0xff] }
  0x53   :  { %v5837_v30 = vpack.c.bf16 %v157_v27, %v156_v26  ;;  %v5839_v31 = vpack.c.bf16 %v175_v29, %v174_v28  ;;  %v158_v32 = vld [vmem:[#allocation2 + $0x170] sm:$0xff]  ;;  %v159_v33 = vld [vmem:[#allocation2 + $0x178] sm:$0xff]  ;;  %v192_v34 = vld [vmem:[#allocation2 + $0x280] sm:$0xff] }
  0x54   :  { %v193_v35 = vld [vmem:[#allocation2 + $0x288] sm:$0xff]  ;;  %v5841_v36 = vpack.c.bf16 %v159_v33, %v158_v32  ;;  %v194_v40 = vld [vmem:[#allocation2 + $0x290] sm:$0xff]  ;;  %v195_v41 = vld [vmem:[#allocation2 + $0x298] sm:$0xff] }
  0x55   :  { %5802 = vmatpush3.bf16.msra.mxu0 %v5801_v38  ;;  %v5843_v37 = vpack.c.bf16 %v193_v35, %v192_v34  ;;  %v176_v38 = vld [vmem:[#allocation2 + $0x200] sm:$0xff]  ;;  %v108_v42 = vld [vmem:[%s8748_s4 + $0x10] sm:$0xff]  ;;  %v179_v46 = vld [vmem:[#allocation2 + $0x218] sm:$0xff] }
  0x56   :  { %5804 = vmatprep.subr.bf16.mxu0 %v5803_v39  ;;  %v177_v39 = vld [vmem:[#allocation2 + $0x208] sm:$0xff]  ;;  %v196_v48 = vld [vmem:[#allocation2 + $0x2a0] sm:$0xff]  ;;  %v198_v54 = vld [vmem:[#allocation2 + $0x2b0] sm:$0xff] }
  0x57   :  { %v5845_v43 = vpack.c.bf16 %v177_v39, %v176_v38  ;;  %v111_v47 = vld [vmem:[%s8748_s4 + $0x28] sm:$0xff]  ;;  %v180_v52 = vld [vmem:[#allocation2 + $0x220] sm:$0xff]  ;;  %v199_v55 = vld [vmem:[#allocation2 + $0x2b8] sm:$0xff] }
  0x58   :  { %v197_v49 = vld [vmem:[#allocation2 + $0x2a8] sm:$0xff]  ;;  %v183_v59 = vld [vmem:[#allocation2 + $0x238] sm:$0xff]  ;;  %v200_v60 = vld [vmem:[#allocation2 + $0x2c0] sm:$0xff] }
  0x59   :  { %5806 = vmatpush3.bf16.msra.mxu0 %v5805_v44  ;;  %v5847_v44 = vpack.c.bf16 %v195_v41, %v194_v40  ;;  %v181_v53 = vld [vmem:[#allocation2 + $0x228] sm:$0xff]  ;;  %v202_v2 = vld [vmem:[#allocation2 + $0x2d0] sm:$0xff]  ;;  %v203_v3 = vld [vmem:[#allocation2 + $0x2d8] sm:$0xff] }
  0x5a   :  { %5808 = vmatprep.subr.bf16.mxu0 %v5807_v45  ;;  %v178_v45 = vld [vmem:[#allocation2 + $0x210] sm:$0xff]  ;;  %v5863_v5 = vpack.c.bf16 %v203_v3, %v202_v2  ;;  %v204_v8 = vld [vmem:[#allocation2 + $0x2e0] sm:$0xff]  ;;  %v205_v9 = vld [vmem:[#allocation2 + $0x2e8] sm:$0xff] }
  0x5b   :  { %v5867_v11 = vpack.c.bf16 %v205_v9, %v204_v8  ;;  %v206_v14 = vld [vmem:[#allocation2 + $0x2f0] sm:$0xff]  ;;  %v207_v15 = vld [vmem:[#allocation2 + $0x2f8] sm:$0xff]  ;;  %v110_v21 = vld [vmem:[%s8748_s4 + $0x20] sm:$0xff] }
  0x5c   :  { %v5871_v17 = vpack.c.bf16 %v207_v15, %v206_v14  ;;  %v428_v32 = vld [vmem:[%s8750_s24 + $0x1] sm:$0xf]  ;;  %v425_v35 = vld [vmem:[%s8751_s5] sm:$0x1]  ;;  %v513_v8 = vld [vmem:[#allocation5 + $0x78] sm:$0xff]  ;;  %s6850_s5 = smov 32  }
  0x5d   :  { %5810 = vmatpush3.bf16.msra.mxu0 %v5809_v50  ;;  %v5849_v50 = vpack.c.bf16 %v179_v46, %v178_v45  ;;  %v431_v39 = vrot.slane %v428_v32, 4  ;;  %v514_v2 = vld [vmem:[#allocation5 + $0x80] sm:$0xff]  ;;  %v509_v9 = vld [vmem:[#allocation5 + $0x58] sm:$0xff]  ;;  %vm7088_vm5 = vmpackc.low %vm715_vm4, %vm715_vm4 }
  0x5e   :  { %5812 = vmatprep.subr.bf16.mxu0 %v5811_v51  ;;  %v5851_v51 = vpack.c.bf16 %v197_v49, %v196_v48  ;;  %vm7097_vm7 = vmpackc.low %vm458_vm3, %vm6848_vm6 }
  0x60   :  { %280 = vmatmul.mubr.f32.vlgmr.msra.gmra.mrb[0].mxu0 %v106_v56  ;;  %v5853_v56 = vpack.c.bf16 %v181_v53, %v180_v52  ;;  %v499_v52 = vld [vmem:[#allocation5 + $0x8] sm:$0xff]  ;;  %v502_v53 = vld [vmem:[#allocation5 + $0x20] sm:$0xff] }
  0x61   :  { %5814 = vmatpush3.bf16.msra.mxu0 %v5813_v57  ;;  %349 = vmatprep.mubr.f32.mxu0 %v109_v61  ;;  %v5855_v57 = vpack.c.bf16 %v199_v55, %v198_v54  ;;  %v201_v61 = vld [vmem:[#allocation2 + $0x2c8] sm:$0xff]  ;;  %v498_v54 = vld [vmem:[#allocation5] sm:$0xff]  ;;  %v5875_v55 = vpack.c.bf16 %v502_v53, %v499_v52 }
  0x62   :  { %5816 = vmatprep.subr.bf16.mxu0 %v5815_v58  ;;  %v182_v58 = vld [vmem:[#allocation2 + $0x230] sm:$0xff]  ;;  %v5859_v63 = vpack.c.bf16 %v201_v61, %v200_v60  ;;  %v535_v52 = vld [vmem:[#allocation5 + $0x128] sm:$0xff]  ;;  %v538_v53 = vld [vmem:[#allocation5 + $0x140] sm:$0xff] }
  0x63   :  { %v5857_v62 = vpack.c.bf16 %v183_v59, %v182_v58  ;;  %v508_v58 = vld [vmem:[#allocation5 + $0x50] sm:$0xff]  ;;  %5876 = vmatprep.subr.bf16.mxu1 %v5875_v55  ;;  %v5899_v55 = vpack.c.bf16 %v538_v53, %v535_v52 }
  0x64   :  { %v504_v61 = vld [vmem:[#allocation5 + $0x30] sm:$0xff] }
  0x65   :  { %5818 = vmatpush3.bf16.msra.mxu0 %v5817_v0  ;;  %v184_v0 = vld [vmem:[#allocation2 + $0x240] sm:$0xff] }
  0x66   :  { %5820 = vmatprep.subr.bf16.mxu0 %v5819_v1  ;;  %v185_v1 = vld [vmem:[#allocation2 + $0x248] sm:$0xff] }
  0x67   :  { %v5861_v4 = vpack.c.bf16 %v185_v1, %v184_v0  ;;  %v503_v0 = vld [vmem:[#allocation5 + $0x28] sm:$0xff] }
  0x68   :  { %v511_v1 = vld [vmem:[#allocation5 + $0x68] sm:$0xff] }
  0x69   :  { %5822 = vmatpush3.bf16.msra.mxu0 %v5821_v6  ;;  %v186_v6 = vld [vmem:[#allocation2 + $0x250] sm:$0xff] }
  0x6a   :  { %5824 = vmatprep.subr.bf16.mxu0 %v5823_v7  ;;  %v187_v7 = vld [vmem:[#allocation2 + $0x258] sm:$0xff] }
  0x6b   :  { %v5865_v10 = vpack.c.bf16 %v187_v7, %v186_v6  ;;  %v5883_v6 = vpack.c.bf16 %v514_v2, %v511_v1  ;;  %v510_v7 = vld [vmem:[#allocation5 + $0x60] sm:$0xff]  ;;  %v543_v2 = vld [vmem:[#allocation5 + $0x168] sm:$0xff] }
  0x6d   :  { %5826 = vmatpush3.bf16.msra.mxu0 %v5825_v12  ;;  %v188_v12 = vld [vmem:[#allocation2 + $0x260] sm:$0xff] }
  0x6e   :  { %5828 = vmatprep.subr.bf16.mxu0 %v5827_v13  ;;  %v189_v13 = vld [vmem:[#allocation2 + $0x268] sm:$0xff] }
  0x6f   :  { %v5869_v16 = vpack.c.bf16 %v189_v13, %v188_v12 }
  0x71   :  { %5830 = vmatpush3.bf16.msra.mxu0 %v5829_v18  ;;  %v190_v18 = vld [vmem:[#allocation2 + $0x270] sm:$0xff] }
  0x72   :  { %5832 = vmatprep.subr.bf16.mxu0 %v5831_v19  ;;  %v191_v19 = vld [vmem:[#allocation2 + $0x278] sm:$0xff] }
  0x73   :  { %v5873_v20 = vpack.c.bf16 %v191_v19, %v190_v18 }
  0x75   :  { %5834 = vmatpush3.bf16.msra.mxu0 %v5833_v24 }
  0x76   :  { %5836 = vmatprep.subr.bf16.mxu0 %v5835_v25  ;;  %v4577_v25 = vld [vmem:[%s8749_s25] ss:$0 sm:$0xff] }
  0x79   :  { %5838 = vmatpush3.bf16.msra.mxu0 %v5837_v30 }
  0x7a   :  { %5840 = vmatprep.subr.bf16.mxu0 %v5839_v31  ;;  %v438_v31 = vlaneseq }
  0x7c   :  { %v7028_v33 = vshrl.u32 %v438_v31, 7  ;;  %v526_v31 = vld [vmem:[#allocation5 + $0xe0] sm:$0xff] }
  0x7d   :  { %5842 = vmatpush3.bf16.msra.mxu0 %v5841_v36  ;;  %v426_v36 = vld [vmem:[%s8750_s24] sm:$0x1] }
  0x7e   :  { %5844 = vmatprep.subr.bf16.mxu0 %v5843_v37  ;;  %v427_v40 = vadd.f32 %v426_v36, %v425_v35  ;;  %v7037_v41 = vsub.s32 0, %v7028_v33  ;;  %v525_v35 = vld [vmem:[#allocation5 + $0xd8] sm:$0xff]  ;;  %v518_v36 = vld [vmem:[#allocation5 + $0xa0] sm:$0xff] }
  0x80   :  { %350 = vmatmul.mubr.f32.vlgmr.msra.gmra.mrb[2].mxu0 %v108_v42  ;;  %v441_v45 = vrot.slane %v427_v40, %v7037_v41 }
  0x81   :  { %5846 = vmatpush3.bf16.msra.mxu0 %v5845_v43  ;;  %419 = vmatprep.mubr.f32.mxu0 %v111_v47 }
  0x82   :  { %5848 = vmatprep.subr.bf16.mxu0 %v5847_v44 }
  0x85   :  { %5850 = vmatpush3.bf16.msra.mxu0 %v5849_v50 }
  0x86   :  { %5852 = vmatprep.subr.bf16.mxu0 %v5851_v51 }
  0x89   :  { %5854 = vmatpush3.bf16.msra.mxu0 %v5853_v56  ;;  %v501_v56 = vld [vmem:[#allocation5 + $0x18] sm:$0xff] }
  0x8a   :  { %5856 = vmatprep.subr.bf16.mxu0 %v5855_v57  ;;  %v505_v57 = vld [vmem:[#allocation5 + $0x38] sm:$0xff]  ;;  %v5877_v59 = vpack.c.bf16 %v501_v56, %v498_v54  ;;  %v534_v54 = vld [vmem:[#allocation5 + $0x120] sm:$0xff] }
  0x8b   :  { %v5879_v60 = vpack.c.bf16 %v508_v58, %v505_v57  ;;  %v537_v56 = vld [vmem:[#allocation5 + $0x138] sm:$0xff]  ;;  %v530_v57 = vld [vmem:[#allocation5 + $0x100] sm:$0xff] }
  0x8c   :  { %5878 = vmatpush1.bf16.msra.mxu1 %v5877_v59  ;;  %v533_v58 = vld [vmem:[#allocation5 + $0x118] sm:$0xff]  ;;  %v6847_v59 = vmov 0.0  }
  0x8d   :  { %5858 = vmatpush3.bf16.msra.mxu0 %v5857_v62  ;;  %v507_v62 = vld [vmem:[#allocation5 + $0x48] sm:$0xff]  ;;  %5880 = vmatprep.subr.bf16.mxu1 %v5879_v60  ;;  %v5901_v60 = vpack.c.bf16 %v537_v56, %v534_v54 }
  0x8e   :  { %5860 = vmatprep.subr.bf16.mxu0 %v5859_v63  ;;  %v500_v63 = vld [vmem:[#allocation5 + $0x10] sm:$0xff]  ;;  %v5881_v3 = vpack.c.bf16 %v507_v62, %v504_v61  ;;  %627 = vmatprep.mubr.f32.mxu1 %v6847_v59  ;;  %v5927_v61 = vpack.c.bf16 %v533_v58, %v530_v57  ;;  %v541_v62 = vld [vmem:[#allocation5 + $0x158] sm:$0xff]  ;;  %v7121_v58 = vld [vmem:[%s8758_s23] sm:$0xff] }
  0x90   :  { %5882 = vmatpush1.bf16.msra.mxu1 %v5881_v3  ;;  %v536_v3 = vld [vmem:[#allocation5 + $0x130] sm:$0xff] }
  0x91   :  { %5862 = vmatpush3.bf16.msra.mxu0 %v5861_v4  ;;  %v5907_v4 = vpack.c.bf16 %v503_v0, %v500_v63  ;;  %5884 = vmatprep.subr.bf16.mxu1 %v5883_v6  ;;  %v544_v63 = vld [vmem:[#allocation5 + $0x170] sm:$0xff] }
  0x92   :  { %5864 = vmatprep.subr.bf16.mxu0 %v5863_v5  ;;  %v506_v5 = vld [vmem:[#allocation5 + $0x40] sm:$0xff]  ;;  %v540_v0 = vld [vmem:[#allocation5 + $0x150] sm:$0xff]  ;;  %v5903_v1 = vpack.c.bf16 %v544_v63, %v541_v62 }
  0x93   :  { %v5905_v6 = vpack.c.bf16 %v543_v2, %v540_v0 }
  0x95   :  { %5866 = vmatpush3.bf16.msra.mxu0 %v5865_v10  ;;  %v5911_v10 = vpack.c.bf16 %v509_v9, %v506_v5 }
  0x96   :  { %5868 = vmatprep.subr.bf16.mxu0 %v5867_v11  ;;  %v5885_v11 = vpack.c.bf16 %v513_v8, %v510_v7  ;;  %v542_v7 = vld [vmem:[#allocation5 + $0x160] sm:$0xff]  ;;  %v545_v8 = vld [vmem:[#allocation5 + $0x178] sm:$0xff] }
  0x97   :  { %v5935_v9 = vpack.c.bf16 %v545_v8, %v542_v7 }
  0x98   :  { %5886 = vmatpush1.bf16.msra.mxu1 %v5885_v11 }
  0x99   :  { %5870 = vmatpush3.bf16.msra.mxu0 %v5869_v16 }
  0x9a   :  { %5872 = vmatprep.subr.bf16.mxu0 %v5871_v17 }
  0x9d   :  { %5874 = vmatpush3.bf16.msra.mxu0 %v5873_v20 }
  0x9e   :  { %5908 = vmatprep.subr.bf16.mxu0 %v5907_v4 }
  0xa0   :  { %420 = vmatmul.mubr.f32.vlgmr.msra.gmra.mrb[4].mxu0 %v110_v21  ;;  %v517_v21 = vld [vmem:[#allocation5 + $0x98] sm:$0xff] }
  0xa1   :  { %5910 = vmatpush3.bf16.msra.mxu0 %v5907_v4  ;;  %v539_v4 = vld [vmem:[#allocation5 + $0x148] sm:$0xff] }
  0xa2   :  { %5912 = vmatprep.subr.bf16.mxu0 %v5911_v10  ;;  %v5931_v5 = vpack.c.bf16 %v539_v4, %v536_v3 }
  0xa5   :  { %5914 = vmatpush3.bf16.msra.mxu0 %v5911_v10 }
 0x133   :  { %v4899_v22 = vpop.f32.mrb[0].mxu0 }
 0x134   :  { %v4900_v23 = vpop.f32.mrb[1].mxu0 }
 0x135   :  { %v4901_v24 = vadd.f32 %v4900_v23, %v4899_v22  ;;  %v520_v22 = vld [vmem:[#allocation5 + $0xb0] sm:$0xff] }
 0x136   :  { %v5887_v23 = vpack.c.bf16 %v520_v22, %v517_v21  ;;  %v4579_v21 = vld [vmem:[%s8753_s3] ss:$0 sm:$0xff] }
 0x137   :  { %v282_v28 = vadd.f32 %v4901_v24, %v4577_v25  ;;  %v516_v24 = vld [vmem:[#allocation5 + $0x90] sm:$0xff]  ;;  %v519_v25 = vld [vmem:[#allocation5 + $0xa8] sm:$0xff] }
 0x138   :  { %5888 = vmatprep.subr.bf16.mxu1 %v5887_v23 }
 0x153   :  { %v4934_v26 = vpop.f32.mrb[2].mxu0 }
 0x154   :  { %v4935_v27 = vpop.f32.mrb[3].mxu0 }
 0x155   :  { %v4936_v29 = vadd.f32 %v4935_v27, %v4934_v26  ;;  %v512_v26 = vld [vmem:[#allocation5 + $0x70] sm:$0xff]  ;;  %v5889_v27 = vpack.c.bf16 %v519_v25, %v516_v24 }
 0x157   :  { %v352_v30 = vadd.f32 %v4936_v29, %v282_v28  ;;  %v515_v28 = vld [vmem:[#allocation5 + $0x88] sm:$0xff]  ;;  %5890 = vmatpush1.bf16.msra.mxu1 %v5889_v27 }
 0x158   :  { %v5915_v29 = vpack.c.bf16 %v515_v28, %v512_v26 }
 0x15a   :  { %5916 = vmatprep.subr.bf16.mxu0 %v5915_v29 }
 0x15b   :  { %5918 = vmatpush3.bf16.msra.mxu0 %v5915_v29  ;;  %v7075_v29 = vsub.s32 2, %v7028_v33 }
 0x173   :  { %v4969_v34 = vpop.f32.mrb[4].mxu0 }
 0x174   :  { %v4970_v37 = vpop.f32.mrb[5].mxu0 }
 0x175   :  { %v4971_v38 = vadd.f32 %v4970_v37, %v4969_v34  ;;  %v522_v34 = vld [vmem:[#allocation5 + $0xc0] sm:$0xff] }
 0x176   :  { %v5893_v37 = vpack.c.bf16 %v525_v35, %v522_v34 }
 0x177   :  { %v422_v42 = vadd.f32 %v4971_v38, %v352_v30  ;;  %v523_v30 = vld [vmem:[#allocation5 + $0xc8] sm:$0xff]  ;;  %v521_v38 = vld [vmem:[#allocation5 + $0xb8] sm:$0xff] }
 0x179   :  { %v429_v43 = vadd.f32 %v428_v32, %v422_v42  ;;  %v433_v44 = vadd.f32 %v431_v39, %v422_v42  ;;  %v5891_v32 = vpack.c.bf16 %v526_v31, %v523_v30  ;;  %v5919_v39 = vpack.c.bf16 %v521_v38, %v518_v36  ;;  %v532_v42 = vld [vmem:[#allocation5 + $0x110] sm:$0xff] }
 0x17a   :  { %v7078_v30 = vsub.s32 1, %v7028_v33 }
 0x17b   :  { %v435_v46 = vrot.slane %v429_v43, 7  ;;  %v7040_v47 = vrot.slane %v433_v44, 6  ;;  %5892 = vmatprep.subr.bf16.mxu1 %v5891_v32  ;;  %5920 = vmatprep.subr.bf16.mxu0 %v5919_v39  ;;  %v528_v44 = vld [vmem:[#allocation5 + $0xf0] sm:$0xff] }
 0x17c   :  { %5894 = vmatpush1.bf16.msra.mxu1 %v5893_v37  ;;  %5922 = vmatpush3.bf16.msra.mxu0 %v5919_v39 }
 0x17d   :  { %v447_v48 = vsel %vm446_vm0, %v427_v40, %v435_v46  ;;  %v459_v51 = vsel %vm458_vm3, %v7040_v47, 0.0  ;;  %v529_v40 = vld [vmem:[#allocation5 + $0xf8] sm:$0xff]  ;;  %v524_v46 = vld [vmem:[#allocation5 + $0xd0] sm:$0xff] }
 0x17e   :  { %v449_v49 = vsel %vm448_vm1, %v447_v48, %v441_v45  ;;  %v5895_v43 = vpack.c.bf16 %v532_v42, %v529_v40  ;;  %v531_v45 = vld [vmem:[#allocation5 + $0x108] sm:$0xff] }
 0x17f   :  { %v7044_v50 = vsel %vm450_vm2, %v449_v49, %v7040_v47  ;;  %v5897_v48 = vpack.c.bf16 %v531_v45, %v528_v44  ;;  %v527_v49 = vld [vmem:[#allocation5 + $0xe8] sm:$0xff] }
 0x180   :  { %456 = vadd.xlane.f32.xlu0 %v7044_v50  ;;  %5896 = vmatprep.subr.bf16.mxu1 %v5895_v43 }
 0x181   :  { %5898 = vmatpush1.bf16.msra.mxu1 %v5897_v48 }
 0x182   :  { %5900 = vmatprep.subr.bf16.mxu1 %v5899_v55  ;;  %v7116_v55 = vld [vmem:[%s8758_s23 + $0x8] sm:$0x3] }
 0x184   :  { %460 = vadd.xlane.f32.xlu0 %v459_v51  ;;  %v5923_v51 = vpack.c.bf16 %v527_v49, %v524_v46 }
 0x185   :  { %5902 = vmatpush1.bf16.msra.mxu1 %v5901_v60 }
 0x186   :  { %5924 = vmatprep.subr.bf16.mxu0 %v5923_v51  ;;  %5904 = vmatprep.subr.bf16.mxu1 %v5903_v1 }
 0x187   :  { %5926 = vmatpush3.bf16.msra.mxu0 %v5923_v51 }
 0x188   :  { %5928 = vmatprep.subr.bf16.mxu0 %v5927_v61 }
 0x189   :  { %5906 = vmatpush1.bf16.msra.mxu1 %v5905_v6 }
 0x18b   :  { %5930 = vmatpush3.bf16.msra.mxu0 %v5927_v61 }
 0x18c   :  { %5932 = vmatprep.subr.bf16.mxu0 %v5931_v5 }
 0x18f   :  { %5934 = vmatpush3.bf16.msra.mxu0 %v5931_v5 }
 0x190   :  { %5936 = vmatprep.subr.bf16.mxu0 %v5935_v9 }
 0x193   :  { %5938 = vmatpush3.bf16.msra.mxu0 %v5935_v9 }
 0x20d   :  { %v457_v12 = vpop.xlane.xlu0 %456 }
 0x20e   :  { %v463_v13 = vmul.f32 0.0078125, %v457_v12 }
 0x210   :  { %v7050_v14 = vsub.f32 %v7044_v50, %v463_v13 }
 0x211   :  { %v461_v15 = vpop.xlane.xlu0 %460 }
 0x212   :  { %v464_v16 = vmul.f32 0.0078125, %v461_v15  ;;  %v467_v17 = vmul.f32 %v7050_v14, %v7050_v14 }
 0x214   :  { %v7055_v18 = vsub.f32 %v7040_v47, %v464_v16  ;;  %469 = vadd.xlane.f32.xlu1 %v467_v17 }
 0x216   :  { %v468_v19 = vmul.f32 %v7055_v18, %v7055_v18 }
 0x218   :  { %v471_v20 = vsel %vm458_vm3, %v468_v19, 0.0  ;;  %v4578_v19 = vld [vmem:[%s8752_s0] ss:$0 sm:$0xff] }
 0x219   :  { %472 = vadd.xlane.f32.xlu1 %v471_v20 }
 0x2a1   :  { %v470_v10 = vpop.xlane.xlu1 %469 }
 0x2a2   :  { %v474_v11 = vmul.f32 0.0078125, %v470_v10 }
 0x2a4   :  { %v476_v12 = vadd.f32 1e-12, %v474_v11 }
 0x2a6   :  { %6651 = vrsqrt.f32 %v476_v12  ;;  %v473_v13 = vpop.xlane.xlu1 %472 }
 0x2a7   :  { %v475_v15 = vmul.f32 0.0078125, %v473_v13 }
 0x2a9   :  { %v477_v16 = vadd.f32 1e-12, %v475_v15 }
 0x2ab   :  { %6653 = vrsqrt.f32 %v477_v16 }
 0x2b0   :  { %v6652_v17 = vpop.eup %6651 }
 0x2b1   :  { %v480_v20 = vmul.f32 %v6652_v17, %v7050_v14  ;;  %v546_v14 = vld [vmem:[%s8711_s9] sm:$0x7] }
 0x2b2   :  { %v551_v28 = vrot.slane %v546_v14, %v7037_v41  ;;  %v559_v34 = vrot.slane %v546_v14, %v7075_v29  ;;  %v555_v35 = vrot.slane %v546_v14, %v7078_v30 }
 0x2b3   :  { %v488_v22 = vmul.f32 %v4578_v19, %v480_v20 }
 0x2b5   :  { %v6654_v23 = vpop.eup %6653  ;;  %v496_v24 = vadd.f32 %v4579_v21, %v488_v22 }
 0x2b6   :  { %v481_v25 = vmul.f32 %v6654_v23, %v7055_v18 }
 0x2b7   :  { %628 = vmatmul.mubr.f32.vlgmr.msra.gmra.mrb[0].mxu1 %v496_v24  ;;  %5379 = vmatprep.mubr.f32.mxu0 %v496_v24 }
 0x2b8   :  { %633 = vmatprep.mubr.f32.mxu1 %v6847_v59  ;;  %v489_v26 = vmul.f32 %v4578_v19, %v481_v25 }
 0x2ba   :  { %v497_v27 = vadd.f32 %v4579_v21, %v489_v26 }
 0x2bc   :  { %634 = vmatmul.mubr.f32.gmra.mrb[2].mxu1 %v497_v27  ;;  %5380 = vmatmul.mubr.f32.vlgmr.msra.gmra.mrb[6].mxu0 %v497_v27 }
 0x38a   :  { %v629_v18 = vpop.f32.mrb[0].mxu1 }
 0x38b   :  { %v7080_v31 = vadd.f32 %v629_v18, %v551_v28  ;;  %v631_v32 = vpop.f32.mrb[1].mxu1 }
 0x38c   :  { %v632_v42 = vadd.f32 %v631_v32, %v555_v35 }
 0x38d   :  { %5386 = vmatprep.mubr.msk.f32.mxu1 %vm715_vm4, %v7080_v31 }
 0x38f   :  { %v635_v36 = vpop.f32.mrb[2].mxu1  ;;  %v5381_v37 = vpop.f32.mrb[6].mxu0 }
 0x390   :  { %v712_v38 = vadd.f32 %v5381_v37, %v559_v34  ;;  %v637_v39 = vpop.f32.mrb[3].mxu1  ;;  %v706_v40 = vpop.f32.mrb[7].mxu0  ;;  %v7107_v53 = vadd.f32 %v635_v36, %v551_v28 }
 0x391   :  { %v638_v43 = vadd.f32 %v637_v39, %v555_v35  ;;  %v707_v44 = vadd.f32 %v706_v40, %v559_v34 }
 0x393   :  { %v5939_v46 = vpack.c.bf16 %v638_v43, %v632_v42  ;;  %v5945_v48 = vpack.c.bf16 %v712_v38, %v707_v44  ;;  %v7092_v49 = vpack.i.bf16 %v638_v43, %v632_v42  ;;  %v7094_v51 = vpack.i.bf16 %v712_v38, %v707_v44 }
 0x395   :  { %5941 = vmatprep.subr.msk.bf16.mxu1 %vm7088_vm5, %v5939_v46 }
 0x396   :  { %5944 = vmatpush3.bf16.xpose.msk.msra.mxu1 %vm7088_vm5, %v5939_v46 }
 0x397   :  { %5947 = vmatprep.subr.msk.bf16.mxu1 %vm7097_vm7, %v5945_v48 }
 0x39d   :  { %5387 = vmatmul.mubr.msk.f32.vlgmr.msra.gmra.mrb[4].mxu1 %vm715_vm4, %v7107_v53 }
 0x39e   :  { %5950 = vmatpush3.bf16.msk.msra.mxu1 %vm7097_vm7, %v5945_v48 }
 0x470   :  { %v5388_v54 = vpop.f32.mrb[4].mxu1 }
 0x471   :  { %v804_v56 = vmul.f32 0.17677669, %v5388_v54  ;;  %v794_v57 = vpop.f32.mrb[5].mxu1 }
 0x472   :  { %v803_v60 = vmul.f32 0.17677669, %v794_v57 }
 0x473   :  { %v806_v61 = vadd.f32 %v804_v56, %v7116_v55 }
 0x474   :  { %v805_v62 = vadd.f32 %v803_v60, %v7121_v58 }
 0x475   :  { %v812_v63 = vsel %vm811_vm8, %v806_v61, -inf }
 0x476   :  { %813 = vmax.xlane.f32.xlu1 %v812_v63  ;;  %v808_v0 = vsel %vm807_vm9, %v805_v62, -inf }
 0x477   :  { %809 = vmax.xlane.f32.xlu0 %v808_v0 }
 0x503   :  { %v814_v1 = vpop.xlane.xlu1 %813 }
 0x504   :  { %v816_v2 = vsub.f32 %v806_v61, %v814_v1  ;;  %v810_v3 = vpop.xlane.xlu0 %809 }
 0x505   :  { %v815_v4 = vsub.f32 %v805_v62, %v810_v3 }
 0x506   :  { %v819_v5 = vmul.f32 1.442695, %v816_v2 }
 0x507   :  { %v817_v6 = vmul.f32 1.442695, %v815_v4 }
 0x508   :  { %6655 = vpow2.f32 %v819_v5 }
 0x509   :  { %6657 = vpow2.f32 %v817_v6 }
 0x512   :  { %v6656_v7 = vpop.eup %6655 }
 0x513   :  { %v6658_v8 = vpop.eup %6657  ;;  %v824_v9 = vsel %vm811_vm8, %v6656_v7, 0.0 }
 0x514   :  { %825 = vadd.xlane.f32.xlu1 %v824_v9  ;;  %v821_v10 = vsel %vm807_vm9, %v6658_v8, 0.0 }
 0x515   :  { %822 = vadd.xlane.f32.xlu0 %v821_v10 }
 0x525   :  { %915 = vrot.lane.b32.xlu1 %v7080_v31, %s6849_s1 }
 0x529   :  { %917 = vrot.lane.b32.xlu1 %v7107_v53, %s6849_s1 }
 0x52b   :  { %6562 = vrot.lane.b32.xlu0 %v7092_v49, %s6849_s1 }
 0x5a1   :  { %v826_v11 = vpop.xlane.xlu1 %825 }
 0x5a2   :  { %6659 = vrcp.f32 %v826_v11  ;;  %v823_v12 = vpop.xlane.xlu0 %822 }
 0x5a3   :  { %6661 = vrcp.f32 %v823_v12 }
 0x5a5   :  { %v916_v23 = vpop.permute.xlu1 %915 }
 0x5a6   :  { %v6563_v13 = vpop.permute.xlu0 %6562 }
 0x5a7   :  { %v6565_v15 = vunpack.i.h.bf16 %v6563_v13  ;;  %v6564_v16 = vunpack.i.l.bf16 %v6563_v13 }
 0x5a9   :  { %v5951_v17 = vpack.c.bf16 %v6565_v15, %v6564_v16  ;;  %v918_v24 = vpop.permute.xlu1 %917 }
 0x5ab   :  { %5953 = vmatprep.subr.msk.bf16.mxu1 %vm7088_vm5, %v5951_v17 }
 0x5ac   :  { %v6660_v19 = vpop.eup %6659 }
 0x5ad   :  { %v6662_v20 = vpop.eup %6661  ;;  %v830_v22 = vmul.f32 %v6660_v19, %v6656_v7 }
 0x5ae   :  { %v828_v21 = vmul.f32 %v6662_v20, %v6658_v8 }
 0x5b0   :  { %5393 = vmatprep.mubr.msk.f32.mxu1 %vm807_vm9, %v828_v21 }
 0x5b1   :  { %5394 = vmatmul.mubr.msk.f32.vlgmr.msra.gmra.mrb[6].mxu1 %vm807_vm9, %v830_v22 }
 0x5b2   :  { %5956 = vmatpush3.bf16.xpose.msk.msra.mxu1 %vm7088_vm5, %v5951_v17  ;;  %5400 = vmatprep.mubr.msk.f32.mxu1 %vm715_vm4, %v916_v23 }
 0x5b9   :  { %5401 = vmatmul.mubr.msk.f32.vlgmr.msra.gmra.mrb[8].mxu1 %vm715_vm4, %v918_v24 }
 0x684   :  { %v7143_v25 = vpop.f32.mrb[6].mxu1 }
 0x685   :  { %v7145_v26 = vpop.f32.mrb[7].mxu1 }
 0x68c   :  { %v5402_v27 = vpop.f32.mrb[8].mxu1 }
 0x68d   :  { %v1007_v14 = vmul.f32 0.17677669, %v5402_v27  ;;  %v997_v28 = vpop.f32.mrb[9].mxu1 }
 0x68e   :  { %v1006_v18 = vmul.f32 0.17677669, %v997_v28 }
 0x68f   :  { %v1009_v32 = vadd.f32 %v1007_v14, %v7116_v55 }
 0x690   :  { %v1008_v34 = vadd.f32 %v1006_v18, %v7121_v58 }
 0x691   :  { %v1013_v35 = vsel %vm811_vm8, %v1009_v32, -inf }
 0x692   :  { %1014 = vmax.xlane.f32.xlu0 %v1013_v35  ;;  %v1010_v36 = vsel %vm807_vm9, %v1008_v34, -inf }
 0x693   :  { %1011 = vmax.xlane.f32.xlu1 %v1010_v36 }
 0x6a4   :  { %6567 = vrot.lane.b32.xlu1 %v7094_v51, %s6849_s1 }
 0x6a8   :  { %6577 = vrot.lane.b32.xlu1 %v7092_v49, %s6850_s5 }
 0x6ac   :  { %1121 = vrot.lane.b32.xlu1 %v7080_v31, %s6851_s27 }
 0x6b0   :  { %1123 = vrot.lane.b32.xlu1 %v7107_v53, %s6851_s27 }
 0x6b4   :  { %1328 = vrot.lane.b32.xlu1 %v7107_v53, %s6850_s5 }
 0x71f   :  { %v1015_v37 = vpop.xlane.xlu0 %1014 }
 0x720   :  { %v1017_v38 = vsub.f32 %v1009_v32, %v1015_v37  ;;  %v1012_v39 = vpop.xlane.xlu1 %1011 }
 0x721   :  { %v1016_v40 = vsub.f32 %v1008_v34, %v1012_v39 }
 0x722   :  { %v1020_v42 = vmul.f32 1.442695, %v1017_v38 }
 0x723   :  { %v1018_v43 = vmul.f32 1.442695, %v1016_v40 }
 0x724   :  { %6663 = vpow2.f32 %v1020_v42  ;;  %v6568_v44 = vpop.permute.xlu1 %6567 }
 0x725   :  { %v6570_v46 = vunpack.i.h.bf16 %v6568_v44  ;;  %v6569_v48 = vunpack.i.l.bf16 %v6568_v44  ;;  %6665 = vpow2.f32 %v1018_v43 }
 0x727   :  { %v5957_v54 = vpack.c.bf16 %v6570_v46, %v6569_v48 }
 0x728   :  { %v6578_v3 = vpop.permute.xlu1 %6577 }
 0x729   :  { %5959 = vmatprep.subr.msk.bf16.mxu1 %vm7097_vm7, %v5957_v54  ;;  %v6580_v6 = vunpack.i.h.bf16 %v6578_v3  ;;  %v6579_v7 = vunpack.i.l.bf16 %v6578_v3 }
 0x72a   :  { %5962 = vmatpush3.bf16.msk.msra.mxu1 %vm7097_vm7, %v5957_v54 }
 0x72c   :  { %v1122_v9 = vpop.permute.xlu1 %1121 }
 0x72e   :  { %v6664_v56 = vpop.eup %6663 }
 0x72f   :  { %v1025_v53 = vsel %vm811_vm8, %v6664_v56, 0.0  ;;  %v6666_v57 = vpop.eup %6665 }
 0x730   :  { %1026 = vadd.xlane.f32.xlu0 %v1025_v53  ;;  %v1022_v60 = vsel %vm807_vm9, %v6666_v57, 0.0  ;;  %v1124_v10 = vpop.permute.xlu1 %1123 }
 0x734   :  { %1023 = vadd.xlane.f32.xlu0 %v1022_v60  ;;  %v1329_v12 = vpop.permute.xlu1 %1328 }
 0x74a   :  { %6572 = vrot.lane.b32.xlu0 %v7092_v49, %s6851_s27 }
 0x74e   :  { %1326 = vrot.lane.b32.xlu0 %v7080_v31, %s6850_s5  ;;  %v5975_v31 = vpack.c.bf16 %v6580_v6, %v6579_v7 }
 0x7bd   :  { %v1027_v61 = vpop.xlane.xlu0 %1026 }
 0x7be   :  { %6667 = vrcp.f32 %v1027_v61 }
 0x7c1   :  { %v1024_v62 = vpop.xlane.xlu0 %1023 }
 0x7c2   :  { %6669 = vrcp.f32 %v1024_v62 }
 0x7c5   :  { %v6573_v63 = vpop.permute.xlu0 %6572 }
 0x7c6   :  { %v6575_v0 = vunpack.i.h.bf16 %v6573_v63  ;;  %v6574_v1 = vunpack.i.l.bf16 %v6573_v63 }
 0x7c8   :  { %v5963_v2 = vpack.c.bf16 %v6575_v0, %v6574_v1  ;;  %v6668_v4 = vpop.eup %6667 }
 0x7c9   :  { %v1031_v8 = vmul.f32 %v6668_v4, %v6664_v56  ;;  %v1327_v11 = vpop.permute.xlu0 %1326 }
 0x7ca   :  { %5965 = vmatprep.subr.msk.bf16.mxu1 %vm7088_vm5, %v5963_v2 }
 0x7cc   :  { %v6670_v5 = vpop.eup %6669 }
 0x7cd   :  { %v1029_v49 = vmul.f32 %v6670_v5, %v6666_v57 }
 0x7cf   :  { %5407 = vmatprep.mubr.msk.f32.mxu1 %vm807_vm9, %v1029_v49 }
 0x7d0   :  { %5408 = vmatmul.mubr.msk.f32.vlgmr.msra.gmra.mrb[10].mxu1 %vm807_vm9, %v1031_v8 }
 0x7d1   :  { %5968 = vmatpush3.bf16.xpose.msk.msra.mxu1 %vm7088_vm5, %v5963_v2  ;;  %5414 = vmatprep.mubr.msk.f32.mxu1 %vm715_vm4, %v1122_v9 }
 0x7d2   :  { %5977 = vmatprep.subr.msk.bf16.mxu1 %vm7088_vm5, %v5975_v31 }
 0x7d8   :  { %5415 = vmatmul.mubr.msk.f32.vlgmr.msra.gmra.mrb[12].mxu1 %vm715_vm4, %v1124_v10 }
 0x7d9   :  { %5980 = vmatpush3.bf16.xpose.msk.msra.mxu1 %vm7088_vm5, %v5975_v31  ;;  %5428 = vmatprep.mubr.msk.f32.mxu1 %vm715_vm4, %v1327_v11 }
 0x7e0   :  { %5429 = vmatmul.mubr.msk.f32.vlgmr.msra.gmra.mrb[14].mxu1 %vm715_vm4, %v1329_v12 }
 0x7e1   :  { %1855 = vmatprep.mubr.f32.mxu1 %v6847_v59 }
 0x8a3   :  { %v5409_v13 = vpop.f32.mrb[10].mxu1 }
 0x8a4   :  { %v1112_v15 = vpop.f32.mrb[11].mxu1 }
 0x8a5   :  { %v6591_v16 = vpack.i.bf16 %v5409_v13, %v1112_v15 }
 0x8ab   :  { %v5416_v17 = vpop.f32.mrb[12].mxu1 }
 0x8ac   :  { %v1213_v19 = vmul.f32 0.17677669, %v5416_v17  ;;  %v1203_v20 = vpop.f32.mrb[13].mxu1 }
 0x8ad   :  { %v1212_v21 = vmul.f32 0.17677669, %v1203_v20 }
 0x8ae   :  { %v1215_v22 = vadd.f32 %v1213_v19, %v7116_v55 }
 0x8af   :  { %v1214_v23 = vadd.f32 %v1212_v21, %v7121_v58  ;;  %v1563_v21 = vld [vmem:[%s8712_s10] sm:$0xff] }
 0x8b0   :  { %v1219_v24 = vsel %vm811_vm8, %v1215_v22, -inf }
 0x8b1   :  { %1220 = vmax.xlane.f32.xlu1 %v1219_v24  ;;  %v1216_v27 = vsel %vm807_vm9, %v1214_v23, -inf }
 0x8b2   :  { %1217 = vmax.xlane.f32.xlu0 %v1216_v27  ;;  %v1566_v27 = vld [vmem:[%s8712_s10 + $0x18] sm:$0xff] }
 0x8b3   :  { %v5430_v14 = vpop.f32.mrb[14].mxu1 }
 0x8b4   :  { %v1408_v28 = vpop.f32.mrb[15].mxu1  ;;  %v1418_v18 = vmul.f32 0.17677669, %v5430_v14 }
 0x8b5   :  { %v1417_v32 = vmul.f32 0.17677669, %v1408_v28  ;;  %v1567_v28 = vld [vmem:[%s8712_s10 + $0x20] sm:$0xff] }
 0x8b6   :  { %v1420_v36 = vadd.f32 %v1418_v18, %v7116_v55  ;;  %v1568_v18 = vld [vmem:[%s8712_s10 + $0x28] sm:$0xff] }
 0x8b7   :  { %v1419_v34 = vadd.f32 %v1417_v32, %v7121_v58  ;;  %v5995_v32 = vpack.c.bf16 %v1568_v18, %v1567_v28  ;;  %v1711_v28 = vld [vmem:[%s8716_s14 + $0x30] sm:$0xff]  ;;  %v1714_v18 = vld [vmem:[%s8716_s14 + $0x48] sm:$0xff] }
 0x8b8   :  { %v1424_v37 = vsel %vm811_vm8, %v1420_v36, -inf }
 0x8b9   :  { %v1421_v35 = vsel %vm807_vm9, %v1419_v34, -inf }
 0x8ba   :  { %1422 = vmax.xlane.f32.xlu0 %v1421_v35  ;;  %v1570_v35 = vld [vmem:[%s8712_s10 + $0x38] sm:$0xff] }
 0x8be   :  { %1425 = vmax.xlane.f32.xlu0 %v1424_v37  ;;  %v1571_v37 = vld [vmem:[%s8712_s10 + $0x40] sm:$0xff] }
 0x93e   :  { %v1221_v38 = vpop.xlane.xlu1 %1220 }
 0x93f   :  { %v1223_v39 = vsub.f32 %v1215_v22, %v1221_v38  ;;  %v1218_v40 = vpop.xlane.xlu0 %1217  ;;  %v1564_v22 = vld [vmem:[%s8712_s10 + $0x8] sm:$0xff] }
 0x940   :  { %v1222_v42 = vsub.f32 %v1214_v23, %v1218_v40  ;;  %v1565_v23 = vld [vmem:[%s8712_s10 + $0x10] sm:$0xff]  ;;  %v5987_v24 = vpack.c.bf16 %v1564_v22, %v1563_v21  ;;  %v1572_v38 = vld [vmem:[%s8712_s10 + $0x48] sm:$0xff]  ;;  %v1712_v21 = vld [vmem:[%s8716_s14 + $0x38] sm:$0xff] }
 0x941   :  { %v1226_v43 = vmul.f32 1.442695, %v1223_v39  ;;  %v5991_v14 = vpack.c.bf16 %v1566_v27, %v1565_v23  ;;  %v6003_v39 = vpack.c.bf16 %v1572_v38, %v1571_v37  ;;  %v1573_v40 = vld [vmem:[%s8712_s10 + $0x50] sm:$0xff]  ;;  %v1705_v22 = vld [vmem:[%s8716_s14] sm:$0xff] }
 0x942   :  { %v1224_v44 = vmul.f32 1.442695, %v1222_v42  ;;  %v1574_v42 = vld [vmem:[%s8712_s10 + $0x58] sm:$0xff]  ;;  %v1709_v23 = vld [vmem:[%s8716_s14 + $0x20] sm:$0xff] }
 0x943   :  { %6671 = vpow2.f32 %v1226_v43  ;;  %v6007_v43 = vpack.c.bf16 %v1574_v42, %v1573_v40  ;;  %v6021_v27 = vpack.c.bf16 %v1709_v23, %v1705_v22  ;;  %v1717_v40 = vld [vmem:[%s8716_s14 + $0x60] sm:$0xff]  ;;  %v1715_v42 = vld [vmem:[%s8716_s14 + $0x50] sm:$0xff]  ;;  %v1744_v23 = vld [vmem:[%s8716_s14 + $0x138] sm:$0xff] }
 0x944   :  { %6673 = vpow2.f32 %v1224_v44  ;;  %v1575_v44 = vld [vmem:[%s8712_s10 + $0x60] sm:$0xff] }
 0x947   :  { %v1423_v46 = vpop.xlane.xlu0 %1422 }
 0x948   :  { %v1427_v48 = vsub.f32 %v1419_v34, %v1423_v46  ;;  %v1569_v34 = vld [vmem:[%s8712_s10 + $0x30] sm:$0xff]  ;;  %v1576_v46 = vld [vmem:[%s8712_s10 + $0x68] sm:$0xff] }
 0x94a   :  { %v1429_v54 = vmul.f32 1.442695, %v1427_v48  ;;  %v6011_v48 = vpack.c.bf16 %v1576_v46, %v1575_v44  ;;  %v1719_v44 = vld [vmem:[%s8716_s14 + $0x70] sm:$0xff]  ;;  %v1722_v46 = vld [vmem:[%s8716_s14 + $0x88] sm:$0xff] }
 0x94b   :  { %v1426_v58 = vpop.xlane.xlu0 %1425 }
 0x94c   :  { %6675 = vpow2.f32 %v1429_v54  ;;  %v1428_v56 = vsub.f32 %v1420_v36, %v1426_v58  ;;  %v5999_v36 = vpack.c.bf16 %v1570_v35, %v1569_v34  ;;  %v1577_v54 = vld [vmem:[%s8712_s10 + $0x70] sm:$0xff]  ;;  %v1578_v58 = vld [vmem:[%s8712_s10 + $0x78] sm:$0xff]  ;;  %v1718_v34 = vld [vmem:[%s8716_s14 + $0x68] sm:$0xff] }
 0x94d   :  { %v6672_v53 = vpop.eup %6671  ;;  %v1716_v35 = vld [vmem:[%s8716_s14 + $0x58] sm:$0xff]  ;;  %v6023_v37 = vpack.c.bf16 %v1718_v34, %v1714_v18  ;;  %v1739_v18 = vld [vmem:[%s8716_s14 + $0x110] sm:$0xff] }
 0x94e   :  { %v6674_v55 = vpop.eup %6673  ;;  %v1431_v57 = vmul.f32 1.442695, %v1428_v56  ;;  %v1231_v60 = vsel %vm811_vm8, %v6672_v53, 0.0  ;;  %v6015_v56 = vpack.c.bf16 %v1578_v58, %v1577_v54  ;;  %v6057_v54 = vpack.c.bf16 %v1719_v44, %v1715_v42  ;;  %v1749_v42 = vld [vmem:[%s8716_s14 + $0x160] sm:$0xff] }
 0x94f   :  { %1232 = vadd.xlane.f32.xlu1 %v1231_v60  ;;  %v1228_v61 = vsel %vm807_vm9, %v6674_v55, 0.0 }
 0x950   :  { %6677 = vpow2.f32 %v1431_v57  ;;  %1229 = vadd.xlane.f32.xlu0 %v1228_v61 }
 0x956   :  { %v6676_v62 = vpop.eup %6675 }
 0x957   :  { %v1433_v63 = vsel %vm807_vm9, %v6676_v62, 0.0 }
 0x958   :  { %1434 = vadd.xlane.f32.xlu0 %v1433_v63 }
 0x95a   :  { %v6678_v0 = vpop.eup %6677 }
 0x95b   :  { %v1436_v1 = vsel %vm811_vm8, %v6678_v0, 0.0 }
 0x95c   :  { %1437 = vadd.xlane.f32.xlu1 %v1436_v1 }
 0x96d   :  { %6587 = vrot.lane.b32.xlu1 %v7094_v51, %s6850_s5 }
 0x96e   :  { %6582 = vrot.lane.b32.xlu0 %v7094_v51, %s6851_s27 }
 0x971   :  { %6592 = vrot.lane.b32.xlu1 %v6591_v16, %s6850_s5 }
 0x9dc   :  { %v1233_v3 = vpop.xlane.xlu1 %1232 }
 0x9dd   :  { %v1230_v2 = vpop.xlane.xlu0 %1229 }
 0x9de   :  { %6679 = vrcp.f32 %v1230_v2 }
 0x9df   :  { %6681 = vrcp.f32 %v1233_v3 }
 0x9e5   :  { %v1435_v4 = vpop.xlane.xlu0 %1434 }
 0x9e6   :  { %6683 = vrcp.f32 %v1435_v4 }
 0x9e8   :  { %v6680_v5 = vpop.eup %6679 }
 0x9e9   :  { %v1438_v6 = vpop.xlane.xlu1 %1437  ;;  %v6583_v7 = vpop.permute.xlu0 %6582  ;;  %v1235_v49 = vmul.f32 %v6680_v5, %v6674_v55 }
 0x9ea   :  { %6685 = vrcp.f32 %v1438_v6  ;;  %v6585_v8 = vunpack.i.h.bf16 %v6583_v7  ;;  %v6584_v31 = vunpack.i.l.bf16 %v6583_v7  ;;  %v6682_v10 = vpop.eup %6681 }
 0x9eb   :  { %5421 = vmatprep.mubr.msk.f32.mxu0 %vm807_vm9, %v1235_v49  ;;  %v1237_v15 = vmul.f32 %v6682_v10, %v6672_v53 }
 0x9ec   :  { %v5969_v9 = vpack.c.bf16 %v6585_v8, %v6584_v31 }
 0x9ed   :  { %v6588_v51 = vpop.permute.xlu1 %6587 }
 0x9ee   :  { %v6590_v11 = vunpack.i.h.bf16 %v6588_v51  ;;  %v6589_v12 = vunpack.i.l.bf16 %v6588_v51  ;;  %5971 = vmatprep.subr.msk.bf16.mxu0 %vm7097_vm7, %v5969_v9 }
 0x9ef   :  { %5974 = vmatpush3.bf16.msk.msra.mxu0 %vm7097_vm7, %v5969_v9 }
 0x9f0   :  { %v6684_v13 = vpop.eup %6683  ;;  %v5981_v16 = vpack.c.bf16 %v6590_v11, %v6589_v12 }
 0x9f1   :  { %v1440_v17 = vmul.f32 %v6684_v13, %v6676_v62  ;;  %v6593_v63 = vpop.permute.xlu1 %6592 }
 0x9f2   :  { %5422 = vmatmul.mubr.msk.f32.vlgmr.msra.gmra.mrb[8].mxu0 %vm807_vm9, %v1237_v15  ;;  %5983 = vmatprep.subr.msk.bf16.mxu0 %vm7097_vm7, %v5981_v16  ;;  %v6595_v1 = vunpack.i.h.bf16 %v6593_v63  ;;  %v6594_v2 = vunpack.i.l.bf16 %v6593_v63 }
 0x9f3   :  { %5986 = vmatpush3.bf16.msk.msra.mxu0 %vm7097_vm7, %v5981_v16  ;;  %5435 = vmatprep.mubr.msk.f32.mxu0 %vm807_vm9, %v1440_v17 }
 0x9f4   :  { %v6686_v19 = vpop.eup %6685  ;;  %5988 = vmatprep.subr.bf16.mxu0 %v5987_v24  ;;  %v1556_v6 = vsel %vm715_vm4, %v7143_v25, %v6595_v1  ;;  %v1555_v8 = vsel %vm715_vm4, %v7145_v26, %v6594_v2  ;;  %v4608_v25 = vld [vmem:[%s8713_s11] ss:$0 sm:$0xff] }
 0x9f5   :  { %v1442_v20 = vmul.f32 %v6686_v19, %v6678_v0  ;;  %v1706_v19 = vld [vmem:[%s8716_s14 + $0x8] sm:$0xff] }
 0x9f7   :  { %5436 = vmatmul.mubr.msk.f32.vlgmr.msra.gmra.mrb[10].mxu0 %vm807_vm9, %v1442_v20  ;;  %v1710_v20 = vld [vmem:[%s8716_s14 + $0x28] sm:$0xff] }
 0x9f8   :  { %5990 = vmatpush3.bf16.msra.mxu0 %v5987_v24 }
 0x9f9   :  { %5992 = vmatprep.subr.bf16.mxu0 %v5991_v14 }
 0x9fc   :  { %5994 = vmatpush3.bf16.msra.mxu0 %v5991_v14  ;;  %v1707_v14 = vld [vmem:[%s8716_s14 + $0x10] sm:$0xff] }
 0x9fd   :  { %5996 = vmatprep.subr.bf16.mxu0 %v5995_v32 }
 0xa00   :  { %5998 = vmatpush3.bf16.msra.mxu0 %v5995_v32  ;;  %v6053_v32 = vpack.c.bf16 %v1711_v28, %v1707_v14 }
 0xa01   :  { %6000 = vmatprep.subr.bf16.mxu0 %v5999_v36 }
 0xa04   :  { %6002 = vmatpush3.bf16.msra.mxu0 %v5999_v36  ;;  %v1720_v36 = vld [vmem:[%s8716_s14 + $0x78] sm:$0xff] }
 0xa05   :  { %6004 = vmatprep.subr.bf16.mxu0 %v6003_v39  ;;  %v6055_v38 = vpack.c.bf16 %v1720_v36, %v1716_v35  ;;  %v1746_v35 = vld [vmem:[%s8716_s14 + $0x148] sm:$0xff] }
 0xa06   :  { %v1750_v36 = vld [vmem:[%s8716_s14 + $0x168] sm:$0xff] }
 0xa08   :  { %6006 = vmatpush3.bf16.msra.mxu0 %v6003_v39  ;;  %v1713_v39 = vld [vmem:[%s8716_s14 + $0x40] sm:$0xff] }
 0xa09   :  { %6008 = vmatprep.subr.bf16.mxu0 %v6007_v43 }
 0xa0c   :  { %6010 = vmatpush3.bf16.msra.mxu0 %v6007_v43  ;;  %v6025_v43 = vpack.c.bf16 %v1717_v40, %v1713_v39  ;;  %v1752_v39 = vld [vmem:[%s8716_s14 + $0x178] sm:$0xff]  ;;  %v1745_v40 = vld [vmem:[%s8716_s14 + $0x140] sm:$0xff] }
 0xa0d   :  { %6012 = vmatprep.subr.bf16.mxu0 %v6011_v48  ;;  %v6041_v44 = vpack.c.bf16 %v1749_v42, %v1745_v40  ;;  %v2035_v40 = vld [vmem:[%s8718_s16 + $0x190] sm:$0xff]  ;;  %v2036_v42 = vld [vmem:[%s8718_s16 + $0x198] sm:$0xff] }
 0xa10   :  { %6014 = vmatpush3.bf16.msra.mxu0 %v6011_v48  ;;  %v1726_v48 = vld [vmem:[%s8716_s14 + $0xa8] sm:$0xff] }
 0xa11   :  { %6016 = vmatprep.subr.bf16.mxu0 %v6015_v56  ;;  %v6027_v58 = vpack.c.bf16 %v1726_v48, %v1722_v46  ;;  %v1747_v46 = vld [vmem:[%s8716_s14 + $0x150] sm:$0xff] }
 0xa12   :  { %v1751_v48 = vld [vmem:[%s8716_s14 + $0x170] sm:$0xff] }
 0xa14   :  { %6018 = vmatpush3.bf16.msra.mxu0 %v6015_v56  ;;  %v1724_v56 = vld [vmem:[%s8716_s14 + $0x98] sm:$0xff] }
 0xac5   :  { %v5423_v53 = vpop.f32.mrb[8].mxu0 }
 0xac6   :  { %v1317_v55 = vpop.f32.mrb[9].mxu0 }
 0xac7   :  { %v6596_v57 = vpack.i.bf16 %v5423_v53, %v1317_v55  ;;  %v1728_v53 = vld [vmem:[%s8716_s14 + $0xb8] sm:$0xff]  ;;  %v1721_v55 = vld [vmem:[%s8716_s14 + $0x80] sm:$0xff] }
 0xac9   :  { %6597 = vrot.lane.b32.xlu1 %v6596_v57, %s6851_s27  ;;  %v6059_v57 = vpack.c.bf16 %v1728_v53, %v1724_v56  ;;  %v1758_v56 = vld [vmem:[%s8716_s14 + $0x1a8] sm:$0xff]  ;;  %v1756_v53 = vld [vmem:[%s8716_s14 + $0x198] sm:$0xff] }
 0xaca   :  { %v5437_v60 = vpop.f32.mrb[10].mxu0 }
 0xacb   :  { %v1522_v61 = vpop.f32.mrb[11].mxu0 }
 0xacc   :  { %v6601_v62 = vpack.i.bf16 %v5437_v60, %v1522_v61  ;;  %v1725_v60 = vld [vmem:[%s8716_s14 + $0xa0] sm:$0xff]  ;;  %v1723_v61 = vld [vmem:[%s8716_s14 + $0x90] sm:$0xff] }
 0xacd   :  { %v6029_v63 = vpack.c.bf16 %v1725_v60, %v1721_v55  ;;  %v1760_v55 = vld [vmem:[%s8716_s14 + $0x1b8] sm:$0xff] }
 0xace   :  { %6602 = vrot.lane.b32.xlu0 %v6601_v62, %s6849_s1  ;;  %v1727_v62 = vld [vmem:[%s8716_s14 + $0xb0] sm:$0xff]  ;;  %v6075_v60 = vpack.c.bf16 %v1760_v55, %v1756_v53  ;;  %v6119_v55 = vpack.c.bf16 %v2036_v42, %v2035_v40 }
 0xacf   :  { %v2043_v40 = vld [vmem:[%s8718_s16 + $0x1d0] sm:$0xff] }
 0xb3b   :  { %v6598_v0 = vpop.permute.xlu1 %6597 }
 0xb3c   :  { %v6600_v3 = vunpack.i.h.bf16 %v6598_v0  ;;  %v6599_v4 = vunpack.i.l.bf16 %v6598_v0  ;;  %v6061_v0 = vpack.c.bf16 %v1727_v62, %v1723_v61  ;;  %v1753_v61 = vld [vmem:[%s8716_s14 + $0x180] sm:$0xff] }
 0xb3d   :  { %v1757_v62 = vld [vmem:[%s8716_s14 + $0x1a0] sm:$0xff] }
 0xb3e   :  { %v1558_v31 = vsel %vm1557_vm10, %v1555_v8, %v6599_v4  ;;  %v1559_v9 = vsel %vm1557_vm10, %v1556_v6, %v6600_v3 }
 0xb40   :  { %v6603_v5 = vpop.permute.xlu0 %6602 }
 0xb41   :  { %v6605_v7 = vunpack.i.h.bf16 %v6603_v5  ;;  %v6604_v49 = vunpack.i.l.bf16 %v6603_v5 }
 0xb43   :  { %v1561_v10 = vsel %vm1560_vm11, %v1558_v31, %v6604_v49  ;;  %v1562_v51 = vsel %vm1560_vm11, %v1559_v9, %v6605_v7  ;;  %v1730_v31 = vld [vmem:[%s8716_s14 + $0xc8] sm:$0xff] }
 0xb44   :  { %5470 = vmatprep.mubr.f32.mxu0 %v1561_v10  ;;  %v1734_v9 = vld [vmem:[%s8716_s14 + $0xe8] sm:$0xff]  ;;  %v1732_v10 = vld [vmem:[%s8716_s14 + $0xd8] sm:$0xff] }
 0xb45   :  { %5471 = vmatmul.mubr.f32.vlgmr.msra.gmra.mrb[12].mxu0 %v1562_v51  ;;  %v6031_v51 = vpack.c.bf16 %v1734_v9, %v1730_v31  ;;  %v1761_v31 = vld [vmem:[%s8716_s14 + $0x1c0] sm:$0xff] }
 0xb46   :  { %1932 = vmatprep.mubr.f32.mxu0 %v6847_v59 }
 0xc18   :  { %v5472_v11 = vpop.f32.mrb[12].mxu0 }
 0xc19   :  { %v1658_v12 = vadd.f32 %v5472_v11, %v4608_v25  ;;  %v1652_v13 = vpop.f32.mrb[13].mxu0  ;;  %v1729_v11 = vld [vmem:[%s8716_s14 + $0xc0] sm:$0xff] }
 0xc1a   :  { %v1653_v26 = vadd.f32 %v4608_v25, %v1652_v13  ;;  %v1736_v25 = vld [vmem:[%s8716_s14 + $0xf8] sm:$0xff] }
 0xc1b   :  { %v7278_v15 = vadd.f32 %v1658_v12, %v7040_v47  ;;  %v1708_v47 = vld [vmem:[%s8716_s14 + $0x18] sm:$0xff]  ;;  %v1733_v12 = vld [vmem:[%s8716_s14 + $0xe0] sm:$0xff]  ;;  %v6063_v13 = vpack.c.bf16 %v1736_v25, %v1732_v10  ;;  %v1767_v25 = vld [vmem:[%s8716_s14 + $0x1f0] sm:$0xff] }
 0xc1c   :  { %v7281_v16 = vadd.f32 %v1653_v26, %v7044_v50  ;;  %v6019_v50 = vpack.c.bf16 %v1710_v20, %v1706_v19  ;;  %v6051_v24 = vpack.c.bf16 %v1712_v21, %v1708_v47  ;;  %v6033_v26 = vpack.c.bf16 %v1733_v12, %v1729_v11  ;;  %v1735_v19 = vld [vmem:[%s8716_s14 + $0xf0] sm:$0xff]  ;;  %v1738_v47 = vld [vmem:[%s8716_s14 + $0x108] sm:$0xff]  ;;  %v1740_v21 = vld [vmem:[%s8716_s14 + $0x118] sm:$0xff] }
 0xc1d   :  { %v1667_v17 = vsel %vm458_vm3, %v7278_v15, 0.0  ;;  %v6067_v14 = vpack.c.bf16 %v1744_v23, %v1740_v21  ;;  %v1765_v10 = vld [vmem:[%s8716_s14 + $0x1e0] sm:$0xff] }
 0xc1e   :  { %1668 = vadd.xlane.f32.xlu0 %v1667_v17  ;;  %1665 = vadd.xlane.f32.xlu1 %v7281_v16  ;;  %v1731_v17 = vld [vmem:[%s8716_s14 + $0xd0] sm:$0xff]  ;;  %v6049_v11 = vpack.c.bf16 %v1765_v10, %v1761_v31  ;;  %v2021_v31 = vld [vmem:[%s8718_s16 + $0x120] sm:$0xff] }
 0xc1f   :  { %6020 = vmatprep.subr.bf16.mxu1 %v6019_v50  ;;  %6052 = vmatprep.subr.bf16.mxu0 %v6051_v24  ;;  %v6065_v20 = vpack.c.bf16 %v1735_v19, %v1731_v17  ;;  %v1742_v50 = vld [vmem:[%s8716_s14 + $0x128] sm:$0xff]  ;;  %v1737_v24 = vld [vmem:[%s8716_s14 + $0x100] sm:$0xff] }
 0xc20   :  { %6022 = vmatpush1.bf16.msra.mxu1 %v6021_v27  ;;  %6054 = vmatpush1.bf16.msra.mxu0 %v6053_v32  ;;  %v6035_v22 = vpack.c.bf16 %v1742_v50, %v1738_v47  ;;  %v1741_v27 = vld [vmem:[%s8716_s14 + $0x120] sm:$0xff]  ;;  %v1743_v32 = vld [vmem:[%s8716_s14 + $0x130] sm:$0xff] }
 0xc21   :  { %6024 = vmatprep.subr.bf16.mxu1 %v6023_v37  ;;  %6056 = vmatprep.subr.bf16.mxu0 %v6055_v38  ;;  %v6037_v28 = vpack.c.bf16 %v1741_v27, %v1737_v24  ;;  %v6069_v34 = vpack.c.bf16 %v1743_v32, %v1739_v18  ;;  %v1748_v37 = vld [vmem:[%s8716_s14 + $0x158] sm:$0xff]  ;;  %v6039_v38 = vpack.c.bf16 %v1750_v36, %v1746_v35  ;;  %v2033_v17 = vld [vmem:[%s8718_s16 + $0x180] sm:$0xff]  ;;  %v1986_v35 = vld [vmem:[%s8718_s16 + $0x8] sm:$0xff] }
 0xc22   :  { %v4610_v18 = vld [vmem:[%s8715_s13] ss:$0 sm:$0xff] }
 0xc23   :  { %v2017_v36 = vld [vmem:[%s8718_s16 + $0x100] sm:$0xff] }
 0xc24   :  { %6026 = vmatpush1.bf16.msra.mxu1 %v6025_v43  ;;  %6058 = vmatpush1.bf16.msra.mxu0 %v6057_v54  ;;  %v6071_v43 = vpack.c.bf16 %v1752_v39, %v1748_v37  ;;  %v1754_v54 = vld [vmem:[%s8716_s14 + $0x188] sm:$0xff]  ;;  %v2004_v39 = vld [vmem:[%s8718_s16 + $0x98] sm:$0xff] }
 0xc25   :  { %6028 = vmatprep.subr.bf16.mxu1 %v6027_v58  ;;  %6060 = vmatprep.subr.bf16.mxu0 %v6059_v57  ;;  %v6073_v58 = vpack.c.bf16 %v1751_v48, %v1747_v46  ;;  %v6043_v57 = vpack.c.bf16 %v1758_v56, %v1754_v54  ;;  %v2018_v37 = vld [vmem:[%s8718_s16 + $0x108] sm:$0xff]  ;;  %v1988_v56 = vld [vmem:[%s8718_s16 + $0x18] sm:$0xff] }
 0xc26   :  { %v6117_v54 = vpack.c.bf16 %v2018_v37, %v2017_v36  ;;  %v2025_v36 = vld [vmem:[%s8718_s16 + $0x140] sm:$0xff]  ;;  %v2026_v37 = vld [vmem:[%s8718_s16 + $0x148] sm:$0xff] }
 0xc28   :  { %6030 = vmatpush1.bf16.msra.mxu1 %v6029_v63  ;;  %6062 = vmatpush1.bf16.msra.mxu0 %v6061_v0  ;;  %v1755_v63 = vld [vmem:[%s8716_s14 + $0x190] sm:$0xff]  ;;  %v6045_v0 = vpack.c.bf16 %v1757_v62, %v1753_v61  ;;  %v2006_v62 = vld [vmem:[%s8718_s16 + $0xa8] sm:$0xff] }
 0xc29   :  { %6032 = vmatprep.subr.bf16.mxu1 %v6031_v51  ;;  %6064 = vmatprep.subr.bf16.mxu0 %v6063_v13  ;;  %v1763_v51 = vld [vmem:[%s8716_s14 + $0x1d0] sm:$0xff]  ;;  %v2001_v13 = vld [vmem:[%s8718_s16 + $0x80] sm:$0xff] }
 0xc2a   :  { %v6081_v12 = vpack.c.bf16 %v1767_v25, %v1763_v51  ;;  %v2007_v25 = vld [vmem:[%s8718_s16 + $0xb0] sm:$0xff] }
 0xc2c   :  { %6034 = vmatpush1.bf16.msra.mxu1 %v6033_v26  ;;  %6066 = vmatpush1.bf16.msra.mxu0 %v6065_v20  ;;  %v2002_v26 = vld [vmem:[%s8718_s16 + $0x88] sm:$0xff] }
 0xc2d   :  { %6036 = vmatprep.subr.bf16.mxu1 %v6035_v22  ;;  %6068 = vmatprep.subr.bf16.mxu0 %v6067_v14  ;;  %v6083_v19 = vpack.c.bf16 %v2002_v26, %v2001_v13  ;;  %v2034_v20 = vld [vmem:[%s8718_s16 + $0x188] sm:$0xff]  ;;  %v2040_v26 = vld [vmem:[%s8718_s16 + $0x1b8] sm:$0xff] }
 0xc2e   :  { %v6115_v47 = vpack.c.bf16 %v2034_v20, %v2033_v17  ;;  %v1991_v17 = vld [vmem:[%s8718_s16 + $0x30] sm:$0xff] }
 0xc30   :  { %6038 = vmatpush1.bf16.msra.mxu1 %v6037_v28  ;;  %6070 = vmatpush1.bf16.msra.mxu0 %v6069_v34  ;;  %v4609_v28 = vld [vmem:[%s8714_s12] ss:$0 sm:$0xff] }
 0xc31   :  { %6040 = vmatprep.subr.bf16.mxu1 %v6039_v38  ;;  %6072 = vmatprep.subr.bf16.mxu0 %v6071_v43  ;;  %v1985_v34 = vld [vmem:[%s8718_s16] sm:$0xff] }
 0xc32   :  { %v6085_v48 = vpack.c.bf16 %v1986_v35, %v1985_v34 }
 0xc34   :  { %6042 = vmatpush1.bf16.msra.mxu1 %v6041_v44  ;;  %6074 = vmatpush1.bf16.msra.mxu0 %v6073_v58  ;;  %v1987_v58 = vld [vmem:[%s8718_s16 + $0x10] sm:$0xff] }
 0xc35   :  { %6044 = vmatprep.subr.bf16.mxu1 %v6043_v57  ;;  %6076 = vmatprep.subr.bf16.mxu0 %v6075_v60  ;;  %v2019_v57 = vld [vmem:[%s8718_s16 + $0x110] sm:$0xff]  ;;  %v2005_v60 = vld [vmem:[%s8718_s16 + $0xa0] sm:$0xff] }
 0xc38   :  { %6046 = vmatpush1.bf16.msra.mxu1 %v6045_v0  ;;  %v2038_v0 = vld [vmem:[%s8718_s16 + $0x1a8] sm:$0xff] }
 0xcab   :  { %v1669_v1 = vpop.xlane.xlu0 %1668  ;;  %v1666_v2 = vpop.xlane.xlu1 %1665 }
 0xcac   :  { %v1671_v3 = vmul.f32 0.0078125, %v1669_v1  ;;  %v1670_v4 = vmul.f32 0.0078125, %v1666_v2  ;;  %v1759_v1 = vld [vmem:[%s8716_s14 + $0x1b0] sm:$0xff]  ;;  %v1762_v2 = vld [vmem:[%s8716_s14 + $0x1c8] sm:$0xff] }
 0xcae   :  { %v7359_v5 = vsub.f32 %v7278_v15, %v1671_v3  ;;  %v7362_v6 = vsub.f32 %v7281_v16, %v1670_v4  ;;  %v1766_v3 = vld [vmem:[%s8716_s14 + $0x1e8] sm:$0xff]  ;;  %v6077_v4 = vpack.c.bf16 %v1759_v1, %v1755_v63  ;;  %v2037_v63 = vld [vmem:[%s8718_s16 + $0x1a0] sm:$0xff] }
 0xcb0   :  { %v1674_v7 = vmul.f32 %v7362_v6, %v7362_v6  ;;  %v1675_v49 = vmul.f32 %v7359_v5, %v7359_v5  ;;  %6078 = vmatpush1.bf16.msra.mxu0 %v6077_v4  ;;  %v1989_v4 = vld [vmem:[%s8718_s16 + $0x20] sm:$0xff] }
 0xcb2   :  { %1676 = vadd.xlane.f32.xlu0 %v1674_v7  ;;  %v1678_v8 = vsel %vm458_vm3, %v1675_v49, 0.0  ;;  %v6047_v7 = vpack.c.bf16 %v1766_v3, %v1762_v2  ;;  %v1764_v49 = vld [vmem:[%s8716_s14 + $0x1d8] sm:$0xff]  ;;  %v6089_v2 = vpack.c.bf16 %v1988_v56, %v1987_v58  ;;  %v2027_v58 = vld [vmem:[%s8718_s16 + $0x150] sm:$0xff] }
 0xcb3   :  { %v2028_v56 = vld [vmem:[%s8718_s16 + $0x158] sm:$0xff] }
 0xcb4   :  { %6048 = vmatprep.subr.bf16.mxu1 %v6047_v7  ;;  %v6091_v7 = vpack.c.bf16 %v2006_v62, %v2005_v60  ;;  %v1997_v62 = vld [vmem:[%s8718_s16 + $0x60] sm:$0xff] }
 0xcb5   :  { %6050 = vmatpush1.bf16.msra.mxu1 %v6049_v11  ;;  %v2008_v11 = vld [vmem:[%s8718_s16 + $0xb8] sm:$0xff] }
 0xcb6   :  { %1679 = vadd.xlane.f32.xlu0 %v1678_v8  ;;  %v1768_v8 = vld [vmem:[%s8716_s14 + $0x1f8] sm:$0xff]  ;;  %6084 = vmatprep.subr.bf16.mxu1 %v6083_v19  ;;  %v6095_v13 = vpack.c.bf16 %v2008_v11, %v2007_v25 }
 0xcb7   :  { %v6079_v9 = vpack.c.bf16 %v1768_v8, %v1764_v49  ;;  %v6123_v49 = vpack.c.bf16 %v2038_v0, %v2037_v63  ;;  %v1990_v8 = vld [vmem:[%s8718_s16 + $0x28] sm:$0xff]  ;;  %v1992_v19 = vld [vmem:[%s8718_s16 + $0x38] sm:$0xff] }
 0xcb8   :  { %v6093_v10 = vpack.c.bf16 %v1990_v8, %v1989_v4  ;;  %v1998_v63 = vld [vmem:[%s8718_s16 + $0x68] sm:$0xff]  ;;  %v2047_v8 = vld [vmem:[%s8718_s16 + $0x1f0] sm:$0xff] }
 0xcb9   :  { %6080 = vmatprep.subr.bf16.mxu0 %v6079_v9  ;;  %v2022_v9 = vld [vmem:[%s8718_s16 + $0x128] sm:$0xff] }
 0xcba   :  { %6082 = vmatpush1.bf16.msra.mxu0 %v6081_v12  ;;  %v6125_v51 = vpack.c.bf16 %v2022_v9, %v2021_v31  ;;  %v2039_v12 = vld [vmem:[%s8718_s16 + $0x1b0] sm:$0xff]  ;;  %v2048_v9 = vld [vmem:[%s8718_s16 + $0x1f8] sm:$0xff] }
 0xcbb   :  { %6116 = vmatprep.subr.bf16.mxu0 %v6115_v47  ;;  %v6127_v20 = vpack.c.bf16 %v2040_v26, %v2039_v12  ;;  %v6097_v47 = vpack.c.bf16 %v1992_v19, %v1991_v17  ;;  %v6143_v25 = vpack.c.bf16 %v2048_v9, %v2047_v8  ;;  %v2031_v12 = vld [vmem:[%s8718_s16 + $0x170] sm:$0xff]  ;;  %v1769_v17 = vld [vmem:[%s8717_s15] sm:$0xf]  ;;  %v1785_v19 = vsub.s32 3, %v7028_v33 }
 0xd3f   :  { %v1677_v50 = vpop.xlane.xlu0 %1676 }
 0xd40   :  { %v1681_v21 = vmul.f32 0.0078125, %v1677_v50  ;;  %v2023_v50 = vld [vmem:[%s8718_s16 + $0x130] sm:$0xff] }
 0xd42   :  { %v1683_v22 = vadd.f32 1e-12, %v1681_v21  ;;  %v2024_v21 = vld [vmem:[%s8718_s16 + $0x138] sm:$0xff] }
 0xd43   :  { %v1680_v23 = vpop.xlane.xlu0 %1679 }
 0xd44   :  { %6687 = vrsqrt.f32 %v1683_v22  ;;  %v1682_v24 = vmul.f32 0.0078125, %v1680_v23  ;;  %v6129_v22 = vpack.c.bf16 %v2024_v21, %v2023_v50  ;;  %v2009_v23 = vld [vmem:[%s8718_s16 + $0xc0] sm:$0xff]  ;;  %v1778_v50 = vrot.slane %v1769_v17, %v7078_v30 }
 0xd45   :  { %v1786_v21 = vrot.slane %v1769_v17, %v1785_v19 }
 0xd46   :  { %v1684_v27 = vadd.f32 1e-12, %v1682_v24  ;;  %v2010_v24 = vld [vmem:[%s8718_s16 + $0xc8] sm:$0xff] }
 0xd48   :  { %6689 = vrsqrt.f32 %v1684_v27  ;;  %v2041_v27 = vld [vmem:[%s8718_s16 + $0x1c0] sm:$0xff] }
 0xd4e   :  { %v6688_v14 = vpop.eup %6687 }
 0xd4f   :  { %v1687_v32 = vmul.f32 %v6688_v14, %v7362_v6  ;;  %v2003_v6 = vld [vmem:[%s8718_s16 + $0x90] sm:$0xff]  ;;  %v6099_v14 = vpack.c.bf16 %v2010_v24, %v2009_v23 }
 0xd50   :  { %v6087_v53 = vpack.c.bf16 %v2004_v39, %v2003_v6  ;;  %v6133_v6 = vpack.c.bf16 %v2026_v37, %v2025_v36  ;;  %v2012_v39 = vld [vmem:[%s8718_s16 + $0xd8] sm:$0xff] }
 0xd51   :  { %v1695_v38 = vmul.f32 %v4609_v28, %v1687_v32  ;;  %v1994_v32 = vld [vmem:[%s8718_s16 + $0x48] sm:$0xff] }
 0xd52   :  { %v6690_v43 = vpop.eup %6689 }
 0xd53   :  { %v1703_v44 = vadd.f32 %v4610_v18, %v1695_v38  ;;  %v1688_v46 = vmul.f32 %v6690_v43, %v7359_v5  ;;  %v2020_v5 = vld [vmem:[%s8718_s16 + $0x118] sm:$0xff]  ;;  %v2011_v38 = vld [vmem:[%s8718_s16 + $0xd0] sm:$0xff] }
 0xd54   :  { %v6121_v3 = vpack.c.bf16 %v2020_v5, %v2019_v57  ;;  %v6103_v42 = vpack.c.bf16 %v2012_v39, %v2011_v38  ;;  %v2044_v43 = vld [vmem:[%s8718_s16 + $0x1d8] sm:$0xff]  ;;  %v2014_v57 = vld [vmem:[%s8718_s16 + $0xe8] sm:$0xff]  ;;  %v2045_v5 = vld [vmem:[%s8718_s16 + $0x1e0] sm:$0xff] }
 0xd55   :  { %1856 = vmatmul.mubr.f32.vlgmr.msra.gmra.mrb[16].mxu1 %v1703_v44  ;;  %1933 = vmatmul.mubr.f32.vlgmr.msra.gmra.mrb[14].mxu0 %v1703_v44  ;;  %v1696_v61 = vmul.f32 %v4609_v28, %v1688_v46  ;;  %v2042_v28 = vld [vmem:[%s8718_s16 + $0x1c8] sm:$0xff]  ;;  %v1995_v44 = vld [vmem:[%s8718_s16 + $0x50] sm:$0xff]  ;;  %v1996_v46 = vld [vmem:[%s8718_s16 + $0x58] sm:$0xff] }
 0xd56   :  { %1861 = vmatprep.mubr.f32.mxu1 %v6847_v59  ;;  %1938 = vmatprep.mubr.f32.mxu0 %v6847_v59  ;;  %v6131_v34 = vpack.c.bf16 %v2042_v28, %v2041_v27 }
 0xd57   :  { %v1704_v1 = vadd.f32 %v4610_v18, %v1696_v61  ;;  %6086 = vmatpush3.bf16.msra.mxu1 %v6085_v48  ;;  %6118 = vmatpush3.bf16.msra.mxu0 %v6117_v54  ;;  %v1993_v18 = vld [vmem:[%s8718_s16 + $0x40] sm:$0xff]  ;;  %v6135_v48 = vpack.c.bf16 %v2044_v43, %v2043_v40  ;;  %v6105_v54 = vpack.c.bf16 %v1996_v46, %v1995_v44  ;;  %v2046_v61 = vld [vmem:[%s8718_s16 + $0x1e8] sm:$0xff] }
 0xd58   :  { %6088 = vmatprep.subr.bf16.mxu1 %v6087_v53  ;;  %6120 = vmatprep.subr.bf16.mxu0 %v6119_v55  ;;  %v6101_v35 = vpack.c.bf16 %v1994_v32, %v1993_v18  ;;  %v6137_v53 = vpack.c.bf16 %v2028_v56, %v2027_v58  ;;  %v2013_v55 = vld [vmem:[%s8718_s16 + $0xe0] sm:$0xff]  ;;  %v6139_v0 = vpack.c.bf16 %v2046_v61, %v2045_v5 }
 0xd59   :  { %1862 = vmatmul.mubr.f32.gmra.mrb[18].mxu1 %v1704_v1  ;;  %1939 = vmatmul.mubr.f32.gmra.mrb[16].mxu0 %v1704_v1  ;;  %v6107_v60 = vpack.c.bf16 %v2014_v57, %v2013_v55  ;;  %v6109_v1 = vpack.c.bf16 %v1998_v63, %v1997_v62 }
 0xd5b   :  { %6090 = vmatpush3.bf16.msra.mxu1 %v6089_v2  ;;  %6122 = vmatpush3.bf16.msra.mxu0 %v6121_v3  ;;  %v2029_v2 = vld [vmem:[%s8718_s16 + $0x160] sm:$0xff]  ;;  %v2030_v3 = vld [vmem:[%s8718_s16 + $0x168] sm:$0xff] }
 0xd5c   :  { %6092 = vmatprep.subr.bf16.mxu1 %v6091_v7  ;;  %6124 = vmatprep.subr.bf16.mxu0 %v6123_v49  ;;  %v6141_v4 = vpack.c.bf16 %v2030_v3, %v2029_v2  ;;  %v2015_v7 = vld [vmem:[%s8718_s16 + $0xf0] sm:$0xff]  ;;  %v2016_v49 = vld [vmem:[%s8718_s16 + $0xf8] sm:$0xff] }
 0xd5d   :  { %v6111_v31 = vpack.c.bf16 %v2016_v49, %v2015_v7 }
 0xd5f   :  { %6094 = vmatpush3.bf16.msra.mxu1 %v6093_v10  ;;  %6126 = vmatpush3.bf16.msra.mxu0 %v6125_v51  ;;  %v1999_v10 = vld [vmem:[%s8718_s16 + $0x70] sm:$0xff]  ;;  %v2000_v51 = vld [vmem:[%s8718_s16 + $0x78] sm:$0xff] }
 0xd60   :  { %6096 = vmatprep.subr.bf16.mxu1 %v6095_v13  ;;  %6128 = vmatprep.subr.bf16.mxu0 %v6127_v20  ;;  %v6113_v11 = vpack.c.bf16 %v2000_v51, %v1999_v10  ;;  %v2032_v13 = vld [vmem:[%s8718_s16 + $0x178] sm:$0xff]  ;;  %v1774_v20 = vrot.slane %v1769_v17, %v7037_v41 }
 0xd61   :  { %v6145_v26 = vpack.c.bf16 %v2032_v13, %v2031_v12 }
 0xd63   :  { %6098 = vmatpush3.bf16.msra.mxu1 %v6097_v47  ;;  %6130 = vmatpush3.bf16.msra.mxu0 %v6129_v22  ;;  %v1782_v47 = vrot.slane %v1769_v17, %v7075_v29 }
 0xd64   :  { %6100 = vmatprep.subr.bf16.mxu1 %v6099_v14  ;;  %6132 = vmatprep.subr.bf16.mxu0 %v6131_v34 }
 0xd67   :  { %6102 = vmatpush3.bf16.msra.mxu1 %v6101_v35  ;;  %6134 = vmatpush3.bf16.msra.mxu0 %v6133_v6 }
 0xd68   :  { %6104 = vmatprep.subr.bf16.mxu1 %v6103_v42  ;;  %6136 = vmatprep.subr.bf16.mxu0 %v6135_v48 }
 0xd6b   :  { %6106 = vmatpush3.bf16.msra.mxu1 %v6105_v54  ;;  %6138 = vmatpush3.bf16.msra.mxu0 %v6137_v53 }
 0xd6c   :  { %6108 = vmatprep.subr.bf16.mxu1 %v6107_v60  ;;  %6140 = vmatprep.subr.bf16.mxu0 %v6139_v0 }
 0xd6f   :  { %6110 = vmatpush3.bf16.msra.mxu1 %v6109_v1  ;;  %6142 = vmatpush3.bf16.msra.mxu0 %v6141_v4 }
 0xd70   :  { %6112 = vmatprep.subr.bf16.mxu1 %v6111_v31  ;;  %6144 = vmatprep.subr.bf16.mxu0 %v6143_v25 }
 0xd73   :  { %6114 = vmatpush3.bf16.msra.mxu1 %v6113_v11  ;;  %6146 = vmatpush3.bf16.msra.mxu0 %v6145_v26 }
 0xe28   :  { %v1857_v22 = vpop.f32.mrb[16].mxu1  ;;  %v1934_v23 = vpop.f32.mrb[14].mxu0 }
 0xe29   :  { %v1858_v24 = vadd.f32 %v1857_v22, %v1774_v20  ;;  %v1935_v27 = vadd.f32 %v1934_v23, %v1782_v47  ;;  %v1859_v14 = vpop.f32.mrb[17].mxu1  ;;  %v1936_v28 = vpop.f32.mrb[15].mxu0 }
 0xe2a   :  { %v1860_v18 = vadd.f32 %v1859_v14, %v1778_v50  ;;  %v1937_v32 = vadd.f32 %v1936_v28, %v1786_v21  ;;  %v4611_v14 = vld [vmem:[%s8719_s17] ss:$0 sm:$0xff] }
 0xe2b   :  { %v1953_v34 = vmul.f32 0.70710677, %v1858_v24  ;;  %v1955_v35 = vmul.f32 0.70710677, %v1935_v27  ;;  %v1945_v0 = vmul.f32 0.5, %v1858_v24  ;;  %v1947_v4 = vmul.f32 0.5, %v1935_v27 }
 0xe2c   :  { %v1954_v36 = vmul.f32 0.70710677, %v1860_v18  ;;  %v1956_v37 = vmul.f32 0.70710677, %v1937_v32  ;;  %v1863_v6 = vpop.f32.mrb[18].mxu1  ;;  %v1940_v38 = vpop.f32.mrb[16].mxu0 }
 0xe2d   :  { %6691 = verf.f32 %v1953_v34  ;;  %v1864_v39 = vadd.f32 %v1863_v6, %v1774_v20  ;;  %v1941_v40 = vadd.f32 %v1940_v38, %v1782_v47  ;;  %v1865_v42 = vpop.f32.mrb[19].mxu1  ;;  %v1942_v43 = vpop.f32.mrb[17].mxu0  ;;  %v1946_v62 = vmul.f32 0.5, %v1860_v18 }
 0xe2e   :  { %6693 = verf.f32 %v1955_v35  ;;  %v1866_v44 = vadd.f32 %v1865_v42, %v1778_v50  ;;  %v1943_v46 = vadd.f32 %v1942_v43, %v1786_v21  ;;  %v1948_v1 = vmul.f32 0.5, %v1937_v32 }
 0xe2f   :  { %6695 = verf.f32 %v1954_v36  ;;  %v1957_v48 = vmul.f32 0.70710677, %v1864_v39  ;;  %v1959_v54 = vmul.f32 0.70710677, %v1941_v40  ;;  %v1949_v26 = vmul.f32 0.5, %v1864_v39 }
 0xe30   :  { %6697 = verf.f32 %v1956_v37  ;;  %v1958_v58 = vmul.f32 0.70710677, %v1866_v44  ;;  %v1960_v56 = vmul.f32 0.70710677, %v1943_v46  ;;  %v1950_v12 = vmul.f32 0.5, %v1866_v44 }
 0xe31   :  { %6699 = verf.f32 %v1957_v48  ;;  %v1952_v17 = vmul.f32 0.5, %v1943_v46  ;;  %v1951_v47 = vmul.f32 0.5, %v1941_v40 }
 0xe32   :  { %6701 = verf.f32 %v1959_v54 }
 0xe33   :  { %6703 = verf.f32 %v1958_v58  ;;  %v2254_v58 = vld [vmem:[#allocation5 + $0x188] sm:$0xff] }
 0xe34   :  { %6705 = verf.f32 %v1960_v56  ;;  %v2257_v56 = vld [vmem:[#allocation5 + $0x1a0] sm:$0xff] }
 0xe37   :  { %v6692_v53 = vpop.eup %6691 }
 0xe38   :  { %v6694_v55 = vpop.eup %6693  ;;  %v1969_v5 = vadd.f32 1.0, %v6692_v53  ;;  %v2253_v53 = vld [vmem:[#allocation5 + $0x180] sm:$0xff] }
 0xe39   :  { %v6696_v57 = vpop.eup %6695  ;;  %v1971_v61 = vadd.f32 1.0, %v6694_v55  ;;  %v6147_v55 = vpack.c.bf16 %v2257_v56, %v2254_v58  ;;  %v2283_v58 = vld [vmem:[#allocation5 + $0x270] sm:$0xff]  ;;  %v2286_v56 = vld [vmem:[#allocation5 + $0x288] sm:$0xff] }
 0xe3a   :  { %v6698_v60 = vpop.eup %6697  ;;  %v1970_v63 = vadd.f32 1.0, %v6696_v57  ;;  %v1977_v8 = vmul.f32 %v1969_v5, %v1945_v0  ;;  %v2256_v57 = vld [vmem:[#allocation5 + $0x198] sm:$0xff]  ;;  %v2255_v0 = vld [vmem:[#allocation5 + $0x190] sm:$0xff] }
 0xe3b   :  { %v1972_v2 = vadd.f32 1.0, %v6698_v60  ;;  %v6700_v3 = vpop.eup %6699  ;;  %v1979_v10 = vmul.f32 %v1971_v61, %v1947_v4  ;;  %v2260_v5 = vld [vmem:[#allocation5 + $0x1b8] sm:$0xff]  ;;  %v2263_v60 = vld [vmem:[#allocation5 + $0x1d0] sm:$0xff]  ;;  %6148 = vmatprep.subr.bf16.mxu1 %v6147_v55 }
 0xe3c   :  { %v1978_v7 = vmul.f32 %v1970_v63, %v1946_v62  ;;  %v6702_v49 = vpop.eup %6701  ;;  %v1973_v51 = vadd.f32 1.0, %v6700_v3  ;;  %v6151_v61 = vpack.c.bf16 %v2263_v60, %v2260_v5  ;;  %v2259_v62 = vld [vmem:[#allocation5 + $0x1b0] sm:$0xff]  ;;  %v2262_v63 = vld [vmem:[#allocation5 + $0x1c8] sm:$0xff] }
 0xe3d   :  { %v1980_v31 = vmul.f32 %v1972_v2, %v1948_v1  ;;  %v6704_v9 = vpop.eup %6703  ;;  %v1975_v11 = vadd.f32 1.0, %v6702_v49  ;;  %v2258_v1 = vld [vmem:[#allocation5 + $0x1a8] sm:$0xff]  ;;  %v2269_v2 = vld [vmem:[#allocation5 + $0x200] sm:$0xff]  ;;  %v6153_v3 = vpack.c.bf16 %v2262_v63, %v2259_v62  ;;  %v2279_v55 = vld [vmem:[#allocation5 + $0x250] sm:$0xff] }
 0xe3e   :  { %2120 = vmatprep.mubr.f32.mxu1 %v1978_v7  ;;  %v6706_v25 = vpop.eup %6705  ;;  %v1974_v13 = vadd.f32 1.0, %v6704_v9  ;;  %v1981_v22 = vmul.f32 %v1973_v51, %v1949_v26  ;;  %v6179_v4 = vpack.c.bf16 %v2258_v1, %v2255_v0  ;;  %v2261_v7 = vld [vmem:[#allocation5 + $0x1c0] sm:$0xff]  ;;  %v2264_v9 = vld [vmem:[#allocation5 + $0x1d8] sm:$0xff]  ;;  %v2290_v60 = vld [vmem:[#allocation5 + $0x2a8] sm:$0xff] }
 0xe3f   :  { %2195 = vmatprep.mubr.f32.mxu0 %v1980_v31  ;;  %2121 = vmatmul.mubr.f32.vlgmr.msra.gmra.mrb[20].mxu1 %v1977_v8  ;;  %v1976_v20 = vadd.f32 1.0, %v6706_v25  ;;  %v1983_v23 = vmul.f32 %v1975_v11, %v1951_v47  ;;  %v2265_v8 = vld [vmem:[#allocation5 + $0x1e0] sm:$0xff]  ;;  %v2268_v31 = vld [vmem:[#allocation5 + $0x1f8] sm:$0xff] }
 0xe40   :  { %2196 = vmatmul.mubr.f32.vlgmr.msra.gmra.mrb[18].mxu0 %v1979_v10  ;;  %v1982_v50 = vmul.f32 %v1974_v13, %v1950_v12  ;;  %6180 = vmatprep.subr.bf16.mxu0 %v6179_v4  ;;  %v6183_v10 = vpack.c.bf16 %v2264_v9, %v2261_v7  ;;  %v6157_v51 = vpack.c.bf16 %v2268_v31, %v2265_v8  ;;  %v2289_v62 = vld [vmem:[#allocation5 + $0x2a0] sm:$0xff]  ;;  %v2292_v63 = vld [vmem:[#allocation5 + $0x2b8] sm:$0xff]  ;;  %v2295_v7 = vld [vmem:[#allocation5 + $0x2d0] sm:$0xff] }
 0xe41   :  { %v1984_v21 = vmul.f32 %v1976_v20, %v1952_v17  ;;  %6182 = vmatpush3.bf16.msra.mxu0 %v6179_v4  ;;  %v6173_v0 = vpack.c.bf16 %v2292_v63, %v2289_v62  ;;  %v2285_v1 = vld [vmem:[#allocation5 + $0x280] sm:$0xff]  ;;  %v2299_v4 = vld [vmem:[#allocation5 + $0x2f0] sm:$0xff]  ;;  %v2298_v8 = vld [vmem:[#allocation5 + $0x2e8] sm:$0xff] }
 0xe42   :  { %2125 = vmatprep.mubr.f32.mxu1 %v1982_v50  ;;  %6184 = vmatprep.subr.bf16.mxu0 %v6183_v10  ;;  %v2291_v31 = vld [vmem:[#allocation5 + $0x2b0] sm:$0xff]  ;;  %v2294_v9 = vld [vmem:[#allocation5 + $0x2c8] sm:$0xff] }
 0xe43   :  { %2200 = vmatprep.mubr.f32.mxu0 %v1984_v21  ;;  %2126 = vmatmul.mubr.f32.gmra.mrb[22].mxu1 %v1981_v22  ;;  %v2272_v21 = vld [vmem:[#allocation5 + $0x218] sm:$0xff]  ;;  %v2275_v22 = vld [vmem:[#allocation5 + $0x230] sm:$0xff] }
 0xe44   :  { %2201 = vmatmul.mubr.f32.gmra.mrb[20].mxu0 %v1983_v23  ;;  %2383 = vmatprep.mubr.f32.mxu1 %v6847_v59  ;;  %v6159_v23 = vpack.c.bf16 %v2275_v22, %v2272_v21 }
 0xe45   :  { %6186 = vmatpush3.bf16.msra.mxu0 %v6183_v10  ;;  %v6177_v10 = vpack.c.bf16 %v2298_v8, %v2295_v7 }
 0xf12   :  { %v5072_v24 = vpop.f32.mrb[20].mxu1 }
 0xf13   :  { %v5110_v27 = vpop.f32.mrb[18].mxu0  ;;  %v5073_v28 = vpop.f32.mrb[21].mxu1 }
 0xf14   :  { %v5074_v18 = vadd.f32 %v5073_v28, %v5072_v24  ;;  %v5111_v32 = vpop.f32.mrb[19].mxu0  ;;  %v2271_v24 = vld [vmem:[#allocation5 + $0x210] sm:$0xff] }
 0xf15   :  { %v5112_v34 = vadd.f32 %v5111_v32, %v5110_v27  ;;  %v2274_v27 = vld [vmem:[#allocation5 + $0x228] sm:$0xff]  ;;  %v2267_v28 = vld [vmem:[#allocation5 + $0x1f0] sm:$0xff] }
 0xf16   :  { %v2123_v35 = vadd.f32 %v5074_v18, %v4611_v14  ;;  %v5075_v36 = vpop.f32.mrb[22].mxu1  ;;  %v2270_v18 = vld [vmem:[#allocation5 + $0x208] sm:$0xff] }
 0xf17   :  { %v5113_v6 = vpop.f32.mrb[20].mxu0  ;;  %v5076_v38 = vpop.f32.mrb[23].mxu1  ;;  %v6187_v32 = vpack.c.bf16 %v2270_v18, %v2267_v28 }
 0xf18   :  { %v2198_v37 = vadd.f32 %v5112_v34, %v2123_v35  ;;  %v5077_v39 = vadd.f32 %v5076_v38, %v5075_v36  ;;  %v5114_v40 = vpop.f32.mrb[21].mxu0  ;;  %v2278_v34 = vld [vmem:[#allocation5 + $0x248] sm:$0xff]  ;;  %v2281_v35 = vld [vmem:[#allocation5 + $0x260] sm:$0xff] }
 0xf19   :  { %v5115_v42 = vadd.f32 %v5114_v40, %v5113_v6  ;;  %6188 = vmatprep.subr.bf16.mxu0 %v6187_v32  ;;  %v6163_v36 = vpack.c.bf16 %v2281_v35, %v2278_v34  ;;  %v2280_v6 = vld [vmem:[#allocation5 + $0x258] sm:$0xff] }
 0xf1a   :  { %v7705_v43 = vadd.f32 %v2198_v37, %v7281_v16  ;;  %v2128_v44 = vadd.f32 %v5077_v39, %v4611_v14  ;;  %v6149_v16 = vpack.c.bf16 %v2256_v57, %v2253_v53  ;;  %v6161_v14 = vpack.c.bf16 %v2274_v27, %v2271_v24  ;;  %v2277_v37 = vld [vmem:[#allocation5 + $0x240] sm:$0xff]  ;;  %6190 = vmatpush3.bf16.msra.mxu0 %v6187_v32  ;;  %v2276_v40 = vld [vmem:[#allocation5 + $0x238] sm:$0xff]  ;;  %v2282_v57 = vld [vmem:[#allocation5 + $0x268] sm:$0xff] }
 0xf1b   :  { %v6165_v38 = vpack.c.bf16 %v2280_v6, %v2277_v37  ;;  %v2273_v39 = vld [vmem:[#allocation5 + $0x220] sm:$0xff]  ;;  %v6169_v53 = vpack.c.bf16 %v2286_v56, %v2283_v58  ;;  %v6195_v5 = vpack.c.bf16 %v2282_v57, %v2279_v55 }
 0xf1c   :  { %2212 = vadd.xlane.f32.xlu1 %v7705_v43  ;;  %v2203_v46 = vadd.f32 %v5115_v42, %v2128_v44  ;;  %6150 = vmatpush1.bf16.msra.mxu1 %v6149_v16  ;;  %v6191_v42 = vpack.c.bf16 %v2276_v40, %v2273_v39  ;;  %v2284_v44 = vld [vmem:[#allocation5 + $0x278] sm:$0xff]  ;;  %v2293_v16 = vld [vmem:[#allocation5 + $0x2c0] sm:$0xff] }
 0xf1d   :  { %6152 = vmatprep.subr.bf16.mxu1 %v6151_v61  ;;  %v6171_v61 = vpack.c.bf16 %v2293_v16, %v2290_v60  ;;  %v4614_v24 = vld [vmem:[%s8752_s0 + $0x1] ss:$0 sm:$0xff] }
 0xf1e   :  { %v7709_v48 = vadd.f32 %v2203_v46, %v7278_v15  ;;  %v2266_v15 = vld [vmem:[#allocation5 + $0x1e8] sm:$0xff]  ;;  %v2287_v46 = vld [vmem:[#allocation5 + $0x290] sm:$0xff]  ;;  %6192 = vmatprep.subr.bf16.mxu0 %v6191_v42 }
 0xf1f   :  { %v6155_v49 = vpack.c.bf16 %v2269_v2, %v2266_v15  ;;  %6194 = vmatpush3.bf16.msra.mxu0 %v6191_v42  ;;  %v2288_v15 = vld [vmem:[#allocation5 + $0x298] sm:$0xff] }
 0xf20   :  { %v2214_v54 = vsel %vm458_vm3, %v7709_v48, 0.0  ;;  %6154 = vmatpush1.bf16.msra.mxu1 %v6153_v3  ;;  %6196 = vmatprep.subr.bf16.mxu0 %v6195_v5  ;;  %v6199_v2 = vpack.c.bf16 %v2288_v15, %v2285_v1  ;;  %v2296_v3 = vld [vmem:[#allocation5 + $0x2d8] sm:$0xff]  ;;  %v7762_v15 = vld [vmem:[%s8758_s23 + $0x8] sm:$0x3] }
 0xf21   :  { %2215 = vadd.xlane.f32.xlu0 %v2214_v54  ;;  %6156 = vmatprep.subr.bf16.mxu1 %v6155_v49  ;;  %v6167_v54 = vpack.c.bf16 %v2287_v46, %v2284_v44  ;;  %v6175_v49 = vpack.c.bf16 %v2299_v4, %v2296_v3  ;;  %v7768_v3 = vld [vmem:[%s8758_s23] sm:$0xff] }
 0xf23   :  { %6198 = vmatpush3.bf16.msra.mxu0 %v6195_v5 }
 0xf24   :  { %6158 = vmatpush1.bf16.msra.mxu1 %v6157_v51  ;;  %6200 = vmatprep.subr.bf16.mxu0 %v6199_v2  ;;  %v6203_v51 = vpack.c.bf16 %v2294_v9, %v2291_v31 }
 0xf25   :  { %6160 = vmatprep.subr.bf16.mxu1 %v6159_v23 }
 0xf27   :  { %6202 = vmatpush3.bf16.msra.mxu0 %v6199_v2 }
 0xf28   :  { %6162 = vmatpush1.bf16.msra.mxu1 %v6161_v14  ;;  %6204 = vmatprep.subr.bf16.mxu0 %v6203_v51  ;;  %v4615_v14 = vld [vmem:[%s8753_s3 + $0x1] ss:$0 sm:$0xff] }
 0xf29   :  { %6164 = vmatprep.subr.bf16.mxu1 %v6163_v36 }
 0xf2b   :  { %6206 = vmatpush3.bf16.msra.mxu0 %v6203_v51 }
 0xf2c   :  { %6166 = vmatpush1.bf16.msra.mxu1 %v6165_v38 }
 0xf2d   :  { %6168 = vmatprep.subr.bf16.mxu1 %v6167_v54 }
 0xf30   :  { %6170 = vmatpush1.bf16.msra.mxu1 %v6169_v53 }
 0xf31   :  { %6172 = vmatprep.subr.bf16.mxu1 %v6171_v61 }
 0xf34   :  { %6174 = vmatpush1.bf16.msra.mxu1 %v6173_v0 }
 0xf35   :  { %6176 = vmatprep.subr.bf16.mxu1 %v6175_v49 }
 0xf38   :  { %6178 = vmatpush1.bf16.msra.mxu1 %v6177_v10 }
 0xfa9   :  { %v2213_v25 = vpop.xlane.xlu1 %2212 }
 0xfaa   :  { %v2217_v11 = vmul.f32 0.0078125, %v2213_v25  ;;  %v2297_v25 = vld [vmem:[#allocation5 + $0x2e0] sm:$0xff] }
 0xfac   :  { %v7714_v12 = vsub.f32 %v7705_v43, %v2217_v11  ;;  %v2300_v11 = vld [vmem:[#allocation5 + $0x2f8] sm:$0xff] }
 0xfae   :  { %v2221_v13 = vmul.f32 %v7714_v12, %v7714_v12  ;;  %v2216_v26 = vpop.xlane.xlu0 %2215 }
 0xfaf   :  { %v2218_v17 = vmul.f32 0.0078125, %v2216_v26 }
 0xfb0   :  { %2223 = vadd.xlane.f32.xlu1 %v2221_v13  ;;  %v6207_v13 = vpack.c.bf16 %v2300_v11, %v2297_v25 }
 0xfb1   :  { %v7719_v20 = vsub.f32 %v7709_v48, %v2218_v17 }
 0xfb2   :  { %6208 = vmatprep.subr.bf16.mxu0 %v6207_v13 }
 0xfb3   :  { %v2222_v47 = vmul.f32 %v7719_v20, %v7719_v20  ;;  %6210 = vmatpush3.bf16.msra.mxu0 %v6207_v13 }
 0xfb5   :  { %v2225_v50 = vsel %vm458_vm3, %v2222_v47, 0.0 }
 0xfb6   :  { %2226 = vadd.xlane.f32.xlu0 %v2225_v50 }
0x103d   :  { %v2224_v26 = vpop.xlane.xlu1 %2223 }
0x103e   :  { %v2228_v17 = vmul.f32 0.0078125, %v2224_v26 }
0x1040   :  { %v2230_v47 = vadd.f32 1e-12, %v2228_v17 }
0x1042   :  { %6707 = vrsqrt.f32 %v2230_v47 }
0x1043   :  { %v2227_v50 = vpop.xlane.xlu0 %2226 }
0x1044   :  { %v2229_v21 = vmul.f32 0.0078125, %v2227_v50 }
0x1046   :  { %v2231_v22 = vadd.f32 1e-12, %v2229_v21 }
0x1048   :  { %6709 = vrsqrt.f32 %v2231_v22 }
0x104c   :  { %v6708_v23 = vpop.eup %6707 }
0x104d   :  { %v2234_v27 = vmul.f32 %v6708_v23, %v7714_v12  ;;  %v4616_v12 = vld [vmem:[%s8711_s9 + $0x3] sm:$0x7] }
0x104e   :  { %v2307_v37 = vrot.slane %v4616_v12, %v7037_v41  ;;  %v2315_v40 = vrot.slane %v4616_v12, %v7075_v29 }
0x104f   :  { %v2242_v28 = vmul.f32 %v4614_v24, %v2234_v27 }
0x1051   :  { %v2250_v18 = vadd.f32 %v4615_v14, %v2242_v28 }
0x1052   :  { %v6710_v32 = vpop.eup %6709 }
0x1053   :  { %2384 = vmatmul.mubr.f32.vlgmr.msra.gmra.mrb[24].mxu1 %v2250_v18  ;;  %5505 = vmatprep.mubr.f32.mxu0 %v2250_v18  ;;  %v2235_v34 = vmul.f32 %v6710_v32, %v7719_v20  ;;  %v2311_v20 = vrot.slane %v4616_v12, %v7078_v30 }
0x1054   :  { %2389 = vmatprep.mubr.f32.mxu1 %v6847_v59 }
0x1055   :  { %v2243_v35 = vmul.f32 %v4614_v24, %v2235_v34 }
0x1057   :  { %v2251_v36 = vadd.f32 %v4615_v14, %v2243_v35 }
0x1059   :  { %2390 = vmatmul.mubr.f32.gmra.mrb[26].mxu1 %v2251_v36  ;;  %5506 = vmatmul.mubr.f32.vlgmr.msra.gmra.mrb[22].mxu0 %v2251_v36 }
0x1126   :  { %v2385_v6 = vpop.f32.mrb[24].mxu1 }
0x1127   :  { %v7737_v38 = vadd.f32 %v2385_v6, %v2307_v37  ;;  %v2387_v39 = vpop.f32.mrb[25].mxu1 }
0x1128   :  { %v2388_v56 = vadd.f32 %v2387_v39, %v2311_v20 }
0x1129   :  { %5512 = vmatprep.mubr.msk.f32.mxu1 %vm715_vm4, %v7737_v38 }
0x112c   :  { %v2391_v42 = vpop.f32.mrb[26].mxu1  ;;  %v5507_v44 = vpop.f32.mrb[22].mxu0 }
0x112d   :  { %v2468_v46 = vadd.f32 %v5507_v44, %v2315_v40  ;;  %v2393_v54 = vpop.f32.mrb[27].mxu1  ;;  %v2462_v58 = vpop.f32.mrb[23].mxu0  ;;  %v7753_v61 = vadd.f32 %v2391_v42, %v2307_v37 }
0x112e   :  { %v2394_v53 = vadd.f32 %v2393_v54, %v2311_v20  ;;  %v2463_v55 = vadd.f32 %v2462_v58, %v2315_v40 }
0x1130   :  { %v6211_v57 = vpack.c.bf16 %v2394_v53, %v2388_v56  ;;  %v6217_v5 = vpack.c.bf16 %v2468_v46, %v2463_v55  ;;  %v7743_v60 = vpack.i.bf16 %v2394_v53, %v2388_v56  ;;  %v7745_v16 = vpack.i.bf16 %v2468_v46, %v2463_v55 }
0x1132   :  { %6213 = vmatprep.subr.msk.bf16.mxu1 %vm7088_vm5, %v6211_v57 }
0x1133   :  { %6216 = vmatpush3.bf16.xpose.msk.msra.mxu1 %vm7088_vm5, %v6211_v57 }
0x1134   :  { %6219 = vmatprep.subr.msk.bf16.mxu1 %vm7097_vm7, %v6217_v5 }
0x113a   :  { %5513 = vmatmul.mubr.msk.f32.vlgmr.msra.gmra.mrb[28].mxu1 %vm715_vm4, %v7753_v61 }
0x113b   :  { %6222 = vmatpush3.bf16.msk.msra.mxu1 %vm7097_vm7, %v6217_v5 }
0x120d   :  { %v5514_v62 = vpop.f32.mrb[28].mxu1 }
0x120e   :  { %v2559_v63 = vmul.f32 0.17677669, %v5514_v62  ;;  %v2549_v0 = vpop.f32.mrb[29].mxu1 }
0x120f   :  { %v2558_v1 = vmul.f32 0.17677669, %v2549_v0 }
0x1210   :  { %v2561_v2 = vadd.f32 %v7762_v15, %v2559_v63 }
0x1211   :  { %v2560_v4 = vadd.f32 %v7768_v3, %v2558_v1 }
0x1212   :  { %v2565_v7 = vsel %vm811_vm8, %v2561_v2, -inf }
0x1213   :  { %2566 = vmax.xlane.f32.xlu0 %v2565_v7  ;;  %v2562_v49 = vsel %vm807_vm9, %v2560_v4, -inf }
0x1214   :  { %2563 = vmax.xlane.f32.xlu1 %v2562_v49 }
0x1225   :  { %6607 = vrot.lane.b32.xlu1 %v7743_v60, %s6849_s1 }
0x12a0   :  { %v2567_v8 = vpop.xlane.xlu0 %2566 }
0x12a1   :  { %v2569_v31 = vsub.f32 %v2561_v2, %v2567_v8  ;;  %v2564_v9 = vpop.xlane.xlu1 %2563 }
0x12a2   :  { %v2568_v10 = vsub.f32 %v2560_v4, %v2564_v9 }
0x12a3   :  { %v2572_v51 = vmul.f32 1.442695, %v2569_v31 }
0x12a4   :  { %v2570_v25 = vmul.f32 1.442695, %v2568_v10 }
0x12a5   :  { %6711 = vpow2.f32 %v2572_v51  ;;  %v6608_v11 = vpop.permute.xlu1 %6607 }
0x12a6   :  { %6713 = vpow2.f32 %v2570_v25  ;;  %v6610_v13 = vunpack.i.h.bf16 %v6608_v11  ;;  %v6609_v26 = vunpack.i.l.bf16 %v6608_v11 }
0x12a8   :  { %v6223_v17 = vpack.c.bf16 %v6610_v13, %v6609_v26 }
0x12aa   :  { %6225 = vmatprep.subr.msk.bf16.mxu1 %vm7088_vm5, %v6223_v17 }
0x12af   :  { %v6712_v47 = vpop.eup %6711 }
0x12b0   :  { %v6714_v50 = vpop.eup %6713  ;;  %v2577_v21 = vsel %vm811_vm8, %v6712_v47, 0.0 }
0x12b1   :  { %2578 = vadd.xlane.f32.xlu0 %v2577_v21  ;;  %v2574_v22 = vsel %vm807_vm9, %v6714_v50, 0.0 }
0x12b2   :  { %2575 = vadd.xlane.f32.xlu1 %v2574_v22 }
0x12c3   :  { %2670 = vrot.lane.b32.xlu1 %v7753_v61, %s6849_s1 }
0x12c7   :  { %2668 = vrot.lane.b32.xlu0 %v7737_v38, %s6849_s1 }
0x133e   :  { %v2579_v23 = vpop.xlane.xlu0 %2578 }
0x133f   :  { %6715 = vrcp.f32 %v2579_v23  ;;  %v2576_v24 = vpop.xlane.xlu1 %2575 }
0x1340   :  { %6717 = vrcp.f32 %v2576_v24 }
0x1342   :  { %v2669_v32 = vpop.permute.xlu0 %2668 }
0x1343   :  { %v2671_v34 = vpop.permute.xlu1 %2670 }
0x1349   :  { %v6716_v27 = vpop.eup %6715 }
0x134a   :  { %v6718_v14 = vpop.eup %6717  ;;  %v2583_v18 = vmul.f32 %v6716_v27, %v6712_v47 }
0x134b   :  { %v2581_v28 = vmul.f32 %v6718_v14, %v6714_v50 }
0x134d   :  { %5519 = vmatprep.mubr.msk.f32.mxu1 %vm807_vm9, %v2581_v28 }
0x134e   :  { %5520 = vmatmul.mubr.msk.f32.vlgmr.msra.gmra.mrb[30].mxu1 %vm807_vm9, %v2583_v18 }
0x134f   :  { %6228 = vmatpush3.bf16.xpose.msk.msra.mxu1 %vm7088_vm5, %v6223_v17  ;;  %5526 = vmatprep.mubr.msk.f32.mxu1 %vm715_vm4, %v2669_v32 }
0x1356   :  { %5527 = vmatmul.mubr.msk.f32.vlgmr.msra.gmra.mrb[32].mxu1 %vm715_vm4, %v2671_v34 }
0x1421   :  { %v7789_v35 = vpop.f32.mrb[30].mxu1 }
0x1422   :  { %v7791_v36 = vpop.f32.mrb[31].mxu1 }
0x1429   :  { %v5528_v12 = vpop.f32.mrb[32].mxu1 }
0x142a   :  { %v2760_v37 = vmul.f32 0.17677669, %v5528_v12  ;;  %v2750_v6 = vpop.f32.mrb[33].mxu1 }
0x142b   :  { %v2759_v39 = vmul.f32 0.17677669, %v2750_v6 }
0x142c   :  { %v2762_v40 = vadd.f32 %v7762_v15, %v2760_v37 }
0x142d   :  { %v2761_v20 = vadd.f32 %v7768_v3, %v2759_v39 }
0x142e   :  { %v2766_v42 = vsel %vm811_vm8, %v2762_v40, -inf }
0x142f   :  { %2767 = vmax.xlane.f32.xlu0 %v2766_v42  ;;  %v2763_v44 = vsel %vm807_vm9, %v2761_v20, -inf }
0x1430   :  { %2764 = vmax.xlane.f32.xlu1 %v2763_v44 }
0x14bc   :  { %v2768_v46 = vpop.xlane.xlu0 %2767 }
0x14bd   :  { %v2770_v54 = vsub.f32 %v2762_v40, %v2768_v46  ;;  %v2765_v58 = vpop.xlane.xlu1 %2764 }
0x14be   :  { %v2769_v56 = vsub.f32 %v2761_v20, %v2765_v58 }
0x14bf   :  { %v2773_v53 = vmul.f32 1.442695, %v2770_v54 }
0x14c0   :  { %v2771_v55 = vmul.f32 1.442695, %v2769_v56 }
0x14c1   :  { %6719 = vpow2.f32 %v2773_v53 }
0x14c2   :  { %6721 = vpow2.f32 %v2771_v55 }
0x14cb   :  { %v6720_v57 = vpop.eup %6719 }
0x14cc   :  { %v6722_v5 = vpop.eup %6721  ;;  %v2778_v62 = vsel %vm811_vm8, %v6720_v57, 0.0 }
0x14cd   :  { %2779 = vadd.xlane.f32.xlu1 %v2778_v62  ;;  %v2775_v63 = vsel %vm807_vm9, %v6722_v5, 0.0 }
0x14ce   :  { %2776 = vadd.xlane.f32.xlu0 %v2775_v63 }
0x14de   :  { %6617 = vrot.lane.b32.xlu1 %v7743_v60, %s6851_s27 }
0x14e2   :  { %6622 = vrot.lane.b32.xlu1 %v7743_v60, %s6850_s5 }
0x14e4   :  { %6612 = vrot.lane.b32.xlu0 %v7745_v16, %s6849_s1 }
0x14e6   :  { %2874 = vrot.lane.b32.xlu1 %v7737_v38, %s6851_s27 }
0x14e8   :  { %2876 = vrot.lane.b32.xlu0 %v7753_v61, %s6851_s27 }
0x14ea   :  { %3079 = vrot.lane.b32.xlu1 %v7737_v38, %s6850_s5 }
0x14ec   :  { %3081 = vrot.lane.b32.xlu0 %v7753_v61, %s6850_s5 }
0x155a   :  { %v2780_v0 = vpop.xlane.xlu1 %2779 }
0x155b   :  { %6723 = vrcp.f32 %v2780_v0  ;;  %v2777_v1 = vpop.xlane.xlu0 %2776 }
0x155c   :  { %6725 = vrcp.f32 %v2777_v1 }
0x155e   :  { %v6618_v60 = vpop.permute.xlu1 %6617 }
0x155f   :  { %v6613_v2 = vpop.permute.xlu0 %6612  ;;  %v6620_v4 = vunpack.i.h.bf16 %v6618_v60  ;;  %v6619_v7 = vunpack.i.l.bf16 %v6618_v60 }
0x1560   :  { %v6615_v49 = vunpack.i.h.bf16 %v6613_v2  ;;  %v6614_v8 = vunpack.i.l.bf16 %v6613_v2 }
0x1561   :  { %v6235_v9 = vpack.c.bf16 %v6620_v4, %v6619_v7 }
0x1562   :  { %v6229_v31 = vpack.c.bf16 %v6615_v49, %v6614_v8  ;;  %v6623_v10 = vpop.permute.xlu1 %6622 }
0x1563   :  { %v6625_v11 = vunpack.i.h.bf16 %v6623_v10  ;;  %v6624_v13 = vunpack.i.l.bf16 %v6623_v10  ;;  %v2877_v47 = vpop.permute.xlu0 %2876 }
0x1564   :  { %6231 = vmatprep.subr.msk.bf16.mxu1 %vm7097_vm7, %v6229_v31 }
0x1565   :  { %v6724_v38 = vpop.eup %6723  ;;  %6234 = vmatpush3.bf16.msk.msra.mxu1 %vm7097_vm7, %v6229_v31  ;;  %v6247_v17 = vpack.c.bf16 %v6625_v11, %v6624_v13 }
0x1566   :  { %v6726_v61 = vpop.eup %6725  ;;  %6237 = vmatprep.subr.msk.bf16.mxu1 %vm7088_vm5, %v6235_v9  ;;  %v2784_v25 = vmul.f32 %v6724_v38, %v6720_v57  ;;  %v2875_v26 = vpop.permute.xlu1 %2874 }
0x1567   :  { %v2782_v51 = vmul.f32 %v6726_v61, %v6722_v5  ;;  %v3082_v21 = vpop.permute.xlu0 %3081 }
0x1569   :  { %5533 = vmatprep.mubr.msk.f32.mxu1 %vm807_vm9, %v2782_v51 }
0x156a   :  { %5534 = vmatmul.mubr.msk.f32.vlgmr.msra.gmra.mrb[34].mxu1 %vm807_vm9, %v2784_v25  ;;  %v3080_v50 = vpop.permute.xlu1 %3079 }
0x156b   :  { %5540 = vmatprep.mubr.msk.f32.mxu1 %vm715_vm4, %v2875_v26 }
0x156e   :  { %6240 = vmatpush3.bf16.xpose.msk.msra.mxu1 %vm7088_vm5, %v6235_v9 }
0x156f   :  { %6249 = vmatprep.subr.msk.bf16.mxu1 %vm7088_vm5, %v6247_v17 }
0x1575   :  { %5541 = vmatmul.mubr.msk.f32.vlgmr.msra.gmra.mrb[36].mxu1 %vm715_vm4, %v2877_v47 }
0x1576   :  { %6252 = vmatpush3.bf16.xpose.msk.msra.mxu1 %vm7088_vm5, %v6247_v17  ;;  %5554 = vmatprep.mubr.msk.f32.mxu1 %vm715_vm4, %v3080_v50 }
0x157d   :  { %5555 = vmatmul.mubr.msk.f32.vlgmr.msra.gmra.mrb[38].mxu1 %vm715_vm4, %v3082_v21 }
0x157e   :  { %3612 = vmatprep.mubr.f32.mxu1 %v6847_v59 }
0x163d   :  { %v5535_v22 = vpop.f32.mrb[34].mxu1 }
0x163e   :  { %v2865_v23 = vpop.f32.mrb[35].mxu1 }
0x163f   :  { %v6636_v24 = vpack.i.bf16 %v5535_v22, %v2865_v23 }
0x1648   :  { %v5542_v27 = vpop.f32.mrb[36].mxu1 }
0x1649   :  { %v2966_v14 = vmul.f32 0.17677669, %v5542_v27  ;;  %v2956_v28 = vpop.f32.mrb[37].mxu1 }
0x164a   :  { %v2965_v18 = vmul.f32 0.17677669, %v2956_v28 }
0x164b   :  { %v2968_v32 = vadd.f32 %v7762_v15, %v2966_v14 }
0x164c   :  { %v2967_v34 = vadd.f32 %v7768_v3, %v2965_v18  ;;  %v4645_v18 = vld [vmem:[%s8712_s10 + $0x80] sm:$0xff] }
0x164d   :  { %v2972_v45 = vsel %vm811_vm8, %v2968_v32, -inf }
0x164e   :  { %2973 = vmax.xlane.f32.xlu0 %v2972_v45  ;;  %v2969_v12 = vsel %vm807_vm9, %v2967_v34, -inf  ;;  %v4648_v45 = vld [vmem:[%s8712_s10 + $0x98] sm:$0xff] }
0x164f   :  { %2970 = vmax.xlane.f32.xlu1 %v2969_v12 }
0x1650   :  { %v5556_v37 = vpop.f32.mrb[38].mxu1 }
0x1651   :  { %v3161_v6 = vpop.f32.mrb[39].mxu1  ;;  %v3171_v39 = vmul.f32 0.17677669, %v5556_v37  ;;  %v4649_v37 = vld [vmem:[%s8712_s10 + $0xa0] sm:$0xff] }
0x1652   :  { %v3170_v40 = vmul.f32 0.17677669, %v3161_v6  ;;  %v4650_v6 = vld [vmem:[%s8712_s10 + $0xa8] sm:$0xff] }
0x1653   :  { %v3173_v44 = vadd.f32 %v7762_v15, %v3171_v39  ;;  %v6267_v39 = vpack.c.bf16 %v4650_v6, %v4649_v37  ;;  %v4676_v37 = vld [vmem:[%s8716_s14 + $0x248] sm:$0xff] }
0x1654   :  { %v3172_v20 = vadd.f32 %v7768_v3, %v3170_v40  ;;  %v4651_v40 = vld [vmem:[%s8712_s10 + $0xb0] sm:$0xff] }
0x1655   :  { %v3177_v46 = vsel %vm811_vm8, %v3173_v44, -inf }
0x1656   :  { %v3174_v42 = vsel %vm807_vm9, %v3172_v20, -inf }
0x1657   :  { %3175 = vmax.xlane.f32.xlu0 %v3174_v42 }
0x165b   :  { %3178 = vmax.xlane.f32.xlu0 %v3177_v46  ;;  %v4654_v46 = vld [vmem:[%s8712_s10 + $0xc8] sm:$0xff] }
0x16db   :  { %v2974_v54 = vpop.xlane.xlu0 %2973 }
0x16dc   :  { %v2976_v58 = vsub.f32 %v2968_v32, %v2974_v54  ;;  %v2971_v56 = vpop.xlane.xlu1 %2970  ;;  %v4646_v32 = vld [vmem:[%s8712_s10 + $0x88] sm:$0xff] }
0x16dd   :  { %v2975_v53 = vsub.f32 %v2967_v34, %v2971_v56  ;;  %v4647_v34 = vld [vmem:[%s8712_s10 + $0x90] sm:$0xff]  ;;  %v6259_v52 = vpack.c.bf16 %v4646_v32, %v4645_v18  ;;  %v4656_v56 = vld [vmem:[%s8712_s10 + $0xd8] sm:$0xff]  ;;  %v4667_v18 = vld [vmem:[%s8716_s14 + $0x200] sm:$0xff] }
0x16de   :  { %v2979_v55 = vmul.f32 1.442695, %v2976_v58  ;;  %v6263_v12 = vpack.c.bf16 %v4648_v45, %v4647_v34  ;;  %v4655_v58 = vld [vmem:[%s8712_s10 + $0xd0] sm:$0xff]  ;;  %v4671_v32 = vld [vmem:[%s8716_s14 + $0x220] sm:$0xff] }
0x16df   :  { %v2977_v57 = vmul.f32 1.442695, %v2975_v53  ;;  %v6279_v53 = vpack.c.bf16 %v4656_v56, %v4655_v58  ;;  %v4669_v45 = vld [vmem:[%s8716_s14 + $0x210] sm:$0xff] }
0x16e0   :  { %6727 = vpow2.f32 %v2979_v55  ;;  %v4657_v55 = vld [vmem:[%s8712_s10 + $0xe0] sm:$0xff]  ;;  %v4677_v58 = vld [vmem:[%s8716_s14 + $0x250] sm:$0xff] }
0x16e1   :  { %6729 = vpow2.f32 %v2977_v57  ;;  %v4658_v57 = vld [vmem:[%s8712_s10 + $0xe8] sm:$0xff] }
0x16e4   :  { %v3176_v5 = vpop.xlane.xlu0 %3175 }
0x16e5   :  { %v3180_v62 = vsub.f32 %v3172_v20, %v3176_v5  ;;  %v4652_v20 = vld [vmem:[%s8712_s10 + $0xb8] sm:$0xff]  ;;  %v6283_v5 = vpack.c.bf16 %v4658_v57, %v4657_v55  ;;  %v4684_v55 = vld [vmem:[%s8716_s14 + $0x288] sm:$0xff] }
0x16e6   :  { %v6271_v42 = vpack.c.bf16 %v4652_v20, %v4651_v40  ;;  %v4678_v40 = vld [vmem:[%s8716_s14 + $0x258] sm:$0xff]  ;;  %v4688_v57 = vld [vmem:[%s8716_s14 + $0x2a8] sm:$0xff] }
0x16e7   :  { %v3182_v63 = vmul.f32 1.442695, %v3180_v62  ;;  %v4659_v62 = vld [vmem:[%s8712_s10 + $0xf0] sm:$0xff]  ;;  %v4682_v20 = vld [vmem:[%s8716_s14 + $0x278] sm:$0xff] }
0x16e8   :  { %v3179_v3 = vpop.xlane.xlu0 %3178 }
0x16e9   :  { %6731 = vpow2.f32 %v3182_v63  ;;  %v3181_v0 = vsub.f32 %v3173_v44, %v3179_v3  ;;  %v4653_v44 = vld [vmem:[%s8712_s10 + $0xc0] sm:$0xff]  ;;  %v4660_v63 = vld [vmem:[%s8712_s10 + $0xf8] sm:$0xff] }
0x16ea   :  { %v6728_v1 = vpop.eup %6727  ;;  %v6275_v54 = vpack.c.bf16 %v4654_v46, %v4653_v44  ;;  %v6287_v3 = vpack.c.bf16 %v4660_v63, %v4659_v62  ;;  %v6327_v44 = vpack.c.bf16 %v4682_v20, %v4678_v40  ;;  %v4675_v46 = vld [vmem:[%s8716_s14 + $0x240] sm:$0xff]  ;;  %v6299_v62 = vpack.c.bf16 %v4688_v57, %v4684_v55  ;;  %v4686_v63 = vld [vmem:[%s8716_s14 + $0x298] sm:$0xff]  ;;  %v4712_v40 = vld [vmem:[%s8716_s14 + $0x368] sm:$0xff] }
0x16eb   :  { %v6730_v15 = vpop.eup %6729  ;;  %v3184_v60 = vmul.f32 1.442695, %v3181_v0  ;;  %v2984_v2 = vsel %vm811_vm8, %v6728_v1, 0.0  ;;  %v4710_v20 = vld [vmem:[%s8716_s14 + $0x358] sm:$0xff]  ;;  %v4713_v55 = vld [vmem:[%s8716_s14 + $0x370] sm:$0xff]  ;;  %v4716_v57 = vld [vmem:[%s8716_s14 + $0x388] sm:$0xff] }
0x16ec   :  { %2985 = vadd.xlane.f32.xlu0 %v2984_v2  ;;  %v2981_v4 = vsel %vm807_vm9, %v6730_v15, 0.0 }
0x16ed   :  { %6733 = vpow2.f32 %v3184_v60  ;;  %2982 = vadd.xlane.f32.xlu1 %v2981_v4 }
0x16f3   :  { %v6732_v7 = vpop.eup %6731 }
0x16f4   :  { %v3186_v49 = vsel %vm807_vm9, %v6732_v7, 0.0 }
0x16f5   :  { %3187 = vadd.xlane.f32.xlu1 %v3186_v49 }
0x16f7   :  { %v6734_v8 = vpop.eup %6733 }
0x16f8   :  { %v3189_v31 = vsel %vm811_vm8, %v6734_v8, 0.0 }
0x16f9   :  { %3190 = vadd.xlane.f32.xlu0 %v3189_v31 }
0x1706   :  { %6627 = vrot.lane.b32.xlu1 %v7745_v16, %s6851_s27 }
0x170a   :  { %6637 = vrot.lane.b32.xlu1 %v6636_v24, %s6850_s5 }
0x170f   :  { %6632 = vrot.lane.b32.xlu0 %v7745_v16, %s6850_s5 }
0x1779   :  { %v2986_v10 = vpop.xlane.xlu0 %2985 }
0x177a   :  { %v2983_v9 = vpop.xlane.xlu1 %2982 }
0x177b   :  { %6735 = vrcp.f32 %v2983_v9 }
0x177c   :  { %6737 = vrcp.f32 %v2986_v10 }
0x1782   :  { %v3188_v38 = vpop.xlane.xlu1 %3187 }
0x1783   :  { %6739 = vrcp.f32 %v3188_v38 }
0x1785   :  { %v6736_v61 = vpop.eup %6735 }
0x1786   :  { %v3191_v51 = vpop.xlane.xlu0 %3190  ;;  %v6628_v25 = vpop.permute.xlu1 %6627  ;;  %v2988_v11 = vmul.f32 %v6736_v61, %v6730_v15 }
0x1787   :  { %6741 = vrcp.f32 %v3191_v51  ;;  %v6630_v13 = vunpack.i.h.bf16 %v6628_v25  ;;  %v6629_v26 = vunpack.i.l.bf16 %v6628_v25  ;;  %v6738_v47 = vpop.eup %6737 }
0x1788   :  { %5547 = vmatprep.mubr.msk.f32.mxu0 %vm807_vm9, %v2988_v11  ;;  %v2990_v23 = vmul.f32 %v6738_v47, %v6728_v1 }
0x1789   :  { %v6241_v17 = vpack.c.bf16 %v6630_v13, %v6629_v26 }
0x178a   :  { %v6633_v50 = vpop.permute.xlu0 %6632 }
0x178b   :  { %v6635_v21 = vunpack.i.h.bf16 %v6633_v50  ;;  %v6634_v16 = vunpack.i.l.bf16 %v6633_v50  ;;  %6243 = vmatprep.subr.msk.bf16.mxu0 %vm7097_vm7, %v6241_v17 }
0x178c   :  { %6246 = vmatpush3.bf16.msk.msra.mxu0 %vm7097_vm7, %v6241_v17 }
0x178d   :  { %v6740_v22 = vpop.eup %6739  ;;  %v6253_v24 = vpack.c.bf16 %v6635_v21, %v6634_v16 }
0x178e   :  { %v3193_v27 = vmul.f32 %v6740_v22, %v6732_v7  ;;  %v6638_v7 = vpop.permute.xlu1 %6637 }
0x178f   :  { %5548 = vmatmul.mubr.msk.f32.vlgmr.msra.gmra.mrb[24].mxu0 %vm807_vm9, %v2990_v23  ;;  %6255 = vmatprep.subr.msk.bf16.mxu0 %vm7097_vm7, %v6253_v24  ;;  %v6639_v31 = vunpack.i.l.bf16 %v6638_v7 }
0x1790   :  { %6258 = vmatpush3.bf16.msk.msra.mxu0 %vm7097_vm7, %v6253_v24  ;;  %5561 = vmatprep.mubr.msk.f32.mxu0 %vm807_vm9, %v3193_v27  ;;  %v4668_v27 = vld [vmem:[%s8716_s14 + $0x208] sm:$0xff] }
0x1791   :  { %v6742_v14 = vpop.eup %6741  ;;  %6260 = vmatprep.subr.bf16.mxu0 %v6259_v52  ;;  %v3308_v11 = vsel %vm715_vm4, %v7791_v36, %v6639_v31 }
0x1792   :  { %v3195_v28 = vmul.f32 %v6742_v14, %v6734_v8  ;;  %v6640_v8 = vunpack.i.h.bf16 %v6638_v7  ;;  %v4672_v14 = vld [vmem:[%s8716_s14 + $0x228] sm:$0xff] }
0x1794   :  { %5562 = vmatmul.mubr.msk.f32.vlgmr.msra.gmra.mrb[26].mxu0 %vm807_vm9, %v3195_v28  ;;  %v3309_v61 = vsel %vm715_vm4, %v7789_v35, %v6640_v8  ;;  %v4662_v35 = vld [vmem:[%s8713_s11 + $0x1] ss:$0 sm:$0xff]  ;;  %v4674_v28 = vld [vmem:[%s8716_s14 + $0x238] sm:$0xff] }
0x1795   :  { %6262 = vmatpush3.bf16.msra.mxu0 %v6259_v52  ;;  %v6293_v52 = vpack.c.bf16 %v4671_v32, %v4667_v18  ;;  %v4706_v18 = vld [vmem:[%s8716_s14 + $0x338] sm:$0xff]  ;;  %v4699_v32 = vld [vmem:[%s8716_s14 + $0x300] sm:$0xff] }
0x1796   :  { %6264 = vmatprep.subr.bf16.mxu0 %v6263_v12 }
0x1799   :  { %6266 = vmatpush3.bf16.msra.mxu0 %v6263_v12  ;;  %v4673_v12 = vld [vmem:[%s8716_s14 + $0x230] sm:$0xff] }
0x179a   :  { %6268 = vmatprep.subr.bf16.mxu0 %v6267_v39  ;;  %v6325_v6 = vpack.c.bf16 %v4673_v12, %v4669_v45  ;;  %v4701_v12 = vld [vmem:[%s8716_s14 + $0x310] sm:$0xff] }
0x179d   :  { %6270 = vmatpush3.bf16.msra.mxu0 %v6267_v39  ;;  %v4680_v39 = vld [vmem:[%s8716_s14 + $0x268] sm:$0xff] }
0x179e   :  { %6272 = vmatprep.subr.bf16.mxu0 %v6271_v42 }
0x17a1   :  { %6274 = vmatpush3.bf16.msra.mxu0 %v6271_v42  ;;  %v6295_v42 = vpack.c.bf16 %v4680_v39, %v4676_v37  ;;  %v4705_v37 = vld [vmem:[%s8716_s14 + $0x330] sm:$0xff]  ;;  %v4708_v39 = vld [vmem:[%s8716_s14 + $0x348] sm:$0xff] }
0x17a2   :  { %6276 = vmatprep.subr.bf16.mxu0 %v6275_v54 }
0x17a5   :  { %6278 = vmatpush3.bf16.msra.mxu0 %v6275_v54  ;;  %v4679_v54 = vld [vmem:[%s8716_s14 + $0x260] sm:$0xff] }
0x17a6   :  { %6280 = vmatprep.subr.bf16.mxu0 %v6279_v53  ;;  %v6297_v56 = vpack.c.bf16 %v4679_v54, %v4675_v46  ;;  %v4707_v46 = vld [vmem:[%s8716_s14 + $0x340] sm:$0xff] }
0x17a7   :  { %v4711_v54 = vld [vmem:[%s8716_s14 + $0x360] sm:$0xff] }
0x17a9   :  { %6282 = vmatpush3.bf16.msra.mxu0 %v6279_v53  ;;  %v4681_v53 = vld [vmem:[%s8716_s14 + $0x270] sm:$0xff] }
0x17aa   :  { %6284 = vmatprep.subr.bf16.mxu0 %v6283_v5 }
0x17ad   :  { %6286 = vmatpush3.bf16.msra.mxu0 %v6283_v5  ;;  %v6329_v5 = vpack.c.bf16 %v4681_v53, %v4677_v58  ;;  %v4709_v53 = vld [vmem:[%s8716_s14 + $0x350] sm:$0xff] }
0x17ae   :  { %6288 = vmatprep.subr.bf16.mxu0 %v6287_v3 }
0x17b1   :  { %6290 = vmatpush3.bf16.msra.mxu0 %v6287_v3  ;;  %v4690_v3 = vld [vmem:[%s8716_s14 + $0x2b8] sm:$0xff] }
0x1862   :  { %v5549_v0 = vpop.f32.mrb[24].mxu0 }
0x1863   :  { %v3070_v1 = vpop.f32.mrb[25].mxu0 }
0x1864   :  { %v6641_v15 = vpack.i.bf16 %v5549_v0, %v3070_v1  ;;  %v4683_v0 = vld [vmem:[%s8716_s14 + $0x280] sm:$0xff]  ;;  %v6331_v1 = vpack.c.bf16 %v4690_v3, %v4686_v63  ;;  %v4718_v63 = vld [vmem:[%s8716_s14 + $0x398] sm:$0xff] }
0x1865   :  { %v4722_v3 = vld [vmem:[%s8716_s14 + $0x3b8] sm:$0xff] }
0x1866   :  { %6642 = vrot.lane.b32.xlu1 %v6641_v15, %s6851_s27  ;;  %v4687_v15 = vld [vmem:[%s8716_s14 + $0x2a0] sm:$0xff] }
0x1867   :  { %v5563_v60 = vpop.f32.mrb[26].mxu0 }
0x1868   :  { %v3275_v2 = vpop.f32.mrb[27].mxu0 }
0x1869   :  { %v6646_v4 = vpack.i.bf16 %v5563_v60, %v3275_v2  ;;  %v4685_v60 = vld [vmem:[%s8716_s14 + $0x290] sm:$0xff] }
0x186a   :  { %v4689_v2 = vld [vmem:[%s8716_s14 + $0x2b0] sm:$0xff] }
0x186b   :  { %6647 = vrot.lane.b32.xlu1 %v6646_v4, %s6849_s1  ;;  %v6301_v4 = vpack.c.bf16 %v4687_v15, %v4683_v0  ;;  %v6333_v7 = vpack.c.bf16 %v4689_v2, %v4685_v60  ;;  %v4715_v15 = vld [vmem:[%s8716_s14 + $0x380] sm:$0xff]  ;;  %v4717_v2 = vld [vmem:[%s8716_s14 + $0x390] sm:$0xff] }
0x186c   :  { %v4719_v60 = vld [vmem:[%s8716_s14 + $0x3a0] sm:$0xff] }
0x18d8   :  { %v6643_v49 = vpop.permute.xlu1 %6642 }
0x18d9   :  { %v6645_v9 = vunpack.i.h.bf16 %v6643_v49  ;;  %v6644_v10 = vunpack.i.l.bf16 %v6643_v49 }
0x18db   :  { %v3310_v13 = vsel %vm1557_vm10, %v3308_v11, %v6644_v10  ;;  %v3311_v26 = vsel %vm1557_vm10, %v3309_v61, %v6645_v9  ;;  %v4692_v11 = vld [vmem:[%s8716_s14 + $0x2c8] sm:$0xff] }
0x18dd   :  { %v6648_v38 = vpop.permute.xlu1 %6647 }
0x18de   :  { %v6650_v51 = vunpack.i.h.bf16 %v6648_v38  ;;  %v6649_v25 = vunpack.i.l.bf16 %v6648_v38 }
0x18e0   :  { %v3312_v17 = vsel %vm1560_vm11, %v3310_v13, %v6649_v25  ;;  %v3313_v47 = vsel %vm1560_vm11, %v3311_v26, %v6650_v51  ;;  %v4696_v13 = vld [vmem:[%s8716_s14 + $0x2e8] sm:$0xff]  ;;  %v4694_v26 = vld [vmem:[%s8716_s14 + $0x2d8] sm:$0xff] }
0x18e1   :  { %5596 = vmatprep.mubr.f32.mxu0 %v3312_v17  ;;  %v6303_v17 = vpack.c.bf16 %v4696_v13, %v4692_v11  ;;  %v4727_v13 = vld [vmem:[%s8716_s14 + $0x3e0] sm:$0xff] }
0x18e2   :  { %5597 = vmatmul.mubr.f32.vlgmr.msra.gmra.mrb[28].mxu0 %v3313_v47  ;;  %v4698_v47 = vld [vmem:[%s8716_s14 + $0x2f8] sm:$0xff] }
0x18e3   :  { %3689 = vmatprep.mubr.f32.mxu0 %v6847_v59 }
0x19b5   :  { %v5598_v50 = vpop.f32.mrb[28].mxu0 }
0x19b6   :  { %v3411_v21 = vadd.f32 %v5598_v50, %v4662_v35  ;;  %v3405_v16 = vpop.f32.mrb[29].mxu0  ;;  %v4695_v50 = vld [vmem:[%s8716_s14 + $0x2e0] sm:$0xff] }
0x19b7   :  { %v3406_v36 = vadd.f32 %v4662_v35, %v3405_v16  ;;  %v4691_v35 = vld [vmem:[%s8716_s14 + $0x2c0] sm:$0xff] }
0x19b8   :  { %v7924_v22 = vadd.f32 %v3411_v21, %v7709_v48  ;;  %v4670_v48 = vld [vmem:[%s8716_s14 + $0x218] sm:$0xff]  ;;  %v6335_v21 = vpack.c.bf16 %v4698_v47, %v4694_v26  ;;  %v6305_v16 = vpack.c.bf16 %v4695_v50, %v4691_v35  ;;  %v4725_v26 = vld [vmem:[%s8716_s14 + $0x3d0] sm:$0xff]  ;;  %v4748_v50 = vld [vmem:[%s8718_s16 + $0x280] sm:$0xff] }
0x19b9   :  { %v7927_v23 = vadd.f32 %v3406_v36, %v7705_v43  ;;  %v6291_v43 = vpack.c.bf16 %v4672_v14, %v4668_v27  ;;  %v6323_v34 = vpack.c.bf16 %v4674_v28, %v4670_v48  ;;  %v4693_v36 = vld [vmem:[%s8716_s14 + $0x2d0] sm:$0xff]  ;;  %v4700_v14 = vld [vmem:[%s8716_s14 + $0x308] sm:$0xff] }
0x19ba   :  { %v3422_v24 = vsel %vm458_vm3, %v7924_v22, 0.0  ;;  %v4704_v48 = vld [vmem:[%s8716_s14 + $0x328] sm:$0xff] }
0x19bb   :  { %3423 = vadd.xlane.f32.xlu1 %v3422_v24  ;;  %3420 = vadd.xlane.f32.xlu0 %v7927_v23  ;;  %v4697_v24 = vld [vmem:[%s8716_s14 + $0x2f0] sm:$0xff]  ;;  %v6307_v28 = vpack.c.bf16 %v4704_v48, %v4700_v14 }
0x19bc   :  { %6292 = vmatprep.subr.bf16.mxu1 %v6291_v43  ;;  %6324 = vmatprep.subr.bf16.mxu0 %v6323_v34  ;;  %v6337_v27 = vpack.c.bf16 %v4697_v24, %v4693_v36  ;;  %v4702_v43 = vld [vmem:[%s8716_s14 + $0x318] sm:$0xff]  ;;  %v4703_v34 = vld [vmem:[%s8716_s14 + $0x320] sm:$0xff]  ;;  %v4781_v24 = vld [vmem:[%s8718_s16 + $0x388] sm:$0xff] }
0x19bd   :  { %6294 = vmatpush1.bf16.msra.mxu1 %v6293_v52  ;;  %6326 = vmatpush1.bf16.msra.mxu0 %v6325_v6  ;;  %v6339_v52 = vpack.c.bf16 %v4706_v18, %v4702_v43  ;;  %v6309_v45 = vpack.c.bf16 %v4703_v34, %v4699_v32  ;;  %v6341_v6 = vpack.c.bf16 %v4705_v37, %v4701_v12  ;;  %v4732_v37 = vld [vmem:[%s8718_s16 + $0x200] sm:$0xff] }
0x19be   :  { %6296 = vmatprep.subr.bf16.mxu1 %v6295_v42  ;;  %6328 = vmatprep.subr.bf16.mxu0 %v6327_v44  ;;  %v6311_v42 = vpack.c.bf16 %v4712_v40, %v4708_v39  ;;  %v4714_v44 = vld [vmem:[%s8716_s14 + $0x378] sm:$0xff]  ;;  %v4764_v39 = vld [vmem:[%s8718_s16 + $0x300] sm:$0xff]  ;;  %v4765_v40 = vld [vmem:[%s8718_s16 + $0x308] sm:$0xff] }
0x19bf   :  { %v6343_v58 = vpack.c.bf16 %v4714_v44, %v4710_v20  ;;  %v4782_v44 = vld [vmem:[%s8718_s16 + $0x390] sm:$0xff] }
0x19c1   :  { %6298 = vmatpush1.bf16.msra.mxu1 %v6297_v56  ;;  %6330 = vmatpush1.bf16.msra.mxu0 %v6329_v5  ;;  %v6313_v56 = vpack.c.bf16 %v4711_v54, %v4707_v46  ;;  %v6345_v5 = vpack.c.bf16 %v4713_v55, %v4709_v53  ;;  %v4783_v46 = vld [vmem:[%s8718_s16 + $0x398] sm:$0xff]  ;;  %v6389_v55 = vpack.c.bf16 %v4765_v40, %v4764_v39  ;;  %v4773_v39 = vld [vmem:[%s8718_s16 + $0x348] sm:$0xff] }
0x19c2   :  { %6300 = vmatprep.subr.bf16.mxu1 %v6299_v62  ;;  %6332 = vmatprep.subr.bf16.mxu0 %v6331_v1  ;;  %v4720_v62 = vld [vmem:[%s8716_s14 + $0x3a8] sm:$0xff]  ;;  %v6347_v1 = vpack.c.bf16 %v4722_v3, %v4718_v63  ;;  %v6391_v63 = vpack.c.bf16 %v4783_v46, %v4782_v44  ;;  %v4766_v3 = vld [vmem:[%s8718_s16 + $0x310] sm:$0xff]  ;;  %v4791_v46 = vld [vmem:[%s8718_s16 + $0x3d8] sm:$0xff] }
0x19c3   :  { %v6315_v0 = vpack.c.bf16 %v4720_v62, %v4716_v57  ;;  %v4734_v57 = vld [vmem:[%s8718_s16 + $0x210] sm:$0xff] }
0x19c5   :  { %6302 = vmatpush1.bf16.msra.mxu1 %v6301_v4  ;;  %6334 = vmatpush1.bf16.msra.mxu0 %v6333_v7  ;;  %v6317_v4 = vpack.c.bf16 %v4719_v60, %v4715_v15  ;;  %v4721_v7 = vld [vmem:[%s8716_s14 + $0x3b0] sm:$0xff]  ;;  %v4753_v15 = vld [vmem:[%s8718_s16 + $0x2a8] sm:$0xff]  ;;  %v4784_v60 = vld [vmem:[%s8718_s16 + $0x3a0] sm:$0xff] }
0x19c6   :  { %6304 = vmatprep.subr.bf16.mxu1 %v6303_v17  ;;  %6336 = vmatprep.subr.bf16.mxu0 %v6335_v21  ;;  %v4729_v17 = vld [vmem:[%s8716_s14 + $0x3f0] sm:$0xff]  ;;  %v4749_v21 = vld [vmem:[%s8718_s16 + $0x288] sm:$0xff] }
0x19c7   :  { %v6353_v35 = vpack.c.bf16 %v4729_v17, %v4725_v26  ;;  %v6355_v36 = vpack.c.bf16 %v4749_v21, %v4748_v50  ;;  %v4754_v26 = vld [vmem:[%s8718_s16 + $0x2b0] sm:$0xff]  ;;  %v4755_v17 = vld [vmem:[%s8718_s16 + $0x2b8] sm:$0xff] }
0x19c8   :  { %v4787_v50 = vld [vmem:[%s8718_s16 + $0x3b8] sm:$0xff]  ;;  %v4738_v21 = vld [vmem:[%s8718_s16 + $0x230] sm:$0xff] }
0x19c9   :  { %6306 = vmatpush1.bf16.msra.mxu1 %v6305_v16  ;;  %6338 = vmatpush1.bf16.msra.mxu0 %v6337_v27  ;;  %v4780_v16 = vld [vmem:[%s8718_s16 + $0x380] sm:$0xff] }
0x19ca   :  { %6308 = vmatprep.subr.bf16.mxu1 %v6307_v28  ;;  %6340 = vmatprep.subr.bf16.mxu0 %v6339_v52  ;;  %v6387_v27 = vpack.c.bf16 %v4781_v24, %v4780_v16  ;;  %v4665_v52 = vld [vmem:[%s8714_s12 + $0x1] ss:$0 sm:$0xff]  ;;  %v4739_v16 = vld [vmem:[%s8718_s16 + $0x238] sm:$0xff] }
0x19cb   :  { %v6369_v24 = vpack.c.bf16 %v4739_v16, %v4738_v21 }
0x19cd   :  { %6310 = vmatpush1.bf16.msra.mxu1 %v6309_v45  ;;  %6342 = vmatpush1.bf16.msra.mxu0 %v6341_v6  ;;  %v4666_v45 = vld [vmem:[%s8715_s13 + $0x1] ss:$0 sm:$0xff]  ;;  %v4733_v6 = vld [vmem:[%s8718_s16 + $0x208] sm:$0xff] }
0x19ce   :  { %6312 = vmatprep.subr.bf16.mxu1 %v6311_v42  ;;  %6344 = vmatprep.subr.bf16.mxu0 %v6343_v58  ;;  %v4751_v42 = vld [vmem:[%s8718_s16 + $0x298] sm:$0xff]  ;;  %v6357_v53 = vpack.c.bf16 %v4733_v6, %v4732_v37  ;;  %v4772_v6 = vld [vmem:[%s8718_s16 + $0x340] sm:$0xff] }
0x19cf   :  { %v6405_v40 = vpack.c.bf16 %v4773_v39, %v4772_v6 }
0x19d1   :  { %6314 = vmatpush1.bf16.msra.mxu1 %v6313_v56  ;;  %6346 = vmatpush1.bf16.msra.mxu0 %v6345_v5  ;;  %v4735_v5 = vld [vmem:[%s8718_s16 + $0x218] sm:$0xff] }
0x19d2   :  { %6316 = vmatprep.subr.bf16.mxu1 %v6315_v0  ;;  %6348 = vmatprep.subr.bf16.mxu0 %v6347_v1  ;;  %v4752_v0 = vld [vmem:[%s8718_s16 + $0x2a0] sm:$0xff] }
0x19d5   :  { %6318 = vmatpush1.bf16.msra.mxu1 %v6317_v4 }
0x1a48   :  { %v3424_v49 = vpop.xlane.xlu1 %3423  ;;  %v3421_v8 = vpop.xlane.xlu0 %3420 }
0x1a49   :  { %v3426_v31 = vmul.f32 0.0078125, %v3424_v49  ;;  %v3425_v9 = vmul.f32 0.0078125, %v3421_v8  ;;  %v4724_v49 = vld [vmem:[%s8716_s14 + $0x3c8] sm:$0xff] }
0x1a4a   :  { %v4728_v8 = vld [vmem:[%s8716_s14 + $0x3e8] sm:$0xff] }
0x1a4b   :  { %v8005_v10 = vsub.f32 %v7924_v22, %v3426_v31  ;;  %v8008_v38 = vsub.f32 %v7927_v23, %v3425_v9  ;;  %v6349_v31 = vpack.c.bf16 %v4721_v7, %v4717_v2  ;;  %v6319_v9 = vpack.c.bf16 %v4728_v8, %v4724_v49  ;;  %v4785_v2 = vld [vmem:[%s8718_s16 + $0x3a8] sm:$0xff]  ;;  %v4736_v8 = vld [vmem:[%s8718_s16 + $0x220] sm:$0xff] }
0x1a4c   :  { %v6361_v7 = vpack.c.bf16 %v4735_v5, %v4734_v57  ;;  %v4775_v57 = vld [vmem:[%s8718_s16 + $0x358] sm:$0xff] }
0x1a4d   :  { %v3429_v61 = vmul.f32 %v8008_v38, %v8008_v38  ;;  %v3430_v51 = vmul.f32 %v8005_v10, %v8005_v10  ;;  %6350 = vmatpush1.bf16.msra.mxu0 %v6349_v31  ;;  %6320 = vmatprep.subr.bf16.mxu1 %v6319_v9  ;;  %v6363_v31 = vpack.c.bf16 %v4753_v15, %v4752_v0  ;;  %v4793_v0 = vld [vmem:[%s8718_s16 + $0x3e8] sm:$0xff] }
0x1a4e   :  { %v6395_v9 = vpack.c.bf16 %v4785_v2, %v4784_v60  ;;  %v4745_v15 = vld [vmem:[%s8718_s16 + $0x268] sm:$0xff] }
0x1a4f   :  { %3431 = vadd.xlane.f32.xlu0 %v3429_v61  ;;  %v3433_v25 = vsel %vm458_vm3, %v3430_v51, 0.0  ;;  %v4726_v61 = vld [vmem:[%s8716_s14 + $0x3d8] sm:$0xff] }
0x1a50   :  { %v4730_v51 = vld [vmem:[%s8716_s14 + $0x3f8] sm:$0xff] }
0x1a51   :  { %v6351_v11 = vpack.c.bf16 %v4730_v51, %v4726_v61  ;;  %v4737_v61 = vld [vmem:[%s8718_s16 + $0x228] sm:$0xff]  ;;  %v4768_v51 = vld [vmem:[%s8718_s16 + $0x320] sm:$0xff] }
0x1a53   :  { %3434 = vadd.xlane.f32.xlu0 %v3433_v25  ;;  %v4723_v25 = vld [vmem:[%s8716_s14 + $0x3c0] sm:$0xff]  ;;  %6352 = vmatprep.subr.bf16.mxu0 %v6351_v11  ;;  %v6365_v11 = vpack.c.bf16 %v4737_v61, %v4736_v8  ;;  %v4762_v8 = vld [vmem:[%s8718_s16 + $0x2f0] sm:$0xff] }
0x1a54   :  { %v6321_v47 = vpack.c.bf16 %v4727_v13, %v4723_v25  ;;  %6354 = vmatpush1.bf16.msra.mxu0 %v6353_v35  ;;  %v4769_v25 = vld [vmem:[%s8718_s16 + $0x328] sm:$0xff]  ;;  %v6367_v35 = vpack.c.bf16 %v4755_v17, %v4754_v26  ;;  %v4778_v17 = vld [vmem:[%s8718_s16 + $0x370] sm:$0xff] }
0x1a55   :  { %6388 = vmatprep.subr.bf16.mxu0 %v6387_v27  ;;  %v6397_v13 = vpack.c.bf16 %v4769_v25, %v4768_v51  ;;  %v4770_v27 = vld [vmem:[%s8718_s16 + $0x330] sm:$0xff]  ;;  %v4795_v51 = vld [vmem:[%s8718_s16 + $0x3f8] sm:$0xff] }
0x1a56   :  { %6322 = vmatpush1.bf16.msra.mxu1 %v6321_v47  ;;  %v4786_v47 = vld [vmem:[%s8718_s16 + $0x3b0] sm:$0xff] }
0x1a57   :  { %6356 = vmatprep.subr.bf16.mxu1 %v6355_v36  ;;  %v6399_v36 = vpack.c.bf16 %v4787_v50, %v4786_v47  ;;  %v4746_v25 = vld [vmem:[%s8718_s16 + $0x270] sm:$0xff]  ;;  %v4779_v47 = vld [vmem:[%s8718_s16 + $0x378] sm:$0xff]  ;;  %v4731_v50 = vld [vmem:[%s8717_s15 + $0x4] sm:$0xf] }
0x1a58   :  { %v3531_v21 = vrot.slane %v4731_v50, %v7037_v41  ;;  %v3539_v16 = vrot.slane %v4731_v50, %v7075_v29 }
0x1adc   :  { %v3432_v14 = vpop.xlane.xlu0 %3431 }
0x1add   :  { %v3436_v48 = vmul.f32 0.0078125, %v3432_v14  ;;  %v4771_v14 = vld [vmem:[%s8718_s16 + $0x338] sm:$0xff] }
0x1adf   :  { %v3438_v43 = vadd.f32 1e-12, %v3436_v48  ;;  %v6401_v48 = vpack.c.bf16 %v4771_v14, %v4770_v27 }
0x1ae0   :  { %v3435_v28 = vpop.xlane.xlu0 %3434 }
0x1ae1   :  { %6743 = vrsqrt.f32 %v3438_v43  ;;  %v3437_v18 = vmul.f32 0.0078125, %v3435_v28  ;;  %v4756_v43 = vld [vmem:[%s8718_s16 + $0x2c0] sm:$0xff]  ;;  %v4757_v28 = vld [vmem:[%s8718_s16 + $0x2c8] sm:$0xff] }
0x1ae3   :  { %v3439_v32 = vadd.f32 1e-12, %v3437_v18  ;;  %v4788_v18 = vld [vmem:[%s8718_s16 + $0x3c0] sm:$0xff] }
0x1ae5   :  { %6745 = vrsqrt.f32 %v3439_v32  ;;  %v6371_v32 = vpack.c.bf16 %v4757_v28, %v4756_v43 }
0x1aeb   :  { %v6744_v34 = vpop.eup %6743 }
0x1aec   :  { %v3442_v12 = vmul.f32 %v6744_v34, %v8008_v38  ;;  %v4750_v38 = vld [vmem:[%s8718_s16 + $0x290] sm:$0xff]  ;;  %v4789_v34 = vld [vmem:[%s8718_s16 + $0x3c8] sm:$0xff] }
0x1aed   :  { %v6359_v62 = vpack.c.bf16 %v4751_v42, %v4750_v38  ;;  %v4758_v38 = vld [vmem:[%s8718_s16 + $0x2d0] sm:$0xff] }
0x1aee   :  { %v3450_v20 = vmul.f32 %v4665_v52, %v3442_v12  ;;  %v6403_v12 = vpack.c.bf16 %v4789_v34, %v4788_v18  ;;  %v4790_v42 = vld [vmem:[%s8718_s16 + $0x3d0] sm:$0xff] }
0x1aef   :  { %v6746_v54 = vpop.eup %6745 }
0x1af0   :  { %v3458_v58 = vadd.f32 %v4666_v45, %v3450_v20  ;;  %v3443_v56 = vmul.f32 %v6746_v54, %v8005_v10  ;;  %v4767_v10 = vld [vmem:[%s8718_s16 + $0x318] sm:$0xff]  ;;  %v4742_v54 = vld [vmem:[%s8718_s16 + $0x250] sm:$0xff] }
0x1af1   :  { %v6393_v49 = vpack.c.bf16 %v4767_v10, %v4766_v3  ;;  %v4759_v20 = vld [vmem:[%s8718_s16 + $0x2d8] sm:$0xff]  ;;  %v4792_v3 = vld [vmem:[%s8718_s16 + $0x3e0] sm:$0xff] }
0x1af2   :  { %3613 = vmatmul.mubr.f32.vlgmr.msra.gmra.mrb[40].mxu1 %v3458_v58  ;;  %3690 = vmatmul.mubr.f32.vlgmr.msra.gmra.mrb[30].mxu0 %v3458_v58  ;;  %v3451_v1 = vmul.f32 %v4665_v52, %v3443_v56  ;;  %v4740_v52 = vld [vmem:[%s8718_s16 + $0x240] sm:$0xff]  ;;  %v6375_v44 = vpack.c.bf16 %v4759_v20, %v4758_v38  ;;  %v4743_v58 = vld [vmem:[%s8718_s16 + $0x258] sm:$0xff]  ;;  %v6407_v56 = vpack.c.bf16 %v4791_v46, %v4790_v42 }
0x1af3   :  { %3618 = vmatprep.mubr.f32.mxu1 %v6847_v59  ;;  %3695 = vmatprep.mubr.f32.mxu0 %v6847_v59  ;;  %v6411_v60 = vpack.c.bf16 %v4793_v0, %v4792_v3 }
0x1af4   :  { %v3459_v4 = vadd.f32 %v4666_v45, %v3451_v1  ;;  %6358 = vmatpush3.bf16.msra.mxu1 %v6357_v53  ;;  %6390 = vmatpush3.bf16.msra.mxu0 %v6389_v55  ;;  %v4741_v45 = vld [vmem:[%s8718_s16 + $0x248] sm:$0xff]  ;;  %v6377_v53 = vpack.c.bf16 %v4743_v58, %v4742_v54  ;;  %v4774_v55 = vld [vmem:[%s8718_s16 + $0x350] sm:$0xff]  ;;  %v4744_v1 = vld [vmem:[%s8718_s16 + $0x260] sm:$0xff] }
0x1af5   :  { %6360 = vmatprep.subr.bf16.mxu1 %v6359_v62  ;;  %6392 = vmatprep.subr.bf16.mxu0 %v6391_v63  ;;  %v6373_v37 = vpack.c.bf16 %v4741_v45, %v4740_v52  ;;  %v6409_v5 = vpack.c.bf16 %v4775_v57, %v4774_v55  ;;  %v4760_v62 = vld [vmem:[%s8718_s16 + $0x2e0] sm:$0xff]  ;;  %v4761_v63 = vld [vmem:[%s8718_s16 + $0x2e8] sm:$0xff]  ;;  %v6381_v2 = vpack.c.bf16 %v4745_v15, %v4744_v1 }
0x1af6   :  { %3619 = vmatmul.mubr.f32.gmra.mrb[42].mxu1 %v3459_v4  ;;  %3696 = vmatmul.mubr.f32.gmra.mrb[32].mxu0 %v3459_v4  ;;  %v6379_v10 = vpack.c.bf16 %v4761_v63, %v4760_v62  ;;  %v4776_v4 = vld [vmem:[%s8718_s16 + $0x360] sm:$0xff] }
0x1af8   :  { %6362 = vmatpush3.bf16.msra.mxu1 %v6361_v7  ;;  %6394 = vmatpush3.bf16.msra.mxu0 %v6393_v49  ;;  %v4777_v7 = vld [vmem:[%s8718_s16 + $0x368] sm:$0xff] }
0x1af9   :  { %6364 = vmatprep.subr.bf16.mxu1 %v6363_v31  ;;  %6396 = vmatprep.subr.bf16.mxu0 %v6395_v9  ;;  %v6413_v49 = vpack.c.bf16 %v4777_v7, %v4776_v4  ;;  %v4763_v31 = vld [vmem:[%s8718_s16 + $0x2f8] sm:$0xff]  ;;  %v4794_v9 = vld [vmem:[%s8718_s16 + $0x3f0] sm:$0xff] }
0x1afa   :  { %v6383_v61 = vpack.c.bf16 %v4763_v31, %v4762_v8 }
0x1afc   :  { %6366 = vmatpush3.bf16.msra.mxu1 %v6365_v11  ;;  %6398 = vmatpush3.bf16.msra.mxu0 %v6397_v13  ;;  %v4747_v11 = vld [vmem:[%s8718_s16 + $0x278] sm:$0xff]  ;;  %v6415_v13 = vpack.c.bf16 %v4795_v51, %v4794_v9 }
0x1afd   :  { %6368 = vmatprep.subr.bf16.mxu1 %v6367_v35  ;;  %6400 = vmatprep.subr.bf16.mxu0 %v6399_v36  ;;  %v6385_v26 = vpack.c.bf16 %v4747_v11, %v4746_v25  ;;  %v6417_v35 = vpack.c.bf16 %v4779_v47, %v4778_v17  ;;  %v3535_v36 = vrot.slane %v4731_v50, %v7078_v30 }
0x1b00   :  { %6370 = vmatpush3.bf16.msra.mxu1 %v6369_v24  ;;  %6402 = vmatpush3.bf16.msra.mxu0 %v6401_v48  ;;  %v3543_v24 = vrot.slane %v4731_v50, %v1785_v19 }
0x1b01   :  { %6372 = vmatprep.subr.bf16.mxu1 %v6371_v32  ;;  %6404 = vmatprep.subr.bf16.mxu0 %v6403_v12 }
0x1b04   :  { %6374 = vmatpush3.bf16.msra.mxu1 %v6373_v37  ;;  %6406 = vmatpush3.bf16.msra.mxu0 %v6405_v40 }
0x1b05   :  { %6376 = vmatprep.subr.bf16.mxu1 %v6375_v44  ;;  %6408 = vmatprep.subr.bf16.mxu0 %v6407_v56 }
0x1b08   :  { %6378 = vmatpush3.bf16.msra.mxu1 %v6377_v53  ;;  %6410 = vmatpush3.bf16.msra.mxu0 %v6409_v5 }
0x1b09   :  { %6380 = vmatprep.subr.bf16.mxu1 %v6379_v10  ;;  %6412 = vmatprep.subr.bf16.mxu0 %v6411_v60 }
0x1b0c   :  { %6382 = vmatpush3.bf16.msra.mxu1 %v6381_v2  ;;  %6414 = vmatpush3.bf16.msra.mxu0 %v6413_v49 }
0x1b0d   :  { %6384 = vmatprep.subr.bf16.mxu1 %v6383_v61  ;;  %6416 = vmatprep.subr.bf16.mxu0 %v6415_v13 }
0x1b10   :  { %6386 = vmatpush3.bf16.msra.mxu1 %v6385_v26  ;;  %6418 = vmatpush3.bf16.msra.mxu0 %v6417_v35 }
0x1bc5   :  { %v3614_v27 = vpop.f32.mrb[40].mxu1  ;;  %v3691_v14 = vpop.f32.mrb[30].mxu0 }
0x1bc6   :  { %v3615_v48 = vadd.f32 %v3614_v27, %v3531_v21  ;;  %v3692_v43 = vadd.f32 %v3691_v14, %v3539_v16  ;;  %v3616_v28 = vpop.f32.mrb[41].mxu1  ;;  %v3693_v18 = vpop.f32.mrb[31].mxu0 }
0x1bc7   :  { %v3617_v32 = vadd.f32 %v3616_v28, %v3535_v36  ;;  %v3694_v34 = vadd.f32 %v3693_v18, %v3543_v24 }
0x1bc8   :  { %v3710_v52 = vmul.f32 0.70710677, %v3615_v48  ;;  %v3712_v45 = vmul.f32 0.70710677, %v3692_v43  ;;  %v3702_v62 = vmul.f32 0.5, %v3615_v48  ;;  %v3704_v0 = vmul.f32 0.5, %v3692_v43 }
0x1bc9   :  { %v3711_v12 = vmul.f32 0.70710677, %v3617_v32  ;;  %v3713_v37 = vmul.f32 0.70710677, %v3694_v34  ;;  %v3620_v41 = vpop.f32.mrb[42].mxu1  ;;  %v3697_v29 = vpop.f32.mrb[32].mxu0 }
0x1bca   :  { %6747 = verf.f32 %v3710_v52  ;;  %v3621_v30 = vadd.f32 %v3620_v41, %v3531_v21  ;;  %v3698_v6 = vadd.f32 %v3697_v29, %v3539_v16  ;;  %v3622_v33 = vpop.f32.mrb[43].mxu1  ;;  %v3699_v19 = vpop.f32.mrb[33].mxu0  ;;  %v3703_v57 = vmul.f32 0.5, %v3617_v32  ;;  %v4797_v16 = vld [vmem:[%s8719_s17 + $0x1] ss:$0 sm:$0xff] }
0x1bcb   :  { %6749 = verf.f32 %v3712_v45  ;;  %v3623_v39 = vadd.f32 %v3622_v33, %v3535_v36  ;;  %v3700_v40 = vadd.f32 %v3699_v19, %v3543_v24  ;;  %v3705_v63 = vmul.f32 0.5, %v3694_v34  ;;  %v4802_v33 = vld [vmem:[%s8722_s20 + $0x88] sm:$0xff] }
0x1bcc   :  { %6751 = verf.f32 %v3711_v12  ;;  %v3714_v38 = vmul.f32 0.70710677, %v3621_v30  ;;  %v3716_v20 = vmul.f32 0.70710677, %v3698_v6  ;;  %v3706_v51 = vmul.f32 0.5, %v3621_v30 }
0x1bcd   :  { %6753 = verf.f32 %v3713_v37  ;;  %v3715_v42 = vmul.f32 0.70710677, %v3623_v39  ;;  %v3717_v44 = vmul.f32 0.70710677, %v3700_v40  ;;  %v3707_v9 = vmul.f32 0.5, %v3623_v39  ;;  %v4015_v39 = vld [vmem:[%s8722_s20 + $0x8] sm:$0xff] }
0x1bce   :  { %6755 = verf.f32 %v3714_v38  ;;  %v3709_v25 = vmul.f32 0.5, %v3700_v40  ;;  %v3708_v13 = vmul.f32 0.5, %v3698_v6  ;;  %v4801_v6 = vld [vmem:[%s8722_s20 + $0x80] sm:$0xff]  ;;  %v6852_v19 = vmov 0.0|0.0   ;;  %v4803_v40 = vld [vmem:[%s8722_s20 + $0x90] sm:$0xff]  ;;  %v4804_v38 = vld [vmem:[%s8722_s20 + $0x98] sm:$0xff] }
0x1bcf   :  { %6757 = verf.f32 %v3716_v20  ;;  %6443 = vmatprep.subr.bf16.mxu1 %v6852_v19  ;;  %6419 = vmatprep.subr.bf16.mxu0 %v6852_v19 }
0x1bd0   :  { %6759 = verf.f32 %v3715_v42  ;;  %v4016_v42 = vld [vmem:[%s8722_s20 + $0x10] sm:$0xff] }
0x1bd1   :  { %6761 = verf.f32 %v3717_v44  ;;  %v4017_v44 = vld [vmem:[%s8722_s20 + $0x18] sm:$0xff] }
0x1bd4   :  { %v6748_v46 = vpop.eup %6747 }
0x1bd5   :  { %v6750_v54 = vpop.eup %6749  ;;  %v3726_v56 = vadd.f32 1.0, %v6748_v46  ;;  %v6447_v46 = vpack.c.bf16 %v4804_v38, %v4803_v40  ;;  %v4817_v38 = vld [vmem:[%s8722_s20 + $0x100] sm:$0xff] }
0x1bd6   :  { %v6752_v58 = vpop.eup %6751  ;;  %v3728_v55 = vadd.f32 1.0, %v6750_v54  ;;  %v6423_v54 = vpack.c.bf16 %v4017_v44, %v4016_v42 }
0x1bd7   :  { %v6754_v53 = vpop.eup %6753  ;;  %v3727_v5 = vadd.f32 1.0, %v6752_v58  ;;  %v3734_v60 = vmul.f32 %v3726_v56, %v3702_v62 }
0x1bd8   :  { %v3729_v3 = vadd.f32 1.0, %v6754_v53  ;;  %v6756_v10 = vpop.eup %6755  ;;  %v3736_v7 = vmul.f32 %v3728_v55, %v3704_v0  ;;  %v4806_v0 = vld [vmem:[%s8722_s20 + $0xa8] sm:$0xff] }
0x1bd9   :  { %v3735_v1 = vmul.f32 %v3727_v5, %v3703_v57  ;;  %v6758_v15 = vpop.eup %6757  ;;  %v3730_v49 = vadd.f32 1.0, %v6756_v10  ;;  %v4805_v10 = vld [vmem:[%s8722_s20 + $0xa0] sm:$0xff] }
0x1bda   :  { %v3737_v2 = vmul.f32 %v3729_v3, %v3705_v63  ;;  %v6760_v4 = vpop.eup %6759  ;;  %v3732_v31 = vadd.f32 1.0, %v6758_v15  ;;  %v4018_v15 = vld [vmem:[%s8722_s20 + $0x20] sm:$0xff] }
0x1bdb   :  { %3879 = vmatprep.mubr.f32.mxu1 %v3735_v1  ;;  %v6762_v8 = vpop.eup %6761  ;;  %v3731_v61 = vadd.f32 1.0, %v6760_v4  ;;  %v3738_v47 = vmul.f32 %v3730_v49, %v3706_v51  ;;  %v6450_v1 = vpack.c.bf16 %v4806_v0, %v4805_v10  ;;  %v4807_v4 = vld [vmem:[%s8722_s20 + $0xb0] sm:$0xff]  ;;  %v4810_v51 = vld [vmem:[%s8722_s20 + $0xc8] sm:$0xff] }
0x1bdc   :  { %3954 = vmatprep.mubr.f32.mxu0 %v3737_v2  ;;  %3880 = vmatmul.mubr.f32.vlgmr.msra.gmra.mrb[44].mxu1 %v3734_v60  ;;  %v3733_v11 = vadd.f32 1.0, %v6762_v8  ;;  %v3740_v35 = vmul.f32 %v3732_v31, %v3708_v13  ;;  %v4019_v60 = vld [vmem:[%s8722_s20 + $0x28] sm:$0xff]  ;;  %v4020_v8 = vld [vmem:[%s8722_s20 + $0x30] sm:$0xff]  ;;  %v4021_v31 = vld [vmem:[%s8722_s20 + $0x38] sm:$0xff] }
0x1bdd   :  { %3955 = vmatmul.mubr.f32.vlgmr.msra.gmra.mrb[34].mxu0 %v3736_v7  ;;  %v3739_v26 = vmul.f32 %v3731_v61, %v3707_v9  ;;  %v6426_v2 = vpack.c.bf16 %v4019_v60, %v4018_v15  ;;  %v4808_v7 = vld [vmem:[%s8722_s20 + $0xb8] sm:$0xff]  ;;  %v6429_v9 = vpack.c.bf16 %v4021_v31, %v4020_v8  ;;  %v4809_v61 = vld [vmem:[%s8722_s20 + $0xc0] sm:$0xff]  ;;  %v4023_v13 = vld [vmem:[%s8722_s20 + $0x48] sm:$0xff] }
0x1bde   :  { %v3741_v17 = vmul.f32 %v3733_v11, %v3709_v25  ;;  %v6453_v49 = vpack.c.bf16 %v4808_v7, %v4807_v4  ;;  %v6456_v25 = vpack.c.bf16 %v4810_v51, %v4809_v61  ;;  %v4022_v11 = vld [vmem:[%s8722_s20 + $0x40] sm:$0xff]  ;;  %v4822_v0 = vld [vmem:[%s8722_s20 + $0x128] sm:$0xff]  ;;  %v4823_v7 = vld [vmem:[%s8722_s20 + $0x130] sm:$0xff] }
0x1bdf   :  { %3884 = vmatprep.mubr.f32.mxu1 %v3739_v26  ;;  %v6432_v26 = vpack.c.bf16 %v4023_v13, %v4022_v11  ;;  %v4826_v61 = vld [vmem:[%s8722_s20 + $0x148] sm:$0xff]  ;;  %v4828_v11 = vld [vmem:[%s8722_s20 + $0x158] sm:$0xff] }
0x1be0   :  { %3959 = vmatprep.mubr.f32.mxu0 %v3741_v17  ;;  %3885 = vmatmul.mubr.f32.gmra.mrb[46].mxu1 %v3738_v47  ;;  %v4811_v17 = vld [vmem:[%s8722_s20 + $0xd0] sm:$0xff]  ;;  %v4812_v47 = vld [vmem:[%s8722_s20 + $0xd8] sm:$0xff] }
0x1be1   :  { %3960 = vmatmul.mubr.f32.gmra.mrb[36].mxu0 %v3740_v35  ;;  %v6459_v35 = vpack.c.bf16 %v4812_v47, %v4811_v17  ;;  %5666 = vmatprep.mubr.msk.f32.mxu1 %vm6853_vm12, %v6847_v59  ;;  %v4830_v17 = vld [vmem:[%s8722_s20 + $0x168] sm:$0xff] }
0x1be2   :  { %5631 = vmatprep.mubr.msk.f32.mxu0 %vm6853_vm12, %v6847_v59 }
0x1caf   :  { %v5216_v50 = vpop.f32.mrb[44].mxu1 }
0x1cb0   :  { %v5254_v21 = vpop.f32.mrb[34].mxu0  ;;  %v5217_v36 = vpop.f32.mrb[45].mxu1 }
0x1cb1   :  { %v5218_v24 = vadd.f32 %v5217_v36, %v5216_v50  ;;  %v5255_v27 = vpop.f32.mrb[35].mxu0  ;;  %v4024_v50 = vld [vmem:[%s8722_s20 + $0x50] sm:$0xff]  ;;  %v4813_v36 = vld [vmem:[%s8722_s20 + $0xe0] sm:$0xff] }
0x1cb2   :  { %v5256_v14 = vadd.f32 %v5255_v27, %v5254_v21  ;;  %v4025_v21 = vld [vmem:[%s8722_s20 + $0x58] sm:$0xff] }
0x1cb3   :  { %v3882_v48 = vadd.f32 %v5218_v24, %v4797_v16  ;;  %v5219_v43 = vpop.f32.mrb[46].mxu1  ;;  %v4814_v24 = vld [vmem:[%s8722_s20 + $0xe8] sm:$0xff] }
0x1cb4   :  { %v5257_v18 = vpop.f32.mrb[36].mxu0  ;;  %v5220_v32 = vpop.f32.mrb[47].mxu1  ;;  %v6462_v27 = vpack.c.bf16 %v4814_v24, %v4813_v36  ;;  %v4834_v36 = vld [vmem:[%s8722_s20 + $0x188] sm:$0xff] }
0x1cb5   :  { %v3957_v28 = vadd.f32 %v5256_v14, %v3882_v48  ;;  %v5221_v34 = vadd.f32 %v5220_v32, %v5219_v43  ;;  %v5258_v52 = vpop.f32.mrb[37].mxu0  ;;  %v4026_v14 = vld [vmem:[%s8722_s20 + $0x60] sm:$0xff]  ;;  %v4027_v48 = vld [vmem:[%s8722_s20 + $0x68] sm:$0xff] }
0x1cb6   :  { %v5259_v45 = vadd.f32 %v5258_v52, %v5257_v18  ;;  %v6438_v43 = vpack.c.bf16 %v4027_v48, %v4026_v14  ;;  %v4816_v18 = vld [vmem:[%s8722_s20 + $0xf8] sm:$0xff]  ;;  %v4835_v48 = vld [vmem:[%s8722_s20 + $0x190] sm:$0xff] }
0x1cb7   :  { %v3965_v12 = vadd.f32 %v3957_v28, %v7927_v23  ;;  %v3887_v37 = vadd.f32 %v5221_v34, %v4797_v16  ;;  %v4014_v23 = vld [vmem:[%s8722_s20] sm:$0xff]  ;;  %v6435_v16 = vpack.c.bf16 %v4025_v21, %v4024_v50  ;;  %v4815_v28 = vld [vmem:[%s8722_s20 + $0xf0] sm:$0xff]  ;;  %v4029_v52 = vld [vmem:[%s8722_s20 + $0x78] sm:$0xff] }
0x1cb8   :  { %v6420_v20 = vpack.c.bf16 %v4015_v39, %v4014_v23  ;;  %v6465_v32 = vpack.c.bf16 %v4816_v18, %v4815_v28  ;;  %v4028_v34 = vld [vmem:[%s8722_s20 + $0x70] sm:$0xff]  ;;  %v4798_v23 = vld [vmem:[%s8720_s18] ss:$0 sm:$0xff]  ;;  %v4832_v50 = vld [vmem:[%s8722_s20 + $0x178] sm:$0xff] }
0x1cb9   :  { %3969 = vadd.xlane.f32.xlu0 %v3965_v12  ;;  %v3962_v41 = vadd.f32 %v5259_v45, %v3887_v37  ;;  %v6441_v45 = vpack.c.bf16 %v4029_v52, %v4028_v34  ;;  %v4799_v39 = vld [vmem:[%s8721_s19] ss:$0 sm:$0xff]  ;;  %v4838_v34 = vld [vmem:[%s8722_s20 + $0x1a8] sm:$0xff] }
0x1cba   :  { %6421 = vmatpush3.bf16.msra.mxu0 %v6420_v20  ;;  %v4818_v20 = vld [vmem:[%s8722_s20 + $0x108] sm:$0xff] }
0x1cbb   :  { %v3966_v29 = vadd.f32 %v3962_v41, %v7924_v22  ;;  %v6444_v22 = vpack.c.bf16 %v4802_v33, %v4801_v6  ;;  %6422 = vmatprep.subr.bf16.mxu0 %v6852_v19 }
0x1cbd   :  { %v3971_v30 = vsel %vm458_vm3, %v3966_v29, 0.0  ;;  %6445 = vmatpush3.bf16.msra.mxu1 %v6444_v22 }
0x1cbe   :  { %3972 = vadd.xlane.f32.xlu1 %v3971_v30  ;;  %6446 = vmatprep.subr.bf16.mxu1 %v6852_v19 }
0x1cbf   :  { %6424 = vmatpush3.bf16.msra.mxu0 %v6423_v54 }
0x1cc0   :  { %6425 = vmatprep.subr.bf16.mxu0 %v6852_v19 }
0x1cc1   :  { %6448 = vmatpush3.bf16.msra.mxu1 %v6447_v46 }
0x1cc2   :  { %6449 = vmatprep.subr.bf16.mxu1 %v6852_v19 }
0x1cc3   :  { %6427 = vmatpush3.bf16.msra.mxu0 %v6426_v2 }
0x1cc4   :  { %6428 = vmatprep.subr.bf16.mxu0 %v6852_v19 }
0x1cc5   :  { %6451 = vmatpush3.bf16.msra.mxu1 %v6450_v1 }
0x1cc6   :  { %6452 = vmatprep.subr.bf16.mxu1 %v6852_v19 }
0x1cc7   :  { %6430 = vmatpush3.bf16.msra.mxu0 %v6429_v9  ;;  %v4825_v9 = vld [vmem:[%s8722_s20 + $0x140] sm:$0xff] }
0x1cc8   :  { %6431 = vmatprep.subr.bf16.mxu0 %v6852_v19  ;;  %v6480_v51 = vpack.c.bf16 %v4826_v61, %v4825_v9  ;;  %v4477_v61 = vld [vmem:[%s8724_s22] sm:$0xff]  ;;  %s4567_s22 = sshll.u32 %s6854_s29, 4  ;;  %s4568_s22 = int_to_ptr.vmem [resolvable:$true] %s4567_s22 }
0x1cc9   :  { %6454 = vmatpush3.bf16.msra.mxu1 %v6453_v49  ;;  %v4824_v49 = vld [vmem:[%s8722_s20 + $0x138] sm:$0xff]  ;;  %p6818_p3 = scmp.lt.s32.totalorder %s4568_s22, %s4568_s22 }
0x1cca   :  { %6455 = vmatprep.subr.bf16.mxu1 %v6852_v19  ;;  %v6477_v31 = vpack.c.bf16 %v4824_v49, %v4823_v7  ;;  %v4862_v7 = vld [vmem:[%s8722_s20 + $0x268] sm:$0xff] }
0x1ccb   :  { %6433 = vmatpush3.bf16.msra.mxu0 %v6432_v26  ;;  %v4829_v26 = vld [vmem:[%s8722_s20 + $0x160] sm:$0xff] }
0x1ccc   :  { %6434 = vmatprep.subr.bf16.mxu0 %v6852_v19  ;;  %v6486_v47 = vpack.c.bf16 %v4830_v17, %v4829_v26 }
0x1ccd   :  { %6457 = vmatpush3.bf16.msra.mxu1 %v6456_v25  ;;  %v4827_v25 = vld [vmem:[%s8722_s20 + $0x150] sm:$0xff] }
0x1cce   :  { %6458 = vmatprep.subr.bf16.mxu1 %v6852_v19  ;;  %v6483_v13 = vpack.c.bf16 %v4828_v11, %v4827_v25  ;;  %v4800_v11 = vld [vmem:[%s8723_s21] ss:$0 sm:$0xff]  ;;  %s6813_s21 = scalar_lea.vmem %s4568_s22, 32 }
0x1ccf   :  { %6436 = vmatpush3.bf16.msra.mxu0 %v6435_v16  ;;  %v4833_v16 = vld [vmem:[%s8722_s20 + $0x180] sm:$0xff]  ;;  %p6814_p2 = scmp.ne.s32.totalorder %s4568_s22, %s6813_s21  ;;  %p6819_p4 = scmp.lt.s32.totalorder %s6813_s21, %s6813_s21 }
0x1cd0   :  { %6437 = vmatprep.subr.bf16.mxu0 %v6852_v19  ;;  %v6492_v14 = vpack.c.bf16 %v4834_v36, %v4833_v16 }
0x1cd1   :  { %6460 = vmatpush3.bf16.msra.mxu1 %v6459_v35  ;;  %v4831_v35 = vld [vmem:[%s8722_s20 + $0x170] sm:$0xff]  ;;  %p6820_p5 = por %p6819_p4, %p6818_p3 }
0x1cd2   :  { %6461 = vmatprep.subr.bf16.mxu1 %v6852_v19  ;;  %v6489_v21 = vpack.c.bf16 %v4832_v50, %v4831_v35 }
0x1cd3   :  { %6439 = vmatpush3.bf16.msra.mxu0 %v6438_v43  ;;  %v4836_v43 = vld [vmem:[%s8722_s20 + $0x198] sm:$0xff]  ;;  %p6821_p6 = pnand %p6820_p5, %p6814_p2 }
0x1cd4   :  { %6440 = vmatprep.subr.bf16.mxu0 %v6852_v19  ;;  %v6495_v18 = vpack.c.bf16 %v4836_v43, %v4835_v48 }
0x1cd5   :  { %6463 = vmatpush3.bf16.msra.mxu1 %v6462_v27 }
0x1cd6   :  { %6464 = vmatprep.subr.bf16.mxu1 %v6852_v19 }
0x1cd7   :  { %6442 = vmatpush3.bf16.msra.mxu0 %v6441_v45  ;;  %v4839_v45 = vld [vmem:[%s8722_s20 + $0x1b0] sm:$0xff] }
0x1cd8   :  { %5774 = vmatprep.subr.mxu0 %v6847_v59 }
0x1cd9   :  { %6466 = vmatpush3.bf16.msra.mxu1 %v6465_v32  ;;  %v4837_v32 = vld [vmem:[%s8722_s20 + $0x1a0] sm:$0xff] }
0x1cda   :  { %6467 = vmatprep.subr.bf16.mxu1 %v6852_v19  ;;  %v6498_v52 = vpack.c.bf16 %v4838_v34, %v4837_v32 }
0x1d46   :  { %v3970_v58 = vpop.xlane.xlu0 %3969 }
0x1d47   :  { %v3974_v56 = vmul.f32 0.0078125, %v3970_v58 }
0x1d49   :  { %v8381_v53 = vsub.f32 %v3965_v12, %v3974_v56  ;;  %v6468_v56 = vpack.c.bf16 %v4818_v20, %v4817_v38  ;;  %v4847_v38 = vld [vmem:[%s8722_s20 + $0x1f0] sm:$0xff]  ;;  %v4848_v20 = vld [vmem:[%s8722_s20 + $0x1f8] sm:$0xff] }
0x1d4b   :  { %v3978_v55 = vmul.f32 %v8381_v53, %v8381_v53  ;;  %v3973_v57 = vpop.xlane.xlu1 %3972 }
0x1d4c   :  { %v3975_v5 = vmul.f32 0.0078125, %v3973_v57  ;;  %v4820_v57 = vld [vmem:[%s8722_s20 + $0x118] sm:$0xff] }
0x1d4d   :  { %3980 = vadd.xlane.f32.xlu0 %v3978_v55  ;;  %v4819_v55 = vld [vmem:[%s8722_s20 + $0x110] sm:$0xff] }
0x1d4e   :  { %v8385_v62 = vsub.f32 %v3966_v29, %v3975_v5  ;;  %v6471_v10 = vpack.c.bf16 %v4820_v57, %v4819_v55  ;;  %v4853_v55 = vld [vmem:[%s8722_s20 + $0x220] sm:$0xff]  ;;  %v4854_v57 = vld [vmem:[%s8722_s20 + $0x228] sm:$0xff] }
0x1d50   :  { %v3979_v63 = vmul.f32 %v8385_v62, %v8385_v62 }
0x1d52   :  { %v3982_v3 = vsel %vm458_vm3, %v3979_v63, 0.0 }
0x1d53   :  { %3983 = vadd.xlane.f32.xlu1 %v3982_v3 }
0x1dda   :  { %v3981_v12 = vpop.xlane.xlu0 %3980 }
0x1ddb   :  { %v3985_v37 = vmul.f32 0.0078125, %v3981_v12  ;;  %v4840_v12 = vld [vmem:[%s8722_s20 + $0x1b8] sm:$0xff] }
0x1ddd   :  { %v3987_v41 = vadd.f32 1e-12, %v3985_v37  ;;  %v6501_v37 = vpack.c.bf16 %v4840_v12, %v4839_v45 }
0x1ddf   :  { %6763 = vrsqrt.f32 %v3987_v41  ;;  %v4841_v41 = vld [vmem:[%s8722_s20 + $0x1c0] sm:$0xff] }
0x1de0   :  { %v3984_v29 = vpop.xlane.xlu1 %3983 }
0x1de1   :  { %v3986_v30 = vmul.f32 0.0078125, %v3984_v29  ;;  %v4842_v29 = vld [vmem:[%s8722_s20 + $0x1c8] sm:$0xff] }
0x1de3   :  { %v3988_v6 = vadd.f32 1e-12, %v3986_v30  ;;  %v6504_v30 = vpack.c.bf16 %v4842_v29, %v4841_v41 }
0x1de5   :  { %6765 = vrsqrt.f32 %v3988_v6  ;;  %v4843_v6 = vld [vmem:[%s8722_s20 + $0x1d0] sm:$0xff] }
0x1de9   :  { %v6764_v33 = vpop.eup %6763 }
0x1dea   :  { %v3991_v22 = vmul.f32 %v6764_v33, %v8381_v53  ;;  %v4844_v33 = vld [vmem:[%s8722_s20 + $0x1d8] sm:$0xff] }
0x1dec   :  { %v3999_v40 = vmul.f32 %v4798_v23, %v3991_v22  ;;  %v4845_v22 = vld [vmem:[%s8722_s20 + $0x1e0] sm:$0xff] }
0x1dee   :  { %v8491_v42 = vadd.f32 %v4799_v39, %v3999_v40 }
0x1def   :  { %v6766_v44 = vpop.eup %6765 }
0x1df0   :  { %v4011_v46 = vrot.slane %v8491_v42, 4  ;;  %v4107_v54 = vrot.slane %v8491_v42, 1  ;;  %v4109_v58 = vrot.slane %v8491_v42, 5  ;;  %v3992_v53 = vmul.f32 %v6766_v44, %v8385_v62  ;;  %v4821_v62 = vld [vmem:[%s8722_s20 + $0x120] sm:$0xff] }
0x1df1   :  { %v4293_v15 = vrot.slane %v8491_v42, 3  ;;  %v6474_v4 = vpack.c.bf16 %v4822_v0, %v4821_v62  ;;  %v4200_v24 = vrot.slane %v8491_v42, 2  ;;  %v4202_v27 = vrot.slane %v8491_v42, 6  ;;  %v4849_v44 = vld [vmem:[%s8722_s20 + $0x200] sm:$0xff]  ;;  %v4858_v62 = vld [vmem:[%s8722_s20 + $0x248] sm:$0xff] }
0x1df2   :  { %v4013_v5 = vsel %vm446_vm0, %v8491_v42, %v4011_v46  ;;  %v4111_v63 = vsel %vm446_vm0, %v4107_v54, %v4109_v58  ;;  %v4000_v3 = vmul.f32 %v4798_v23, %v3992_v53  ;;  %v6507_v23 = vpack.c.bf16 %v4844_v33, %v4843_v6  ;;  %v4851_v58 = vld [vmem:[%s8722_s20 + $0x210] sm:$0xff] }
0x1df3   :  { %5632 = vmatmul.mubr.f32.vlgmr.msra.gmra.mrb[38].mxu0 %v4013_v5  ;;  %5667 = vmatmul.mubr.f32.vlgmr.msra.gmra.mrb[48].mxu1 %v4111_v63  ;;  %v4204_v28 = vsel %vm446_vm0, %v4200_v24, %v4202_v27  ;;  %v6513_v42 = vpack.c.bf16 %v4848_v20, %v4847_v38  ;;  %v6522_v5 = vpack.c.bf16 %v4854_v57, %v4853_v55  ;;  %v4855_v63 = vld [vmem:[%s8722_s20 + $0x230] sm:$0xff] }
0x1df4   :  { %6469 = vmatpush3.bf16.msra.mxu1 %v6468_v56  ;;  %5701 = vmatprep.mubr.msk.f32.mxu1 %vm6853_vm12, %v6847_v59  ;;  %v4008_v1 = vadd.f32 %v4799_v39, %v4000_v3  ;;  %v4846_v39 = vld [vmem:[%s8722_s20 + $0x1e8] sm:$0xff]  ;;  %v4852_v56 = vld [vmem:[%s8722_s20 + $0x218] sm:$0xff] }
0x1df5   :  { %6470 = vmatprep.subr.bf16.mxu1 %v6852_v19  ;;  %5776 = vmatprep.mubr.msk.f32.mxu0 %vm6853_vm12, %v6847_v59  ;;  %v6510_v40 = vpack.c.bf16 %v4846_v39, %v4845_v22  ;;  %v6519_v53 = vpack.c.bf16 %v4852_v56, %v4851_v58 }
0x1df6   :  { %v4296_v60 = vrot.slane %v4008_v1, 7  ;;  %v8519_v2 = vsel %vm446_vm0, %v4011_v46, %v4008_v1  ;;  %v4850_v46 = vld [vmem:[%s8722_s20 + $0x208] sm:$0xff]  ;;  %v4859_v1 = vld [vmem:[%s8722_s20 + $0x250] sm:$0xff]  ;;  %5775 = vmatpush3.msra.mxu0 %v4477_v61 }
0x1df7   :  { %v6516_v54 = vpack.c.bf16 %v4850_v46, %v4849_v44 }
0x1df8   :  { %6472 = vmatpush3.bf16.msra.mxu1 %v6471_v10  ;;  %v8529_v8 = vsel %vm446_vm0, %v4293_v15, %v4296_v60  ;;  %v4857_v10 = vld [vmem:[%s8722_s20 + $0x240] sm:$0xff]  ;;  %v4860_v15 = vld [vmem:[%s8722_s20 + $0x258] sm:$0xff] }
0x1df9   :  { %6473 = vmatprep.subr.bf16.mxu1 %v6852_v19  ;;  %v6528_v0 = vpack.c.bf16 %v4858_v62, %v4857_v10  ;;  %v6531_v60 = vpack.c.bf16 %v4860_v15, %v4859_v1 }
0x1dfc   :  { %6475 = vmatpush3.bf16.msra.mxu1 %v6474_v4  ;;  %v4861_v4 = vld [vmem:[%s8722_s20 + $0x260] sm:$0xff] }
0x1dfd   :  { %6476 = vmatprep.subr.bf16.mxu1 %v6852_v19  ;;  %v6534_v49 = vpack.c.bf16 %v4862_v7, %v4861_v4 }
0x1e00   :  { %6478 = vmatpush3.bf16.msra.mxu1 %v6477_v31  ;;  %v4864_v31 = vld [vmem:[%s8722_s20 + $0x278] sm:$0xff] }
0x1e01   :  { %6479 = vmatprep.subr.bf16.mxu1 %v6852_v19 }
0x1e04   :  { %6481 = vmatpush3.bf16.msra.mxu1 %v6480_v51 }
0x1e05   :  { %6482 = vmatprep.subr.bf16.mxu1 %v6852_v19 }
0x1e08   :  { %6484 = vmatpush3.bf16.msra.mxu1 %v6483_v13 }
0x1e09   :  { %6485 = vmatprep.subr.bf16.mxu1 %v6852_v19 }
0x1e0c   :  { %6487 = vmatpush3.bf16.msra.mxu1 %v6486_v47 }
0x1e0d   :  { %6488 = vmatprep.subr.bf16.mxu1 %v6852_v19 }
0x1e10   :  { %6490 = vmatpush3.bf16.msra.mxu1 %v6489_v21 }
0x1e11   :  { %6491 = vmatprep.subr.bf16.mxu1 %v6852_v19 }
0x1e13   :  { %5702 = vmatmul.mubr.f32.vlgmr.msra.gmra.mrb[48].mxu1 %v4204_v28 }
0x1e14   :  { %6493 = vmatpush3.bf16.msra.mxu1 %v6492_v14  ;;  %5736 = vmatprep.mubr.msk.f32.mxu1 %vm6853_vm12, %v6847_v59 }
0x1e15   :  { %6494 = vmatprep.subr.bf16.mxu1 %v6852_v19 }
0x1e18   :  { %6496 = vmatpush3.bf16.msra.mxu1 %v6495_v18 }
0x1e19   :  { %6497 = vmatprep.subr.bf16.mxu1 %v6852_v19 }
0x1e1c   :  { %6499 = vmatpush3.bf16.msra.mxu1 %v6498_v52 }
0x1e1d   :  { %6500 = vmatprep.subr.bf16.mxu1 %v6852_v19 }
0x1e20   :  { %6502 = vmatpush3.bf16.msra.mxu1 %v6501_v37 }
0x1e21   :  { %6503 = vmatprep.subr.bf16.mxu1 %v6852_v19 }
0x1e24   :  { %6505 = vmatpush3.bf16.msra.mxu1 %v6504_v30 }
0x1e25   :  { %6506 = vmatprep.subr.bf16.mxu1 %v6852_v19 }
0x1e28   :  { %6508 = vmatpush3.bf16.msra.mxu1 %v6507_v23 }
0x1e29   :  { %6509 = vmatprep.subr.bf16.mxu1 %v6852_v19 }
0x1e2c   :  { %6511 = vmatpush3.bf16.msra.mxu1 %v6510_v40 }
0x1e2d   :  { %6512 = vmatprep.subr.bf16.mxu1 %v6852_v19 }
0x1e30   :  { %6514 = vmatpush3.bf16.msra.mxu1 %v6513_v42 }
0x1e31   :  { %6515 = vmatprep.subr.bf16.mxu1 %v6852_v19 }
0x1e33   :  { %5737 = vmatmul.mubr.f32.vlgmr.msra.gmra.mrb[48].mxu1 %v8529_v8  ;;  %v4863_v8 = vld [vmem:[%s8722_s20 + $0x270] sm:$0xff] }
0x1e34   :  { %6517 = vmatpush3.bf16.msra.mxu1 %v6516_v54  ;;  %5771 = vmatprep.mubr.msk.f32.mxu1 %vm6853_vm12, %v6847_v59  ;;  %v4856_v59 = vld [vmem:[%s8722_s20 + $0x238] sm:$0xff]  ;;  %v6537_v9 = vpack.c.bf16 %v4864_v31, %v4863_v8 }
0x1e35   :  { %6518 = vmatprep.subr.bf16.mxu1 %v6852_v19  ;;  %v6525_v3 = vpack.c.bf16 %v4856_v59, %v4855_v63 }
0x1e38   :  { %6520 = vmatpush3.bf16.msra.mxu1 %v6519_v53 }
0x1e39   :  { %6521 = vmatprep.subr.bf16.mxu1 %v6852_v19 }
0x1e3c   :  { %6523 = vmatpush3.bf16.msra.mxu1 %v6522_v5 }
0x1e3d   :  { %6524 = vmatprep.subr.bf16.mxu1 %v6852_v19 }
0x1e40   :  { %6526 = vmatpush3.bf16.msra.mxu1 %v6525_v3 }
0x1e41   :  { %6527 = vmatprep.subr.bf16.mxu1 %v6852_v19 }
0x1e44   :  { %6529 = vmatpush3.bf16.msra.mxu1 %v6528_v0 }
0x1e45   :  { %6530 = vmatprep.subr.bf16.mxu1 %v6852_v19 }
0x1e48   :  { %6532 = vmatpush3.bf16.msra.mxu1 %v6531_v60 }
0x1e49   :  { %6533 = vmatprep.subr.bf16.mxu1 %v6852_v19 }
0x1e4c   :  { %6535 = vmatpush3.bf16.msra.mxu1 %v6534_v49 }
0x1e4d   :  { %6536 = vmatprep.subr.bf16.mxu1 %v6852_v19 }
0x1e50   :  { %6538 = vmatpush3.bf16.msra.mxu1 %v6537_v9 }
0x1e53   :  { %5772 = vmatmul.mubr.f32.vlgmr.msra.gmra.mrb[48].mxu1 %v8519_v2  ;;  %v4865_v2 = vld [vmem:[%s8759_s2] ss:$0 sm:$0xff] }
0x1ec6   :  { %v4096_v51 = vpop.f32.mrb[38].mxu0 }
0x1ec7   :  { %v5633_v25 = vpop.f32.mrb[39].mxu0  ;;  %v4106_v13 = vadd.f32 %v4800_v11, %v4096_v51 }
0x1f26   :  { %v4471_v26 = vpop.f32.mrb[48].mxu1 }
0x1f27   :  { %v6540_v17 = vadd.f32 %v4471_v26, %v4106_v13  ;;  %v5773_v47 = vpop.f32.mrb[49].mxu1 }
0x1f29   :  { %v4476_v19 = vmax.f32 %v6540_v17, 0.0 }
0x1f2b   :  { %5777 = vmatmul.mubr.msk.f32.vlgmr.msra.gmra.mrb[40].mxu0 %vm4485_vm13, %v4476_v19 }
0x1ffe   :  { %v4555_v35 = vpop.f32.mrb[40].mxu0 }
0x1fff   :  { %v4556_v50 = vadd.f32 %v4865_v2, %v4555_v35  ;;  %v5778_v21 = vpop.f32.mrb[41].mxu0 }
0x2001   :  { %4560 = vst.msk [vmem:[#allocation7] sm:$0x3] %vm4559_vm14, %v4556_v50 }
0x2002   :  { %6824 = shalt.err (!%p6821_p6)
}
0x2003   :  { %s8760_s0 = sld [smem:[#allocation21_spill]] }
0x2009   :  { %s6825_s26 = scalar_lea.hbm %s8760_s0, 32 }
0x200a   :  { %p6826_p7 = scmp.ne.s32.totalorder %s8760_s0, %s6825_s26  ;;  %p6829_p8 = scmp.lt.u32.totalorder %s6825_s26, %s8760_s0 }
0x200c   :  { %p6831_p9 = pnand %p6829_p8, %p6826_p7 }
0x200e   :  { %6834 = shalt.err (!%p6831_p9)
}
0x200f   :  { %4570 = dma.vmem_to_hbm [thread:$0]  %s4568_s22, 32, %s8760_s0, [#allocation4]  }
0x2010   :  { %6839 = dma.done.wait [#allocation4], 32  }
0x2011   :  { %6840 = vsyncadd [#allocation4], 4294967264 }
0x2012   :  { %4574 = vsyncpa [#allocation3], 1 }
0x2013   :  { %4575 = vsyncpa [#allocation6], 1 }
0x2014   :  { %4576 = vsyncpa [#allocation4], 1 }

</bundles_post_ra>
